<compile_context>
chip_gen: v6e
topology: v6e:2x2x1
jax: 0.10.0
libtpu: 0.0.40
codegen_flags: <defaults>
</compile_context>

<pallas_src>
import functools

import jax
import jax.numpy as jnp
from jax import lax
from jax.experimental import pallas as pl
from jax.experimental.pallas import tpu as pltpu

# ----------------------------- config (small) -------------------------------
BATCH = 2
SEQ = 8
HIDDEN = 32              # config.hidden_size
NUM_HEADS = 4
HEAD_DIM = HIDDEN // NUM_HEADS
NUM_LAYERS = 2
INTER = 4 * HIDDEN       # BERT intermediate size
VOCAB = 100
MAX_POS = 32
NUM_LABELS = 8
GRU_H = HIDDEN // 2      # bidirectional GRU: hidden_size // 2 per direction
LB = SEQ * BATCH         # folded rows, time-major: row i = t*BATCH + b


# ------------------------------ in-kernel helpers ----------------------------
def _layernorm(x, g, b):
    mu = jnp.mean(x, axis=-1, keepdims=True)
    var = jnp.mean((x - mu) ** 2, axis=-1, keepdims=True)
    return (x - mu) * lax.rsqrt(var + 1e-12) * g + b


def _gelu(x):
    return 0.5 * x * (1.0 + jnp.tanh(0.7978845608028654 * (x + 0.044715 * x * x * x)))


# ------------------------------ fused Pallas kernel --------------------------
def fused_kernel(x_ref, bias_ref,
                 labels_ref, labprev_ref, maskf_ref, isfirst_ref, islast_ref,
                 bsel_ref,
                 emb_g_ref, emb_b_ref,
                 wqkv_ref, bqkv_ref, wo_ref, bo_ref, ln1_g_ref, ln1_b_ref,
                 w1_ref, b1_ref, w2_ref, b2_ref, ln2_g_ref, ln2_b_ref,
                 wih_ref, bih_ref, whh_ref, bhh_ref,
                 clsw_f_ref, clsw_b_ref, cls_b_ref,
                 trans_ref, start_ref, end_ref,
                 llh_ref,
                 *, num_heads, num_layers, batch, seq):
    lb, H = x_ref.shape
    hd = H // num_heads
    scale = 1.0 / float(hd) ** 0.5
    Hh = H // 2
    T = trans_ref.shape[0]

    # ---------------- BERT embeddings LayerNorm (batch folded) ---------------
    x = _layernorm(x_ref[...], emb_g_ref[...], emb_b_ref[...])          # (lb, H)
    bias = bias_ref[...]                                                 # (nh*lb, lb)

    # ---------------- BERT encoder (layers/heads statically unrolled) --------
    for lyr in range(num_layers):
        # one fused QKV projection per layer
        qkv = (jnp.dot(x, wqkv_ref[lyr], preferred_element_type=jnp.float32)
               + bqkv_ref[lyr])                                          # (lb, 3H)
        ss = []
        for h in range(num_heads):
            q = qkv[:, h * hd:(h + 1) * hd]
            k = qkv[:, H + h * hd:H + (h + 1) * hd]
            ss.append(jnp.dot(q, k.T, preferred_element_type=jnp.float32))
        # heads stacked along sublanes -> one softmax for all heads
        s = jnp.concatenate(ss, axis=0) * scale + bias                   # (nh*lb, lb)
        s = s - jnp.max(s, axis=-1, keepdims=True)
        p = jnp.exp(s)
        p = p * pl.reciprocal(jnp.sum(p, axis=-1, keepdims=True), approx=True)
        ctxs = []
        for h in range(num_heads):
            v = qkv[:, 2 * H + h * hd:2 * H + (h + 1) * hd]
            ctxs.append(jnp.dot(p[h * lb:(h + 1) * lb, :], v,
                                preferred_element_type=jnp.float32))
        ctx = jnp.concatenate(ctxs, axis=1)                              # (lb, H)
        # fused output projection (bo added once)
        attn = (jnp.dot(ctx, wo_ref[lyr], preferred_element_type=jnp.float32)
                + bo_ref[lyr])
        x = _layernorm(attn + x, ln1_g_ref[lyr], ln1_b_ref[lyr])

        h1 = _gelu(jnp.dot(x, w1_ref[lyr], preferred_element_type=jnp.float32)
                   + b1_ref[lyr])
        y = jnp.dot(h1, w2_ref[lyr], preferred_element_type=jnp.float32) + b2_ref[lyr] + x
        x = _layernorm(y, ln2_g_ref[lyr], ln2_b_ref[lyr])

    # TODO(synk): dropout is identity (eval mode).

    # ---------------- BiGRU (batched over B, fwd/bwd merged) -----------------
    # gx column layout: [r_f | r_b | z_f | z_b | n_f | n_b], each width Hh
    gx = jnp.dot(x, wih_ref[...], preferred_element_type=jnp.float32) + bih_ref[...]
    whh = whh_ref[...]
    bhh = bhh_ref[...]
    lane6 = lax.broadcasted_iota(jnp.int32, (1, 6 * Hh), 1)
    is_fwd = (lane6 % (2 * Hh)) < Hh                                     # fwd lanes mask

    hstate = jnp.zeros((batch, 2 * Hh), jnp.float32)                     # [h_f | h_b]
    hs_f, hs_b = [], []
    for step in range(seq):                                              # static unroll
        gh = jnp.dot(hstate, whh, preferred_element_type=jnp.float32) + bhh  # (B, 6Hh)
        gx_f = gx[step * batch:(step + 1) * batch, :]                    # time = step
        gx_b = gx[(seq - 1 - step) * batch:(seq - step) * batch, :]      # time = L-1-step
        gxt = jnp.where(is_fwd, gx_f, gx_b)                              # (B, 6Hh)

        rz = jax.nn.sigmoid(gxt[:, 0:4 * Hh] + gh[:, 0:4 * Hh])          # [r_f r_b z_f z_b]
        r = rz[:, 0:2 * Hh]
        zg = rz[:, 2 * Hh:4 * Hh]
        n = jnp.tanh(gxt[:, 4 * Hh:6 * Hh] + r * gh[:, 4 * Hh:6 * Hh])
        hstate = (1.0 - zg) * n + zg * hstate

        hs_f.append(hstate[:, 0:Hh])          # forward output at time = step
        hs_b.append(hstate[:, Hh:2 * Hh])     # backward output at time = L-1-step

    gru_f = jnp.concatenate(hs_f, axis=0)                                # (lb, Hh) time-major
    gru_b = jnp.concatenate(hs_b[::-1], axis=0)                          # (lb, Hh) time-major

    # ---------------- classifier + log_softmax -------------------------------
    emission = (jnp.dot(gru_f, clsw_f_ref[...], preferred_element_type=jnp.float32)
                + jnp.dot(gru_b, clsw_b_ref[...], preferred_element_type=jnp.float32)
                + cls_b_ref[...])                                        # (lb, T)
    emax = jnp.max(emission, axis=-1, keepdims=True)
    e = emission - (emax + jnp.log(jnp.sum(jnp.exp(emission - emax),
                                           axis=-1, keepdims=True)))

    # ---------------- CRF log-likelihood (batched) ----------------------------
    trans = trans_ref[...]                                               # (T, T)
    start = start_ref[...]                                               # (1, T)
    end = end_ref[...]                                                   # (1, T)
    maskf = maskf_ref[...]                                               # (lb, 1)
    isf = isfirst_ref[...]                                               # (lb, 1)
    isl = islast_ref[...]                                                # (lb, 1)

    # --- numerator: fully vectorized, hoisted out of the time loop ---
    lane_t = lax.broadcasted_iota(jnp.int32, (lb, T), 1)
    oh = (lane_t == labels_ref[...]).astype(jnp.float32)                 # onehot(label)
    oh_p = (lane_t == labprev_ref[...]).astype(jnp.float32)              # onehot(prev label)
    trans_prev = jnp.dot(oh_p, trans, preferred_element_type=jnp.float32)  # trans[prev, :]

    gold_lane = oh * (maskf * e + isf * start
                      + (1.0 - isf) * maskf * trans_prev + isl * end)    # (lb, T)
    gold = jnp.sum(jnp.dot(bsel_ref[...], gold_lane,
                           preferred_element_type=jnp.float32),
                   axis=-1, keepdims=True)                               # (B, 1)

    # --- denominator: forward algorithm, batched over B, doubly max-shifted ---
    colmax = jnp.max(trans, axis=0, keepdims=True)                       # (1, T)
    exp_trans = jnp.exp(trans - colmax)
    alpha = start + e[0:batch, :]                                        # (B, T), time 0
    for t in range(1, seq):                                              # static unroll
        e_t = e[t * batch:(t + 1) * batch, :]
        valid = maskf[t * batch:(t + 1) * batch, :]
        amax = jnp.max(alpha, axis=-1, keepdims=True)
        acc = jnp.dot(jnp.exp(alpha - amax), exp_trans,
                      preferred_element_type=jnp.float32)                # (B, T)
        nxt = jnp.log(acc) + amax + colmax + e_t
        alpha = jnp.where(valid > 0.0, nxt, alpha)
    zf = alpha + end
    zmax = jnp.max(zf, axis=-1, keepdims=True)
    denom = zmax + jnp.log(jnp.sum(jnp.exp(zf - zmax), axis=-1, keepdims=True))

    llh_ref[...] = gold - denom                                          # (B, 1), one store


# ------------------------- parameter preparation (XLA glue) -------------------
def prepare_kernel_params(p):
    """PyTorch-style params -> fused / block-structured kernel layout."""
    Hh = GRU_H
    layers = p['layers']
    stk = lambda name: jnp.stack([lyr[name] for lyr in layers])          # (NL, ...)

    wqkv = jnp.concatenate([stk('wq'), stk('wk'), stk('wv')], axis=2)    # (NL, H, 3H)
    bqkv = jnp.concatenate([stk('bq'), stk('bk'), stk('bv')], axis=2)    # (NL, 1, 3H)

    g = p['gru']

    def gates(w):  # split (.., 3*Hh) [r|z|n]
        return w[..., 0:Hh], w[..., Hh:2 * Hh], w[..., 2 * Hh:3 * Hh]

    rf, zf, nf = gates(g['wih_f'])
    rb, zb, nb = gates(g['wih_b'])
    wih = jnp.concatenate([rf, rb, zf, zb, nf, nb], axis=1)              # (H, 6Hh)
    brf, bzf, bnf = gates(g['bih_f'])
    brb, bzb, bnb = gates(g['bih_b'])
    bih = jnp.concatenate([brf, brb, bzf, bzb, bnf, bnb], axis=1)        # (1, 6Hh)

    hrf, hzf, hnf = gates(g['whh_f'])
    hrb, hzb, hnb = gates(g['whh_b'])
    zfill = jnp.zeros((Hh, Hh), jnp.float32)
    whh = jnp.concatenate([
        jnp.concatenate([hrf, zfill, hzf, zfill, hnf, zfill], axis=1),   # rows: h_f
        jnp.concatenate([zfill, hrb, zfill, hzb, zfill, hnb], axis=1),   # rows: h_b
    ], axis=0)                                                           # (2Hh, 6Hh)
    hbrf, hbzf, hbnf = gates(g['bhh_f'])
    hbrb, hbzb, hbnb = gates(g['bhh_b'])
    bhh = jnp.concatenate([hbrf, hbrb, hbzf, hbzb, hbnf, hbnb], axis=1)  # (1, 6Hh)

    return [
        p['emb_g'], p['emb_b'],
        wqkv, bqkv, stk('wo'), stk('bo'),
        stk('ln1_g'), stk('ln1_b'),
        stk('w1'), stk('b1'), stk('w2'), stk('b2'),
        stk('ln2_g'), stk('ln2_b'),
        wih, bih, whh, bhh,
        p['cls_w'][0:Hh, :], p['cls_w'][Hh:2 * Hh, :], p['cls_b'],
        p['crf']['trans'], p['crf']['start'], p['crf']['end'],
    ]


# ------------------------------- full forward ---------------------------------
@jax.jit
def kobert_bigru_crf_loss(params, input_ids, token_type_ids, attn_masks, labels):
    B, L = input_ids.shape
    H = HIDDEN
    lb = B * L

    # BERT embeddings (gathers are XLA glue; everything else is fused)
    pos_ids = jnp.arange(L)
    emb = (params['word_emb'][input_ids]
           + params['pos_emb'][pos_ids][None, :, :]
           + params['type_emb'][token_type_ids]).astype(jnp.float32)     # (B, L, H)
    x_rows = emb.transpose(1, 0, 2).reshape(lb, H)                        # time-major rows

    maskf = attn_masks.astype(jnp.float32)                                # (B, L)
    mask_rows = maskf.T.reshape(lb, 1)
    labels_i = labels.astype(jnp.int32)
    labels_rows = labels_i.T.reshape(lb, 1)
    labprev = jnp.concatenate([labels_i[:, :1], labels_i[:, :-1]], axis=1)
    labprev_rows = labprev.T.reshape(lb, 1)

    t_idx = jnp.arange(lb) // B
    b_idx = jnp.arange(lb) % B
    is_first = (t_idx == 0).astype(jnp.float32).reshape(lb, 1)
    mask_next = jnp.concatenate([maskf[:, 1:], jnp.zeros((B, 1), jnp.float32)], axis=1)
    is_last = (maskf * (1.0 - mask_next)).T.reshape(lb, 1)                # last valid pos

    # attention additive mask: block-diagonal over batch + key padding, per head
    same_b = b_idx[:, None] == b_idx[None, :]
    valid_j = mask_rows.reshape(1, lb) > 0.0
    attn_bias = jnp.where(same_b & valid_j, 0.0, -1e9).astype(jnp.float32)
    attn_bias = jnp.tile(attn_bias, (NUM_HEADS, 1))                       # (NH*lb, lb)

    batch_sel = (b_idx[None, :] == jnp.arange(B)[:, None]).astype(jnp.float32)  # (B, lb)

    weights = prepare_kernel_params(params)
    args = [x_rows, attn_bias, labels_rows, labprev_rows, mask_rows,
            is_first, is_last, batch_sel] + weights

    in_specs = [pl.BlockSpec(a.shape, lambda i, nd=a.ndim: (0,) * nd) for a in args]

    llh = pl.pallas_call(
        functools.partial(fused_kernel, num_heads=NUM_HEADS,
                          num_layers=NUM_LAYERS, batch=B, seq=L),
        grid=(1,),
        in_specs=in_specs,
        out_specs=pl.BlockSpec((B, 1), lambda i: (0, 0)),
        out_shape=jax.ShapeDtypeStruct((B, 1), jnp.float32),
        compiler_params=pltpu.CompilerParams(dimension_semantics=("arbitrary",)),
    )(*args)

    # loss = -crf(log_softmax(emission), labels, mask, reduction='mean')
    return -jnp.mean(llh)


# ------------------------------- params init ----------------------------------
def init_params(key):
    ks = iter(jax.random.split(key, 48))

    def nrm(shape, std=0.02):
        return jax.random.normal(next(ks), shape, jnp.float32) * std

    def uni(shape, bound):
        return jax.random.uniform(next(ks), shape, jnp.float32, -bound, bound)

    params = {
        'word_emb': nrm((VOCAB, HIDDEN)),
        'pos_emb': nrm((MAX_POS, HIDDEN)),
        'type_emb': nrm((2, HIDDEN)),
        'emb_g': jnp.ones((1, HIDDEN), jnp.float32),
        'emb_b': jnp.zeros((1, HIDDEN), jnp.float32),
        'layers': [],
    }
    for _ in range(NUM_LAYERS):
        params['layers'].append({
            'wq': nrm((HIDDEN, HIDDEN)), 'bq': jnp.zeros((1, HIDDEN), jnp.float32),
            'wk': nrm((HIDDEN, HIDDEN)), 'bk': jnp.zeros((1, HIDDEN), jnp.float32),
            'wv': nrm((HIDDEN, HIDDEN)), 'bv': jnp.zeros((1, HIDDEN), jnp.float32),
            'wo': nrm((HIDDEN, HIDDEN)), 'bo': jnp.zeros((1, HIDDEN), jnp.float32),
            'ln1_g': jnp.ones((1, HIDDEN), jnp.float32),
            'ln1_b': jnp.zeros((1, HIDDEN), jnp.float32),
            'w1': nrm((HIDDEN, INTER)), 'b1': jnp.zeros((1, INTER), jnp.float32),
            'w2': nrm((INTER, HIDDEN)), 'b2': jnp.zeros((1, HIDDEN), jnp.float32),
            'ln2_g': jnp.ones((1, HIDDEN), jnp.float32),
            'ln2_b': jnp.zeros((1, HIDDEN), jnp.float32),
        })
    bound = 1.0 / (GRU_H ** 0.5)
    params['gru'] = {
        # layout: (input, 3*hidden) with gate blocks [r | z | n]  (PyTorch order)
        'wih_f': uni((HIDDEN, 3 * GRU_H), bound),
        'whh_f': uni((GRU_H, 3 * GRU_H), bound),
        'bih_f': uni((1, 3 * GRU_H), bound),
        'bhh_f': uni((1, 3 * GRU_H), bound),
        'wih_b': uni((HIDDEN, 3 * GRU_H), bound),
        'whh_b': uni((GRU_H, 3 * GRU_H), bound),
        'bih_b': uni((1, 3 * GRU_H), bound),
        'bhh_b': uni((1, 3 * GRU_H), bound),
    }
    params['cls_w'] = nrm((HIDDEN, NUM_LABELS))
    params['cls_b'] = jnp.zeros((1, NUM_LABELS), jnp.float32)
    params['crf'] = {
        'trans': uni((NUM_LABELS, NUM_LABELS), 0.1),
        'start': uni((1, NUM_LABELS), 0.1),
        'end': uni((1, NUM_LABELS), 0.1),
    }
    return params


# ---------------------------------- main ---------------------------------------
if __name__ == "__main__":
    key = jax.random.PRNGKey(0)
    kp, ki, kl = jax.random.split(key, 3)
    params = init_params(kp)

    input_ids = jax.random.randint(ki, (BATCH, SEQ), 0, VOCAB, dtype=jnp.int32)
    token_type_ids = jnp.zeros((BATCH, SEQ), jnp.int32)
    # CRF requires mask[:, 0] == 1; second example has trailing padding.
    attn_masks = jnp.ones((BATCH, SEQ), jnp.int32).at[1, 6:].set(0)
    labels = jax.random.randint(kl, (BATCH, SEQ), 0, NUM_LABELS, dtype=jnp.int32)

    loss = kobert_bigru_crf_loss(params, input_ids, token_type_ids,
                                 attn_masks, labels)
    jax.block_until_ready(loss)
    assert bool(jnp.isfinite(loss))
    print("KERNEL_OK")
</pallas_src>

<mosaic_0001>
module attributes {stable_mosaic.version = 11 : i64} {
  func.func @fused_kernel(%arg0: i32, %arg1: memref<16x32xf32, #tpu.memory_space<vmem>>, %arg2: memref<64x16xf32, #tpu.memory_space<vmem>>, %arg3: memref<16x1xi32, #tpu.memory_space<vmem>>, %arg4: memref<16x1xi32, #tpu.memory_space<vmem>>, %arg5: memref<16x1xf32, #tpu.memory_space<vmem>>, %arg6: memref<16x1xf32, #tpu.memory_space<vmem>>, %arg7: memref<16x1xf32, #tpu.memory_space<vmem>>, %arg8: memref<2x16xf32, #tpu.memory_space<vmem>>, %arg9: memref<1x32xf32, #tpu.memory_space<vmem>>, %arg10: memref<1x32xf32, #tpu.memory_space<vmem>>, %arg11: memref<2x32x96xf32, #tpu.memory_space<vmem>>, %arg12: memref<2x1x96xf32, #tpu.memory_space<vmem>>, %arg13: memref<2x32x32xf32, #tpu.memory_space<vmem>>, %arg14: memref<2x1x32xf32, #tpu.memory_space<vmem>>, %arg15: memref<2x1x32xf32, #tpu.memory_space<vmem>>, %arg16: memref<2x1x32xf32, #tpu.memory_space<vmem>>, %arg17: memref<2x32x128xf32, #tpu.memory_space<vmem>>, %arg18: memref<2x1x128xf32, #tpu.memory_space<vmem>>, %arg19: memref<2x128x32xf32, #tpu.memory_space<vmem>>, %arg20: memref<2x1x32xf32, #tpu.memory_space<vmem>>, %arg21: memref<2x1x32xf32, #tpu.memory_space<vmem>>, %arg22: memref<2x1x32xf32, #tpu.memory_space<vmem>>, %arg23: memref<32x96xf32, #tpu.memory_space<vmem>>, %arg24: memref<1x96xf32, #tpu.memory_space<vmem>>, %arg25: memref<32x96xf32, #tpu.memory_space<vmem>>, %arg26: memref<1x96xf32, #tpu.memory_space<vmem>>, %arg27: memref<16x8xf32, #tpu.memory_space<vmem>>, %arg28: memref<16x8xf32, #tpu.memory_space<vmem>>, %arg29: memref<1x8xf32, #tpu.memory_space<vmem>>, %arg30: memref<8x8xf32, #tpu.memory_space<vmem>>, %arg31: memref<1x8xf32, #tpu.memory_space<vmem>>, %arg32: memref<1x8xf32, #tpu.memory_space<vmem>>, %arg33: memref<2x1xf32, #tpu.memory_space<vmem>>) attributes {dimension_semantics = [#tpu.dimension_semantics<arbitrary>], iteration_bounds = array<i64: 1>, scalar_prefetch = 0 : i64, scratch_operands = 0 : i64, tpu.core_type = #tpu.core_type<tc>, window_params = [{pipeline_mode = #tpu.pipeline_mode<synchronous>, transform_indices = @transform_0, window_bounds = array<i64: 16, 32>}, {pipeline_mode = #tpu.pipeline_mode<synchronous>, transform_indices = @transform_1, window_bounds = array<i64: 64, 16>}, {pipeline_mode = #tpu.pipeline_mode<synchronous>, transform_indices = @transform_2, window_bounds = array<i64: 16, 1>}, {pipeline_mode = #tpu.pipeline_mode<synchronous>, transform_indices = @transform_3, window_bounds = array<i64: 16, 1>}, {pipeline_mode = #tpu.pipeline_mode<synchronous>, transform_indices = @transform_4, window_bounds = array<i64: 16, 1>}, {pipeline_mode = #tpu.pipeline_mode<synchronous>, transform_indices = @transform_5, window_bounds = array<i64: 16, 1>}, {pipeline_mode = #tpu.pipeline_mode<synchronous>, transform_indices = @transform_6, window_bounds = array<i64: 16, 1>}, {pipeline_mode = #tpu.pipeline_mode<synchronous>, transform_indices = @transform_7, window_bounds = array<i64: 2, 16>}, {pipeline_mode = #tpu.pipeline_mode<synchronous>, transform_indices = @transform_8, window_bounds = array<i64: 1, 32>}, {pipeline_mode = #tpu.pipeline_mode<synchronous>, transform_indices = @transform_9, window_bounds = array<i64: 1, 32>}, {pipeline_mode = #tpu.pipeline_mode<synchronous>, transform_indices = @transform_10, window_bounds = array<i64: 2, 32, 96>}, {pipeline_mode = #tpu.pipeline_mode<synchronous>, transform_indices = @transform_11, window_bounds = array<i64: 2, 1, 96>}, {pipeline_mode = #tpu.pipeline_mode<synchronous>, transform_indices = @transform_12, window_bounds = array<i64: 2, 32, 32>}, {pipeline_mode = #tpu.pipeline_mode<synchronous>, transform_indices = @transform_13, window_bounds = array<i64: 2, 1, 32>}, {pipeline_mode = #tpu.pipeline_mode<synchronous>, transform_indices = @transform_14, window_bounds = array<i64: 2, 1, 32>}, {pipeline_mode = #tpu.pipeline_mode<synchronous>, transform_indices = @transform_15, window_bounds = array<i64: 2, 1, 32>}, {pipeline_mode = #tpu.pipeline_mode<synchronous>, transform_indices = @transform_16, window_bounds = array<i64: 2, 32, 128>}, {pipeline_mode = #tpu.pipeline_mode<synchronous>, transform_indices = @transform_17, window_bounds = array<i64: 2, 1, 128>}, {pipeline_mode = #tpu.pipeline_mode<synchronous>, transform_indices = @transform_18, window_bounds = array<i64: 2, 128, 32>}, {pipeline_mode = #tpu.pipeline_mode<synchronous>, transform_indices = @transform_19, window_bounds = array<i64: 2, 1, 32>}, {pipeline_mode = #tpu.pipeline_mode<synchronous>, transform_indices = @transform_20, window_bounds = array<i64: 2, 1, 32>}, {pipeline_mode = #tpu.pipeline_mode<synchronous>, transform_indices = @transform_21, window_bounds = array<i64: 2, 1, 32>}, {pipeline_mode = #tpu.pipeline_mode<synchronous>, transform_indices = @transform_22, window_bounds = array<i64: 32, 96>}, {pipeline_mode = #tpu.pipeline_mode<synchronous>, transform_indices = @transform_23, window_bounds = array<i64: 1, 96>}, {pipeline_mode = #tpu.pipeline_mode<synchronous>, transform_indices = @transform_24, window_bounds = array<i64: 32, 96>}, {pipeline_mode = #tpu.pipeline_mode<synchronous>, transform_indices = @transform_25, window_bounds = array<i64: 1, 96>}, {pipeline_mode = #tpu.pipeline_mode<synchronous>, transform_indices = @transform_26, window_bounds = array<i64: 16, 8>}, {pipeline_mode = #tpu.pipeline_mode<synchronous>, transform_indices = @transform_27, window_bounds = array<i64: 16, 8>}, {pipeline_mode = #tpu.pipeline_mode<synchronous>, transform_indices = @transform_28, window_bounds = array<i64: 1, 8>}, {pipeline_mode = #tpu.pipeline_mode<synchronous>, transform_indices = @transform_29, window_bounds = array<i64: 8, 8>}, {pipeline_mode = #tpu.pipeline_mode<synchronous>, transform_indices = @transform_30, window_bounds = array<i64: 1, 8>}, {pipeline_mode = #tpu.pipeline_mode<synchronous>, transform_indices = @transform_31, window_bounds = array<i64: 1, 8>}, {pipeline_mode = #tpu.pipeline_mode<synchronous>, transform_indices = @transform_32, window_bounds = array<i64: 2, 1>}]} {
    %c0 = arith.constant 0 : index
    %c0_0 = arith.constant 0 : index
    %0 = vector.load %arg1[%c0, %c0_0] : memref<16x32xf32, #tpu.memory_space<vmem>>, vector<16x32xf32>
    %c0_1 = arith.constant 0 : index
    %c0_2 = arith.constant 0 : index
    %1 = vector.load %arg9[%c0_1, %c0_2] : memref<1x32xf32, #tpu.memory_space<vmem>>, vector<1x32xf32>
    %c0_3 = arith.constant 0 : index
    %c0_4 = arith.constant 0 : index
    %2 = vector.load %arg10[%c0_3, %c0_4] : memref<1x32xf32, #tpu.memory_space<vmem>>, vector<1x32xf32>
    %cst = arith.constant dense<0.000000e+00> : vector<16xf32>
    %3 = vector.multi_reduction <add>, %0, %cst [1] : vector<16x32xf32> to vector<16xf32>
    %4 = vector.shape_cast %3 : vector<16xf32> to vector<16x1xf32>
    %cst_5 = arith.constant 3.200000e+01 : f32
    %5 = vector.broadcast %cst_5 : f32 to vector<16x1xf32>
    %6 = arith.divf %4, %5 : vector<16x1xf32>
    %7 = vector.broadcast %6 : vector<16x1xf32> to vector<16x32xf32>
    %8 = arith.subf %0, %7 : vector<16x32xf32>
    %9 = arith.mulf %8, %8 : vector<16x32xf32>
    %cst_6 = arith.constant dense<0.000000e+00> : vector<16xf32>
    %10 = vector.multi_reduction <add>, %9, %cst_6 [1] : vector<16x32xf32> to vector<16xf32>
    %11 = vector.shape_cast %10 : vector<16xf32> to vector<16x1xf32>
    %cst_7 = arith.constant 3.200000e+01 : f32
    %12 = vector.broadcast %cst_7 : f32 to vector<16x1xf32>
    %13 = arith.divf %11, %12 : vector<16x1xf32>
    %14 = vector.broadcast %6 : vector<16x1xf32> to vector<16x32xf32>
    %15 = arith.subf %0, %14 : vector<16x32xf32>
    %cst_8 = arith.constant 9.99999996E-13 : f32
    %16 = vector.broadcast %cst_8 : f32 to vector<16x1xf32>
    %17 = arith.addf %13, %16 : vector<16x1xf32>
    %18 = math.rsqrt %17 : vector<16x1xf32>
    %19 = vector.broadcast %18 : vector<16x1xf32> to vector<16x32xf32>
    %20 = arith.mulf %15, %19 : vector<16x32xf32>
    %21 = vector.broadcast %1 : vector<1x32xf32> to vector<16x32xf32>
    %22 = arith.mulf %20, %21 : vector<16x32xf32>
    %23 = vector.broadcast %2 : vector<1x32xf32> to vector<16x32xf32>
    %24 = arith.addf %22, %23 : vector<16x32xf32>
    %c0_9 = arith.constant 0 : index
    %c0_10 = arith.constant 0 : index
    %25 = vector.load %arg2[%c0_9, %c0_10] : memref<64x16xf32, #tpu.memory_space<vmem>>, vector<64x16xf32>
    %c0_11 = arith.constant 0 : index
    %c0_12 = arith.constant 0 : index
    %c0_13 = arith.constant 0 : index
    %26 = vector.load %arg11[%c0_11, %c0_12, %c0_13] : memref<2x32x96xf32, #tpu.memory_space<vmem>>, vector<1x32x96xf32>
    %27 = vector.shape_cast %26 : vector<1x32x96xf32> to vector<32x96xf32>
    %cst_14 = arith.constant dense<0.000000e+00> : vector<16x96xf32>
    %28 = tpu.matmul %24, %27, %cst_14 {dimension_numbers = #tpu.dot_dimension_numbers<[1], [0], [0], [1], [0, 0, 1, 1], [], []>} : vector<16x32xf32>, vector<32x96xf32>, vector<16x96xf32> -> vector<16x96xf32>
    %c0_15 = arith.constant 0 : index
    %c0_16 = arith.constant 0 : index
    %c0_17 = arith.constant 0 : index
    %29 = vector.load %arg12[%c0_15, %c0_16, %c0_17] : memref<2x1x96xf32, #tpu.memory_space<vmem>>, vector<1x1x96xf32>
    %30 = vector.shape_cast %29 : vector<1x1x96xf32> to vector<1x96xf32>
    %31 = vector.broadcast %30 : vector<1x96xf32> to vector<16x96xf32>
    %32 = arith.addf %28, %31 : vector<16x96xf32>
    %33 = vector.extract_strided_slice %32 {offsets = [0, 0], sizes = [16, 8], strides = [1, 1]} : vector<16x96xf32> to vector<16x8xf32>
    %34 = vector.extract_strided_slice %32 {offsets = [0, 32], sizes = [16, 8], strides = [1, 1]} : vector<16x96xf32> to vector<16x8xf32>
    %35 = tpu.transpose %34, [1, 0] : vector<16x8xf32> -> vector<8x16xf32>
    %cst_18 = arith.constant dense<0.000000e+00> : vector<16x16xf32>
    %36 = tpu.matmul %33, %35, %cst_18 {dimension_numbers = #tpu.dot_dimension_numbers<[1], [0], [0], [1], [0, 0, 1, 1], [], []>} : vector<16x8xf32>, vector<8x16xf32>, vector<16x16xf32> -> vector<16x16xf32>
    %37 = vector.extract_strided_slice %32 {offsets = [0, 8], sizes = [16, 8], strides = [1, 1]} : vector<16x96xf32> to vector<16x8xf32>
    %38 = vector.extract_strided_slice %32 {offsets = [0, 40], sizes = [16, 8], strides = [1, 1]} : vector<16x96xf32> to vector<16x8xf32>
    %39 = tpu.transpose %38, [1, 0] : vector<16x8xf32> -> vector<8x16xf32>
    %cst_19 = arith.constant dense<0.000000e+00> : vector<16x16xf32>
    %40 = tpu.matmul %37, %39, %cst_19 {dimension_numbers = #tpu.dot_dimension_numbers<[1], [0], [0], [1], [0, 0, 1, 1], [], []>} : vector<16x8xf32>, vector<8x16xf32>, vector<16x16xf32> -> vector<16x16xf32>
    %41 = vector.extract_strided_slice %32 {offsets = [0, 16], sizes = [16, 8], strides = [1, 1]} : vector<16x96xf32> to vector<16x8xf32>
    %42 = vector.extract_strided_slice %32 {offsets = [0, 48], sizes = [16, 8], strides = [1, 1]} : vector<16x96xf32> to vector<16x8xf32>
    %43 = tpu.transpose %42, [1, 0] : vector<16x8xf32> -> vector<8x16xf32>
    %cst_20 = arith.constant dense<0.000000e+00> : vector<16x16xf32>
    %44 = tpu.matmul %41, %43, %cst_20 {dimension_numbers = #tpu.dot_dimension_numbers<[1], [0], [0], [1], [0, 0, 1, 1], [], []>} : vector<16x8xf32>, vector<8x16xf32>, vector<16x16xf32> -> vector<16x16xf32>
    %45 = vector.extract_strided_slice %32 {offsets = [0, 24], sizes = [16, 8], strides = [1, 1]} : vector<16x96xf32> to vector<16x8xf32>
    %46 = vector.extract_strided_slice %32 {offsets = [0, 56], sizes = [16, 8], strides = [1, 1]} : vector<16x96xf32> to vector<16x8xf32>
    %47 = tpu.transpose %46, [1, 0] : vector<16x8xf32> -> vector<8x16xf32>
    %cst_21 = arith.constant dense<0.000000e+00> : vector<16x16xf32>
    %48 = tpu.matmul %45, %47, %cst_21 {dimension_numbers = #tpu.dot_dimension_numbers<[1], [0], [0], [1], [0, 0, 1, 1], [], []>} : vector<16x8xf32>, vector<8x16xf32>, vector<16x16xf32> -> vector<16x16xf32>
    %49 = tpu.concatenate %36, %40, %44, %48 in 0 : vector<16x16xf32>, vector<16x16xf32>, vector<16x16xf32>, vector<16x16xf32> -> vector<64x16xf32>
    %cst_22 = arith.constant 0.353553385 : f32
    %50 = vector.broadcast %cst_22 : f32 to vector<64x16xf32>
    %51 = arith.mulf %49, %50 : vector<64x16xf32>
    %52 = arith.addf %51, %25 : vector<64x16xf32>
    %cst_23 = arith.constant dense<0xFF800000> : vector<64xf32>
    %53 = vector.multi_reduction <maximumf>, %52, %cst_23 [1] : vector<64x16xf32> to vector<64xf32>
    %54 = vector.shape_cast %53 : vector<64xf32> to vector<64x1xf32>
    %55 = vector.broadcast %54 : vector<64x1xf32> to vector<64x16xf32>
    %56 = arith.subf %52, %55 : vector<64x16xf32>
    %57 = math.exp %56 : vector<64x16xf32>
    %cst_24 = arith.constant dense<0.000000e+00> : vector<64xf32>
    %58 = vector.multi_reduction <add>, %57, %cst_24 [1] : vector<64x16xf32> to vector<64xf32>
    %59 = vector.shape_cast %58 : vector<64xf32> to vector<64x1xf32>
    %60 = tpu.reciprocal %59 {approx = true} : vector<64x1xf32> -> vector<64x1xf32>
    %61 = vector.broadcast %60 : vector<64x1xf32> to vector<64x16xf32>
    %62 = arith.mulf %57, %61 : vector<64x16xf32>
    %63 = vector.extract_strided_slice %32 {offsets = [0, 64], sizes = [16, 8], strides = [1, 1]} : vector<16x96xf32> to vector<16x8xf32>
    %64 = vector.extract_strided_slice %62 {offsets = [0, 0], sizes = [16, 16], strides = [1, 1]} : vector<64x16xf32> to vector<16x16xf32>
    %cst_25 = arith.constant dense<0.000000e+00> : vector<16x8xf32>
    %65 = tpu.matmul %64, %63, %cst_25 {dimension_numbers = #tpu.dot_dimension_numbers<[1], [0], [0], [1], [0, 0, 1, 1], [], []>} : vector<16x16xf32>, vector<16x8xf32>, vector<16x8xf32> -> vector<16x8xf32>
    %66 = vector.extract_strided_slice %32 {offsets = [0, 72], sizes = [16, 8], strides = [1, 1]} : vector<16x96xf32> to vector<16x8xf32>
    %67 = vector.extract_strided_slice %62 {offsets = [16, 0], sizes = [16, 16], strides = [1, 1]} : vector<64x16xf32> to vector<16x16xf32>
    %cst_26 = arith.constant dense<0.000000e+00> : vector<16x8xf32>
    %68 = tpu.matmul %67, %66, %cst_26 {dimension_numbers = #tpu.dot_dimension_numbers<[1], [0], [0], [1], [0, 0, 1, 1], [], []>} : vector<16x16xf32>, vector<16x8xf32>, vector<16x8xf32> -> vector<16x8xf32>
    %69 = vector.extract_strided_slice %32 {offsets = [0, 80], sizes = [16, 8], strides = [1, 1]} : vector<16x96xf32> to vector<16x8xf32>
    %70 = vector.extract_strided_slice %62 {offsets = [32, 0], sizes = [16, 16], strides = [1, 1]} : vector<64x16xf32> to vector<16x16xf32>
    %cst_27 = arith.constant dense<0.000000e+00> : vector<16x8xf32>
    %71 = tpu.matmul %70, %69, %cst_27 {dimension_numbers = #tpu.dot_dimension_numbers<[1], [0], [0], [1], [0, 0, 1, 1], [], []>} : vector<16x16xf32>, vector<16x8xf32>, vector<16x8xf32> -> vector<16x8xf32>
    %72 = vector.extract_strided_slice %32 {offsets = [0, 88], sizes = [16, 8], strides = [1, 1]} : vector<16x96xf32> to vector<16x8xf32>
    %73 = vector.extract_strided_slice %62 {offsets = [48, 0], sizes = [16, 16], strides = [1, 1]} : vector<64x16xf32> to vector<16x16xf32>
    %cst_28 = arith.constant dense<0.000000e+00> : vector<16x8xf32>
    %74 = tpu.matmul %73, %72, %cst_28 {dimension_numbers = #tpu.dot_dimension_numbers<[1], [0], [0], [1], [0, 0, 1, 1], [], []>} : vector<16x16xf32>, vector<16x8xf32>, vector<16x8xf32> -> vector<16x8xf32>
    %75 = tpu.concatenate %65, %68, %71, %74 in 1 : vector<16x8xf32>, vector<16x8xf32>, vector<16x8xf32>, vector<16x8xf32> -> vector<16x32xf32>
    %c0_29 = arith.constant 0 : index
    %c0_30 = arith.constant 0 : index
    %c0_31 = arith.constant 0 : index
    %76 = vector.load %arg13[%c0_29, %c0_30, %c0_31] : memref<2x32x32xf32, #tpu.memory_space<vmem>>, vector<1x32x32xf32>
    %77 = vector.shape_cast %76 : vector<1x32x32xf32> to vector<32x32xf32>
    %cst_32 = arith.constant dense<0.000000e+00> : vector<16x32xf32>
    %78 = tpu.matmul %75, %77, %cst_32 {dimension_numbers = #tpu.dot_dimension_numbers<[1], [0], [0], [1], [0, 0, 1, 1], [], []>} : vector<16x32xf32>, vector<32x32xf32>, vector<16x32xf32> -> vector<16x32xf32>
    %c0_33 = arith.constant 0 : index
    %c0_34 = arith.constant 0 : index
    %c0_35 = arith.constant 0 : index
    %79 = vector.load %arg14[%c0_33, %c0_34, %c0_35] : memref<2x1x32xf32, #tpu.memory_space<vmem>>, vector<1x1x32xf32>
    %80 = vector.shape_cast %79 : vector<1x1x32xf32> to vector<1x32xf32>
    %81 = vector.broadcast %80 : vector<1x32xf32> to vector<16x32xf32>
    %82 = arith.addf %78, %81 : vector<16x32xf32>
    %83 = arith.addf %82, %24 : vector<16x32xf32>
    %c0_36 = arith.constant 0 : index
    %c0_37 = arith.constant 0 : index
    %c0_38 = arith.constant 0 : index
    %84 = vector.load %arg15[%c0_36, %c0_37, %c0_38] : memref<2x1x32xf32, #tpu.memory_space<vmem>>, vector<1x1x32xf32>
    %85 = vector.shape_cast %84 : vector<1x1x32xf32> to vector<1x32xf32>
    %c0_39 = arith.constant 0 : index
    %c0_40 = arith.constant 0 : index
    %c0_41 = arith.constant 0 : index
    %86 = vector.load %arg16[%c0_39, %c0_40, %c0_41] : memref<2x1x32xf32, #tpu.memory_space<vmem>>, vector<1x1x32xf32>
    %87 = vector.shape_cast %86 : vector<1x1x32xf32> to vector<1x32xf32>
    %cst_42 = arith.constant dense<0.000000e+00> : vector<16xf32>
    %88 = vector.multi_reduction <add>, %83, %cst_42 [1] : vector<16x32xf32> to vector<16xf32>
    %89 = vector.shape_cast %88 : vector<16xf32> to vector<16x1xf32>
    %cst_43 = arith.constant 3.200000e+01 : f32
    %90 = vector.broadcast %cst_43 : f32 to vector<16x1xf32>
    %91 = arith.divf %89, %90 : vector<16x1xf32>
    %92 = vector.broadcast %91 : vector<16x1xf32> to vector<16x32xf32>
    %93 = arith.subf %83, %92 : vector<16x32xf32>
    %94 = arith.mulf %93, %93 : vector<16x32xf32>
    %cst_44 = arith.constant dense<0.000000e+00> : vector<16xf32>
    %95 = vector.multi_reduction <add>, %94, %cst_44 [1] : vector<16x32xf32> to vector<16xf32>
    %96 = vector.shape_cast %95 : vector<16xf32> to vector<16x1xf32>
    %cst_45 = arith.constant 3.200000e+01 : f32
    %97 = vector.broadcast %cst_45 : f32 to vector<16x1xf32>
    %98 = arith.divf %96, %97 : vector<16x1xf32>
    %99 = vector.broadcast %91 : vector<16x1xf32> to vector<16x32xf32>
    %100 = arith.subf %83, %99 : vector<16x32xf32>
    %cst_46 = arith.constant 9.99999996E-13 : f32
    %101 = vector.broadcast %cst_46 : f32 to vector<16x1xf32>
    %102 = arith.addf %98, %101 : vector<16x1xf32>
    %103 = math.rsqrt %102 : vector<16x1xf32>
    %104 = vector.broadcast %103 : vector<16x1xf32> to vector<16x32xf32>
    %105 = arith.mulf %100, %104 : vector<16x32xf32>
    %106 = vector.broadcast %85 : vector<1x32xf32> to vector<16x32xf32>
    %107 = arith.mulf %105, %106 : vector<16x32xf32>
    %108 = vector.broadcast %87 : vector<1x32xf32> to vector<16x32xf32>
    %109 = arith.addf %107, %108 : vector<16x32xf32>
    %c0_47 = arith.constant 0 : index
    %c0_48 = arith.constant 0 : index
    %c0_49 = arith.constant 0 : index
    %110 = vector.load %arg17[%c0_47, %c0_48, %c0_49] : memref<2x32x128xf32, #tpu.memory_space<vmem>>, vector<1x32x128xf32>
    %111 = vector.shape_cast %110 : vector<1x32x128xf32> to vector<32x128xf32>
    %cst_50 = arith.constant dense<0.000000e+00> : vector<16x128xf32>
    %112 = tpu.matmul %109, %111, %cst_50 {dimension_numbers = #tpu.dot_dimension_numbers<[1], [0], [0], [1], [0, 0, 1, 1], [], []>} : vector<16x32xf32>, vector<32x128xf32>, vector<16x128xf32> -> vector<16x128xf32>
    %c0_51 = arith.constant 0 : index
    %c0_52 = arith.constant 0 : index
    %c0_53 = arith.constant 0 : index
    %113 = vector.load %arg18[%c0_51, %c0_52, %c0_53] : memref<2x1x128xf32, #tpu.memory_space<vmem>>, vector<1x1x128xf32>
    %114 = vector.shape_cast %113 : vector<1x1x128xf32> to vector<1x128xf32>
    %115 = vector.broadcast %114 : vector<1x128xf32> to vector<16x128xf32>
    %116 = arith.addf %112, %115 : vector<16x128xf32>
    %cst_54 = arith.constant 5.000000e-01 : f32
    %117 = vector.broadcast %cst_54 : f32 to vector<16x128xf32>
    %118 = arith.mulf %117, %116 : vector<16x128xf32>
    %cst_55 = arith.constant 4.471500e-02 : f32
    %119 = vector.broadcast %cst_55 : f32 to vector<16x128xf32>
    %120 = arith.mulf %119, %116 : vector<16x128xf32>
    %121 = arith.mulf %120, %116 : vector<16x128xf32>
    %122 = arith.mulf %121, %116 : vector<16x128xf32>
    %123 = arith.addf %116, %122 : vector<16x128xf32>
    %cst_56 = arith.constant 0.797884583 : f32
    %124 = vector.broadcast %cst_56 : f32 to vector<16x128xf32>
    %125 = arith.mulf %124, %123 : vector<16x128xf32>
    %126 = math.tanh %125 : vector<16x128xf32>
    %cst_57 = arith.constant 1.000000e+00 : f32
    %127 = vector.broadcast %cst_57 : f32 to vector<16x128xf32>
    %128 = arith.addf %127, %126 : vector<16x128xf32>
    %129 = arith.mulf %118, %128 : vector<16x128xf32>
    %c0_58 = arith.constant 0 : index
    %c0_59 = arith.constant 0 : index
    %c0_60 = arith.constant 0 : index
    %130 = vector.load %arg19[%c0_58, %c0_59, %c0_60] : memref<2x128x32xf32, #tpu.memory_space<vmem>>, vector<1x128x32xf32>
    %131 = vector.shape_cast %130 : vector<1x128x32xf32> to vector<128x32xf32>
    %cst_61 = arith.constant dense<0.000000e+00> : vector<16x32xf32>
    %132 = tpu.matmul %129, %131, %cst_61 {dimension_numbers = #tpu.dot_dimension_numbers<[1], [0], [0], [1], [0, 0, 1, 1], [], []>} : vector<16x128xf32>, vector<128x32xf32>, vector<16x32xf32> -> vector<16x32xf32>
    %c0_62 = arith.constant 0 : index
    %c0_63 = arith.constant 0 : index
    %c0_64 = arith.constant 0 : index
    %133 = vector.load %arg20[%c0_62, %c0_63, %c0_64] : memref<2x1x32xf32, #tpu.memory_space<vmem>>, vector<1x1x32xf32>
    %134 = vector.shape_cast %133 : vector<1x1x32xf32> to vector<1x32xf32>
    %135 = vector.broadcast %134 : vector<1x32xf32> to vector<16x32xf32>
    %136 = arith.addf %132, %135 : vector<16x32xf32>
    %137 = arith.addf %136, %109 : vector<16x32xf32>
    %c0_65 = arith.constant 0 : index
    %c0_66 = arith.constant 0 : index
    %c0_67 = arith.constant 0 : index
    %138 = vector.load %arg21[%c0_65, %c0_66, %c0_67] : memref<2x1x32xf32, #tpu.memory_space<vmem>>, vector<1x1x32xf32>
    %139 = vector.shape_cast %138 : vector<1x1x32xf32> to vector<1x32xf32>
    %c0_68 = arith.constant 0 : index
    %c0_69 = arith.constant 0 : index
    %c0_70 = arith.constant 0 : index
    %140 = vector.load %arg22[%c0_68, %c0_69, %c0_70] : memref<2x1x32xf32, #tpu.memory_space<vmem>>, vector<1x1x32xf32>
    %141 = vector.shape_cast %140 : vector<1x1x32xf32> to vector<1x32xf32>
    %cst_71 = arith.constant dense<0.000000e+00> : vector<16xf32>
    %142 = vector.multi_reduction <add>, %137, %cst_71 [1] : vector<16x32xf32> to vector<16xf32>
    %143 = vector.shape_cast %142 : vector<16xf32> to vector<16x1xf32>
    %cst_72 = arith.constant 3.200000e+01 : f32
    %144 = vector.broadcast %cst_72 : f32 to vector<16x1xf32>
    %145 = arith.divf %143, %144 : vector<16x1xf32>
    %146 = vector.broadcast %145 : vector<16x1xf32> to vector<16x32xf32>
    %147 = arith.subf %137, %146 : vector<16x32xf32>
    %148 = arith.mulf %147, %147 : vector<16x32xf32>
    %cst_73 = arith.constant dense<0.000000e+00> : vector<16xf32>
    %149 = vector.multi_reduction <add>, %148, %cst_73 [1] : vector<16x32xf32> to vector<16xf32>
    %150 = vector.shape_cast %149 : vector<16xf32> to vector<16x1xf32>
    %cst_74 = arith.constant 3.200000e+01 : f32
    %151 = vector.broadcast %cst_74 : f32 to vector<16x1xf32>
    %152 = arith.divf %150, %151 : vector<16x1xf32>
    %153 = vector.broadcast %145 : vector<16x1xf32> to vector<16x32xf32>
    %154 = arith.subf %137, %153 : vector<16x32xf32>
    %cst_75 = arith.constant 9.99999996E-13 : f32
    %155 = vector.broadcast %cst_75 : f32 to vector<16x1xf32>
    %156 = arith.addf %152, %155 : vector<16x1xf32>
    %157 = math.rsqrt %156 : vector<16x1xf32>
    %158 = vector.broadcast %157 : vector<16x1xf32> to vector<16x32xf32>
    %159 = arith.mulf %154, %158 : vector<16x32xf32>
    %160 = vector.broadcast %139 : vector<1x32xf32> to vector<16x32xf32>
    %161 = arith.mulf %159, %160 : vector<16x32xf32>
    %162 = vector.broadcast %141 : vector<1x32xf32> to vector<16x32xf32>
    %163 = arith.addf %161, %162 : vector<16x32xf32>
    %c1 = arith.constant 1 : index
    %c0_76 = arith.constant 0 : index
    %c0_77 = arith.constant 0 : index
    %164 = vector.load %arg11[%c1, %c0_76, %c0_77] : memref<2x32x96xf32, #tpu.memory_space<vmem>>, vector<1x32x96xf32>
    %165 = vector.shape_cast %164 : vector<1x32x96xf32> to vector<32x96xf32>
    %cst_78 = arith.constant dense<0.000000e+00> : vector<16x96xf32>
    %166 = tpu.matmul %163, %165, %cst_78 {dimension_numbers = #tpu.dot_dimension_numbers<[1], [0], [0], [1], [0, 0, 1, 1], [], []>} : vector<16x32xf32>, vector<32x96xf32>, vector<16x96xf32> -> vector<16x96xf32>
    %c1_79 = arith.constant 1 : index
    %c0_80 = arith.constant 0 : index
    %c0_81 = arith.constant 0 : index
    %167 = vector.load %arg12[%c1_79, %c0_80, %c0_81] : memref<2x1x96xf32, #tpu.memory_space<vmem>>, vector<1x1x96xf32>
    %168 = vector.shape_cast %167 : vector<1x1x96xf32> to vector<1x96xf32>
    %169 = vector.broadcast %168 : vector<1x96xf32> to vector<16x96xf32>
    %170 = arith.addf %166, %169 : vector<16x96xf32>
    %171 = vector.extract_strided_slice %170 {offsets = [0, 0], sizes = [16, 8], strides = [1, 1]} : vector<16x96xf32> to vector<16x8xf32>
    %172 = vector.extract_strided_slice %170 {offsets = [0, 32], sizes = [16, 8], strides = [1, 1]} : vector<16x96xf32> to vector<16x8xf32>
    %173 = tpu.transpose %172, [1, 0] : vector<16x8xf32> -> vector<8x16xf32>
    %cst_82 = arith.constant dense<0.000000e+00> : vector<16x16xf32>
    %174 = tpu.matmul %171, %173, %cst_82 {dimension_numbers = #tpu.dot_dimension_numbers<[1], [0], [0], [1], [0, 0, 1, 1], [], []>} : vector<16x8xf32>, vector<8x16xf32>, vector<16x16xf32> -> vector<16x16xf32>
    %175 = vector.extract_strided_slice %170 {offsets = [0, 8], sizes = [16, 8], strides = [1, 1]} : vector<16x96xf32> to vector<16x8xf32>
    %176 = vector.extract_strided_slice %170 {offsets = [0, 40], sizes = [16, 8], strides = [1, 1]} : vector<16x96xf32> to vector<16x8xf32>
    %177 = tpu.transpose %176, [1, 0] : vector<16x8xf32> -> vector<8x16xf32>
    %cst_83 = arith.constant dense<0.000000e+00> : vector<16x16xf32>
    %178 = tpu.matmul %175, %177, %cst_83 {dimension_numbers = #tpu.dot_dimension_numbers<[1], [0], [0], [1], [0, 0, 1, 1], [], []>} : vector<16x8xf32>, vector<8x16xf32>, vector<16x16xf32> -> vector<16x16xf32>
    %179 = vector.extract_strided_slice %170 {offsets = [0, 16], sizes = [16, 8], strides = [1, 1]} : vector<16x96xf32> to vector<16x8xf32>
    %180 = vector.extract_strided_slice %170 {offsets = [0, 48], sizes = [16, 8], strides = [1, 1]} : vector<16x96xf32> to vector<16x8xf32>
    %181 = tpu.transpose %180, [1, 0] : vector<16x8xf32> -> vector<8x16xf32>
    %cst_84 = arith.constant dense<0.000000e+00> : vector<16x16xf32>
    %182 = tpu.matmul %179, %181, %cst_84 {dimension_numbers = #tpu.dot_dimension_numbers<[1], [0], [0], [1], [0, 0, 1, 1], [], []>} : vector<16x8xf32>, vector<8x16xf32>, vector<16x16xf32> -> vector<16x16xf32>
    %183 = vector.extract_strided_slice %170 {offsets = [0, 24], sizes = [16, 8], strides = [1, 1]} : vector<16x96xf32> to vector<16x8xf32>
    %184 = vector.extract_strided_slice %170 {offsets = [0, 56], sizes = [16, 8], strides = [1, 1]} : vector<16x96xf32> to vector<16x8xf32>
    %185 = tpu.transpose %184, [1, 0] : vector<16x8xf32> -> vector<8x16xf32>
    %cst_85 = arith.constant dense<0.000000e+00> : vector<16x16xf32>
    %186 = tpu.matmul %183, %185, %cst_85 {dimension_numbers = #tpu.dot_dimension_numbers<[1], [0], [0], [1], [0, 0, 1, 1], [], []>} : vector<16x8xf32>, vector<8x16xf32>, vector<16x16xf32> -> vector<16x16xf32>
    %187 = tpu.concatenate %174, %178, %182, %186 in 0 : vector<16x16xf32>, vector<16x16xf32>, vector<16x16xf32>, vector<16x16xf32> -> vector<64x16xf32>
    %cst_86 = arith.constant 0.353553385 : f32
    %188 = vector.broadcast %cst_86 : f32 to vector<64x16xf32>
    %189 = arith.mulf %187, %188 : vector<64x16xf32>
    %190 = arith.addf %189, %25 : vector<64x16xf32>
    %cst_87 = arith.constant dense<0xFF800000> : vector<64xf32>
    %191 = vector.multi_reduction <maximumf>, %190, %cst_87 [1] : vector<64x16xf32> to vector<64xf32>
    %192 = vector.shape_cast %191 : vector<64xf32> to vector<64x1xf32>
    %193 = vector.broadcast %192 : vector<64x1xf32> to vector<64x16xf32>
    %194 = arith.subf %190, %193 : vector<64x16xf32>
    %195 = math.exp %194 : vector<64x16xf32>
    %cst_88 = arith.constant dense<0.000000e+00> : vector<64xf32>
    %196 = vector.multi_reduction <add>, %195, %cst_88 [1] : vector<64x16xf32> to vector<64xf32>
    %197 = vector.shape_cast %196 : vector<64xf32> to vector<64x1xf32>
    %198 = tpu.reciprocal %197 {approx = true} : vector<64x1xf32> -> vector<64x1xf32>
    %199 = vector.broadcast %198 : vector<64x1xf32> to vector<64x16xf32>
    %200 = arith.mulf %195, %199 : vector<64x16xf32>
    %201 = vector.extract_strided_slice %170 {offsets = [0, 64], sizes = [16, 8], strides = [1, 1]} : vector<16x96xf32> to vector<16x8xf32>
    %202 = vector.extract_strided_slice %200 {offsets = [0, 0], sizes = [16, 16], strides = [1, 1]} : vector<64x16xf32> to vector<16x16xf32>
    %cst_89 = arith.constant dense<0.000000e+00> : vector<16x8xf32>
    %203 = tpu.matmul %202, %201, %cst_89 {dimension_numbers = #tpu.dot_dimension_numbers<[1], [0], [0], [1], [0, 0, 1, 1], [], []>} : vector<16x16xf32>, vector<16x8xf32>, vector<16x8xf32> -> vector<16x8xf32>
    %204 = vector.extract_strided_slice %170 {offsets = [0, 72], sizes = [16, 8], strides = [1, 1]} : vector<16x96xf32> to vector<16x8xf32>
    %205 = vector.extract_strided_slice %200 {offsets = [16, 0], sizes = [16, 16], strides = [1, 1]} : vector<64x16xf32> to vector<16x16xf32>
    %cst_90 = arith.constant dense<0.000000e+00> : vector<16x8xf32>
    %206 = tpu.matmul %205, %204, %cst_90 {dimension_numbers = #tpu.dot_dimension_numbers<[1], [0], [0], [1], [0, 0, 1, 1], [], []>} : vector<16x16xf32>, vector<16x8xf32>, vector<16x8xf32> -> vector<16x8xf32>
    %207 = vector.extract_strided_slice %170 {offsets = [0, 80], sizes = [16, 8], strides = [1, 1]} : vector<16x96xf32> to vector<16x8xf32>
    %208 = vector.extract_strided_slice %200 {offsets = [32, 0], sizes = [16, 16], strides = [1, 1]} : vector<64x16xf32> to vector<16x16xf32>
    %cst_91 = arith.constant dense<0.000000e+00> : vector<16x8xf32>
    %209 = tpu.matmul %208, %207, %cst_91 {dimension_numbers = #tpu.dot_dimension_numbers<[1], [0], [0], [1], [0, 0, 1, 1], [], []>} : vector<16x16xf32>, vector<16x8xf32>, vector<16x8xf32> -> vector<16x8xf32>
    %210 = vector.extract_strided_slice %170 {offsets = [0, 88], sizes = [16, 8], strides = [1, 1]} : vector<16x96xf32> to vector<16x8xf32>
    %211 = vector.extract_strided_slice %200 {offsets = [48, 0], sizes = [16, 16], strides = [1, 1]} : vector<64x16xf32> to vector<16x16xf32>
    %cst_92 = arith.constant dense<0.000000e+00> : vector<16x8xf32>
    %212 = tpu.matmul %211, %210, %cst_92 {dimension_numbers = #tpu.dot_dimension_numbers<[1], [0], [0], [1], [0, 0, 1, 1], [], []>} : vector<16x16xf32>, vector<16x8xf32>, vector<16x8xf32> -> vector<16x8xf32>
    %213 = tpu.concatenate %203, %206, %209, %212 in 1 : vector<16x8xf32>, vector<16x8xf32>, vector<16x8xf32>, vector<16x8xf32> -> vector<16x32xf32>
    %c1_93 = arith.constant 1 : index
    %c0_94 = arith.constant 0 : index
    %c0_95 = arith.constant 0 : index
    %214 = vector.load %arg13[%c1_93, %c0_94, %c0_95] : memref<2x32x32xf32, #tpu.memory_space<vmem>>, vector<1x32x32xf32>
    %215 = vector.shape_cast %214 : vector<1x32x32xf32> to vector<32x32xf32>
    %cst_96 = arith.constant dense<0.000000e+00> : vector<16x32xf32>
    %216 = tpu.matmul %213, %215, %cst_96 {dimension_numbers = #tpu.dot_dimension_numbers<[1], [0], [0], [1], [0, 0, 1, 1], [], []>} : vector<16x32xf32>, vector<32x32xf32>, vector<16x32xf32> -> vector<16x32xf32>
    %c1_97 = arith.constant 1 : index
    %c0_98 = arith.constant 0 : index
    %c0_99 = arith.constant 0 : index
    %217 = vector.load %arg14[%c1_97, %c0_98, %c0_99] : memref<2x1x32xf32, #tpu.memory_space<vmem>>, vector<1x1x32xf32>
    %218 = vector.shape_cast %217 : vector<1x1x32xf32> to vector<1x32xf32>
    %219 = vector.broadcast %218 : vector<1x32xf32> to vector<16x32xf32>
    %220 = arith.addf %216, %219 : vector<16x32xf32>
    %221 = arith.addf %220, %163 : vector<16x32xf32>
    %c1_100 = arith.constant 1 : index
    %c0_101 = arith.constant 0 : index
    %c0_102 = arith.constant 0 : index
    %222 = vector.load %arg15[%c1_100, %c0_101, %c0_102] : memref<2x1x32xf32, #tpu.memory_space<vmem>>, vector<1x1x32xf32>
    %223 = vector.shape_cast %222 : vector<1x1x32xf32> to vector<1x32xf32>
    %c1_103 = arith.constant 1 : index
    %c0_104 = arith.constant 0 : index
    %c0_105 = arith.constant 0 : index
    %224 = vector.load %arg16[%c1_103, %c0_104, %c0_105] : memref<2x1x32xf32, #tpu.memory_space<vmem>>, vector<1x1x32xf32>
    %225 = vector.shape_cast %224 : vector<1x1x32xf32> to vector<1x32xf32>
    %cst_106 = arith.constant dense<0.000000e+00> : vector<16xf32>
    %226 = vector.multi_reduction <add>, %221, %cst_106 [1] : vector<16x32xf32> to vector<16xf32>
    %227 = vector.shape_cast %226 : vector<16xf32> to vector<16x1xf32>
    %cst_107 = arith.constant 3.200000e+01 : f32
    %228 = vector.broadcast %cst_107 : f32 to vector<16x1xf32>
    %229 = arith.divf %227, %228 : vector<16x1xf32>
    %230 = vector.broadcast %229 : vector<16x1xf32> to vector<16x32xf32>
    %231 = arith.subf %221, %230 : vector<16x32xf32>
    %232 = arith.mulf %231, %231 : vector<16x32xf32>
    %cst_108 = arith.constant dense<0.000000e+00> : vector<16xf32>
    %233 = vector.multi_reduction <add>, %232, %cst_108 [1] : vector<16x32xf32> to vector<16xf32>
    %234 = vector.shape_cast %233 : vector<16xf32> to vector<16x1xf32>
    %cst_109 = arith.constant 3.200000e+01 : f32
    %235 = vector.broadcast %cst_109 : f32 to vector<16x1xf32>
    %236 = arith.divf %234, %235 : vector<16x1xf32>
    %237 = vector.broadcast %229 : vector<16x1xf32> to vector<16x32xf32>
    %238 = arith.subf %221, %237 : vector<16x32xf32>
    %cst_110 = arith.constant 9.99999996E-13 : f32
    %239 = vector.broadcast %cst_110 : f32 to vector<16x1xf32>
    %240 = arith.addf %236, %239 : vector<16x1xf32>
    %241 = math.rsqrt %240 : vector<16x1xf32>
    %242 = vector.broadcast %241 : vector<16x1xf32> to vector<16x32xf32>
    %243 = arith.mulf %238, %242 : vector<16x32xf32>
    %244 = vector.broadcast %223 : vector<1x32xf32> to vector<16x32xf32>
    %245 = arith.mulf %243, %244 : vector<16x32xf32>
    %246 = vector.broadcast %225 : vector<1x32xf32> to vector<16x32xf32>
    %247 = arith.addf %245, %246 : vector<16x32xf32>
    %c1_111 = arith.constant 1 : index
    %c0_112 = arith.constant 0 : index
    %c0_113 = arith.constant 0 : index
    %248 = vector.load %arg17[%c1_111, %c0_112, %c0_113] : memref<2x32x128xf32, #tpu.memory_space<vmem>>, vector<1x32x128xf32>
    %249 = vector.shape_cast %248 : vector<1x32x128xf32> to vector<32x128xf32>
    %cst_114 = arith.constant dense<0.000000e+00> : vector<16x128xf32>
    %250 = tpu.matmul %247, %249, %cst_114 {dimension_numbers = #tpu.dot_dimension_numbers<[1], [0], [0], [1], [0, 0, 1, 1], [], []>} : vector<16x32xf32>, vector<32x128xf32>, vector<16x128xf32> -> vector<16x128xf32>
    %c1_115 = arith.constant 1 : index
    %c0_116 = arith.constant 0 : index
    %c0_117 = arith.constant 0 : index
    %251 = vector.load %arg18[%c1_115, %c0_116, %c0_117] : memref<2x1x128xf32, #tpu.memory_space<vmem>>, vector<1x1x128xf32>
    %252 = vector.shape_cast %251 : vector<1x1x128xf32> to vector<1x128xf32>
    %253 = vector.broadcast %252 : vector<1x128xf32> to vector<16x128xf32>
    %254 = arith.addf %250, %253 : vector<16x128xf32>
    %cst_118 = arith.constant 5.000000e-01 : f32
    %255 = vector.broadcast %cst_118 : f32 to vector<16x128xf32>
    %256 = arith.mulf %255, %254 : vector<16x128xf32>
    %cst_119 = arith.constant 4.471500e-02 : f32
    %257 = vector.broadcast %cst_119 : f32 to vector<16x128xf32>
    %258 = arith.mulf %257, %254 : vector<16x128xf32>
    %259 = arith.mulf %258, %254 : vector<16x128xf32>
    %260 = arith.mulf %259, %254 : vector<16x128xf32>
    %261 = arith.addf %254, %260 : vector<16x128xf32>
    %cst_120 = arith.constant 0.797884583 : f32
    %262 = vector.broadcast %cst_120 : f32 to vector<16x128xf32>
    %263 = arith.mulf %262, %261 : vector<16x128xf32>
    %264 = math.tanh %263 : vector<16x128xf32>
    %cst_121 = arith.constant 1.000000e+00 : f32
    %265 = vector.broadcast %cst_121 : f32 to vector<16x128xf32>
    %266 = arith.addf %265, %264 : vector<16x128xf32>
    %267 = arith.mulf %256, %266 : vector<16x128xf32>
    %c1_122 = arith.constant 1 : index
    %c0_123 = arith.constant 0 : index
    %c0_124 = arith.constant 0 : index
    %268 = vector.load %arg19[%c1_122, %c0_123, %c0_124] : memref<2x128x32xf32, #tpu.memory_space<vmem>>, vector<1x128x32xf32>
    %269 = vector.shape_cast %268 : vector<1x128x32xf32> to vector<128x32xf32>
    %cst_125 = arith.constant dense<0.000000e+00> : vector<16x32xf32>
    %270 = tpu.matmul %267, %269, %cst_125 {dimension_numbers = #tpu.dot_dimension_numbers<[1], [0], [0], [1], [0, 0, 1, 1], [], []>} : vector<16x128xf32>, vector<128x32xf32>, vector<16x32xf32> -> vector<16x32xf32>
    %c1_126 = arith.constant 1 : index
    %c0_127 = arith.constant 0 : index
    %c0_128 = arith.constant 0 : index
    %271 = vector.load %arg20[%c1_126, %c0_127, %c0_128] : memref<2x1x32xf32, #tpu.memory_space<vmem>>, vector<1x1x32xf32>
    %272 = vector.shape_cast %271 : vector<1x1x32xf32> to vector<1x32xf32>
    %273 = vector.broadcast %272 : vector<1x32xf32> to vector<16x32xf32>
    %274 = arith.addf %270, %273 : vector<16x32xf32>
    %275 = arith.addf %274, %247 : vector<16x32xf32>
    %c1_129 = arith.constant 1 : index
    %c0_130 = arith.constant 0 : index
    %c0_131 = arith.constant 0 : index
    %276 = vector.load %arg21[%c1_129, %c0_130, %c0_131] : memref<2x1x32xf32, #tpu.memory_space<vmem>>, vector<1x1x32xf32>
    %277 = vector.shape_cast %276 : vector<1x1x32xf32> to vector<1x32xf32>
    %c1_132 = arith.constant 1 : index
    %c0_133 = arith.constant 0 : index
    %c0_134 = arith.constant 0 : index
    %278 = vector.load %arg22[%c1_132, %c0_133, %c0_134] : memref<2x1x32xf32, #tpu.memory_space<vmem>>, vector<1x1x32xf32>
    %279 = vector.shape_cast %278 : vector<1x1x32xf32> to vector<1x32xf32>
    %cst_135 = arith.constant dense<0.000000e+00> : vector<16xf32>
    %280 = vector.multi_reduction <add>, %275, %cst_135 [1] : vector<16x32xf32> to vector<16xf32>
    %281 = vector.shape_cast %280 : vector<16xf32> to vector<16x1xf32>
    %cst_136 = arith.constant 3.200000e+01 : f32
    %282 = vector.broadcast %cst_136 : f32 to vector<16x1xf32>
    %283 = arith.divf %281, %282 : vector<16x1xf32>
    %284 = vector.broadcast %283 : vector<16x1xf32> to vector<16x32xf32>
    %285 = arith.subf %275, %284 : vector<16x32xf32>
    %286 = arith.mulf %285, %285 : vector<16x32xf32>
    %cst_137 = arith.constant dense<0.000000e+00> : vector<16xf32>
    %287 = vector.multi_reduction <add>, %286, %cst_137 [1] : vector<16x32xf32> to vector<16xf32>
    %288 = vector.shape_cast %287 : vector<16xf32> to vector<16x1xf32>
    %cst_138 = arith.constant 3.200000e+01 : f32
    %289 = vector.broadcast %cst_138 : f32 to vector<16x1xf32>
    %290 = arith.divf %288, %289 : vector<16x1xf32>
    %291 = vector.broadcast %283 : vector<16x1xf32> to vector<16x32xf32>
    %292 = arith.subf %275, %291 : vector<16x32xf32>
    %cst_139 = arith.constant 9.99999996E-13 : f32
    %293 = vector.broadcast %cst_139 : f32 to vector<16x1xf32>
    %294 = arith.addf %290, %293 : vector<16x1xf32>
    %295 = math.rsqrt %294 : vector<16x1xf32>
    %296 = vector.broadcast %295 : vector<16x1xf32> to vector<16x32xf32>
    %297 = arith.mulf %292, %296 : vector<16x32xf32>
    %298 = vector.broadcast %277 : vector<1x32xf32> to vector<16x32xf32>
    %299 = arith.mulf %297, %298 : vector<16x32xf32>
    %300 = vector.broadcast %279 : vector<1x32xf32> to vector<16x32xf32>
    %301 = arith.addf %299, %300 : vector<16x32xf32>
    %c0_140 = arith.constant 0 : index
    %c0_141 = arith.constant 0 : index
    %302 = vector.load %arg23[%c0_140, %c0_141] : memref<32x96xf32, #tpu.memory_space<vmem>>, vector<32x96xf32>
    %cst_142 = arith.constant dense<0.000000e+00> : vector<16x96xf32>
    %303 = tpu.matmul %301, %302, %cst_142 {dimension_numbers = #tpu.dot_dimension_numbers<[1], [0], [0], [1], [0, 0, 1, 1], [], []>} : vector<16x32xf32>, vector<32x96xf32>, vector<16x96xf32> -> vector<16x96xf32>
    %c0_143 = arith.constant 0 : index
    %c0_144 = arith.constant 0 : index
    %304 = vector.load %arg24[%c0_143, %c0_144] : memref<1x96xf32, #tpu.memory_space<vmem>>, vector<1x96xf32>
    %305 = vector.broadcast %304 : vector<1x96xf32> to vector<16x96xf32>
    %306 = arith.addf %303, %305 : vector<16x96xf32>
    %c0_145 = arith.constant 0 : index
    %c0_146 = arith.constant 0 : index
    %307 = vector.load %arg25[%c0_145, %c0_146] : memref<32x96xf32, #tpu.memory_space<vmem>>, vector<32x96xf32>
    %c0_147 = arith.constant 0 : index
    %c0_148 = arith.constant 0 : index
    %308 = vector.load %arg26[%c0_147, %c0_148] : memref<1x96xf32, #tpu.memory_space<vmem>>, vector<1x96xf32>
    %309 = tpu.iota {dimensions = array<i32: 1>} : vector<1x96xi32>
    %c32_i32 = arith.constant 32 : i32
    %c0_i32 = arith.constant 0 : i32
    %310 = arith.cmpi eq, %c32_i32, %c0_i32 : i32
    %c1_i32 = arith.constant 1 : i32
    %311 = arith.select %310, %c1_i32, %c32_i32 : i32
    %312 = vector.broadcast %311 : i32 to vector<1x96xi32>
    %313 = arith.remsi %309, %312 : vector<1x96xi32>
    %c0_i32_149 = arith.constant 0 : i32
    %314 = vector.broadcast %c0_i32_149 : i32 to vector<1x96xi32>
    %315 = arith.cmpi ne, %313, %314 : vector<1x96xi32>
    %c0_i32_150 = arith.constant 0 : i32
    %316 = vector.broadcast %c0_i32_150 : i32 to vector<1x96xi32>
    %317 = arith.cmpi slt, %313, %316 : vector<1x96xi32>
    %c0_i32_151 = arith.constant 0 : i32
    %318 = arith.cmpi slt, %311, %c0_i32_151 : i32
    %319 = vector.broadcast %318 : i1 to vector<1x96xi1>
    %320 = vector.broadcast %319 : vector<1x96xi1> to vector<1x96xi1>
    %321 = arith.xori %317, %320 : vector<1x96xi1>
    %322 = arith.andi %321, %315 : vector<1x96xi1>
    %323 = vector.broadcast %311 : i32 to vector<1x96xi32>
    %324 = arith.addi %313, %323 : vector<1x96xi32>
    %325 = arith.select %322, %324, %313 : vector<1x96xi1>, vector<1x96xi32>
    %c16_i32 = arith.constant 16 : i32
    %326 = vector.broadcast %c16_i32 : i32 to vector<1x96xi32>
    %327 = arith.cmpi slt, %325, %326 : vector<1x96xi32>
    %cst_152 = arith.constant 0.000000e+00 : f32
    %328 = vector.broadcast %cst_152 : f32 to vector<2x32xf32>
    %cst_153 = arith.constant dense<0.000000e+00> : vector<2x96xf32>
    %329 = tpu.matmul %328, %307, %cst_153 {dimension_numbers = #tpu.dot_dimension_numbers<[1], [0], [0], [1], [0, 0, 1, 1], [], []>} : vector<2x32xf32>, vector<32x96xf32>, vector<2x96xf32> -> vector<2x96xf32>
    %330 = vector.broadcast %308 : vector<1x96xf32> to vector<2x96xf32>
    %331 = arith.addf %329, %330 : vector<2x96xf32>
    %332 = vector.extract_strided_slice %306 {offsets = [0, 0], sizes = [2, 96], strides = [1, 1]} : vector<16x96xf32> to vector<2x96xf32>
    %333 = vector.extract_strided_slice %306 {offsets = [14, 0], sizes = [2, 96], strides = [1, 1]} : vector<16x96xf32> to vector<2x96xf32>
    %334 = vector.shape_cast %327 : vector<1x96xi1> to vector<1x96xi1>
    %335 = vector.broadcast %334 : vector<1x96xi1> to vector<2x96xi1>
    %336 = arith.select %335, %332, %333 : vector<2x96xi1>, vector<2x96xf32>
    %337 = vector.extract_strided_slice %336 {offsets = [0, 0], sizes = [2, 64], strides = [1, 1]} : vector<2x96xf32> to vector<2x64xf32>
    %338 = vector.extract_strided_slice %331 {offsets = [0, 0], sizes = [2, 64], strides = [1, 1]} : vector<2x96xf32> to vector<2x64xf32>
    %339 = arith.addf %337, %338 : vector<2x64xf32>
    %340 = arith.negf %339 : vector<2x64xf32>
    %341 = math.exp %340 : vector<2x64xf32>
    %cst_154 = arith.constant 1.000000e+00 : f32
    %342 = vector.broadcast %cst_154 : f32 to vector<2x64xf32>
    %343 = arith.addf %342, %341 : vector<2x64xf32>
    %344 = arith.divf %342, %343 : vector<2x64xf32>
    %345 = vector.extract_strided_slice %344 {offsets = [0, 0], sizes = [2, 32], strides = [1, 1]} : vector<2x64xf32> to vector<2x32xf32>
    %346 = vector.extract_strided_slice %344 {offsets = [0, 32], sizes = [2, 32], strides = [1, 1]} : vector<2x64xf32> to vector<2x32xf32>
    %347 = vector.extract_strided_slice %336 {offsets = [0, 64], sizes = [2, 32], strides = [1, 1]} : vector<2x96xf32> to vector<2x32xf32>
    %348 = vector.extract_strided_slice %331 {offsets = [0, 64], sizes = [2, 32], strides = [1, 1]} : vector<2x96xf32> to vector<2x32xf32>
    %349 = arith.mulf %345, %348 : vector<2x32xf32>
    %350 = arith.addf %347, %349 : vector<2x32xf32>
    %351 = math.tanh %350 : vector<2x32xf32>
    %cst_155 = arith.constant 1.000000e+00 : f32
    %352 = vector.broadcast %cst_155 : f32 to vector<2x32xf32>
    %353 = arith.subf %352, %346 : vector<2x32xf32>
    %354 = arith.mulf %353, %351 : vector<2x32xf32>
    %355 = arith.mulf %346, %328 : vector<2x32xf32>
    %356 = arith.addf %354, %355 : vector<2x32xf32>
    %357 = vector.extract_strided_slice %356 {offsets = [0, 0], sizes = [2, 16], strides = [1, 1]} : vector<2x32xf32> to vector<2x16xf32>
    %358 = vector.extract_strided_slice %356 {offsets = [0, 16], sizes = [2, 16], strides = [1, 1]} : vector<2x32xf32> to vector<2x16xf32>
    %cst_156 = arith.constant dense<0.000000e+00> : vector<2x96xf32>
    %359 = tpu.matmul %356, %307, %cst_156 {dimension_numbers = #tpu.dot_dimension_numbers<[1], [0], [0], [1], [0, 0, 1, 1], [], []>} : vector<2x32xf32>, vector<32x96xf32>, vector<2x96xf32> -> vector<2x96xf32>
    %360 = vector.broadcast %308 : vector<1x96xf32> to vector<2x96xf32>
    %361 = arith.addf %359, %360 : vector<2x96xf32>
    %362 = vector.extract_strided_slice %306 {offsets = [2, 0], sizes = [2, 96], strides = [1, 1]} : vector<16x96xf32> to vector<2x96xf32>
    %363 = vector.extract_strided_slice %306 {offsets = [12, 0], sizes = [2, 96], strides = [1, 1]} : vector<16x96xf32> to vector<2x96xf32>
    %364 = vector.shape_cast %327 : vector<1x96xi1> to vector<1x96xi1>
    %365 = vector.broadcast %364 : vector<1x96xi1> to vector<2x96xi1>
    %366 = arith.select %365, %362, %363 : vector<2x96xi1>, vector<2x96xf32>
    %367 = vector.extract_strided_slice %366 {offsets = [0, 0], sizes = [2, 64], strides = [1, 1]} : vector<2x96xf32> to vector<2x64xf32>
    %368 = vector.extract_strided_slice %361 {offsets = [0, 0], sizes = [2, 64], strides = [1, 1]} : vector<2x96xf32> to vector<2x64xf32>
    %369 = arith.addf %367, %368 : vector<2x64xf32>
    %370 = arith.negf %369 : vector<2x64xf32>
    %371 = math.exp %370 : vector<2x64xf32>
    %cst_157 = arith.constant 1.000000e+00 : f32
    %372 = vector.broadcast %cst_157 : f32 to vector<2x64xf32>
    %373 = arith.addf %372, %371 : vector<2x64xf32>
    %374 = arith.divf %372, %373 : vector<2x64xf32>
    %375 = vector.extract_strided_slice %374 {offsets = [0, 0], sizes = [2, 32], strides = [1, 1]} : vector<2x64xf32> to vector<2x32xf32>
    %376 = vector.extract_strided_slice %374 {offsets = [0, 32], sizes = [2, 32], strides = [1, 1]} : vector<2x64xf32> to vector<2x32xf32>
    %377 = vector.extract_strided_slice %366 {offsets = [0, 64], sizes = [2, 32], strides = [1, 1]} : vector<2x96xf32> to vector<2x32xf32>
    %378 = vector.extract_strided_slice %361 {offsets = [0, 64], sizes = [2, 32], strides = [1, 1]} : vector<2x96xf32> to vector<2x32xf32>
    %379 = arith.mulf %375, %378 : vector<2x32xf32>
    %380 = arith.addf %377, %379 : vector<2x32xf32>
    %381 = math.tanh %380 : vector<2x32xf32>
    %cst_158 = arith.constant 1.000000e+00 : f32
    %382 = vector.broadcast %cst_158 : f32 to vector<2x32xf32>
    %383 = arith.subf %382, %376 : vector<2x32xf32>
    %384 = arith.mulf %383, %381 : vector<2x32xf32>
    %385 = arith.mulf %376, %356 : vector<2x32xf32>
    %386 = arith.addf %384, %385 : vector<2x32xf32>
    %387 = vector.extract_strided_slice %386 {offsets = [0, 0], sizes = [2, 16], strides = [1, 1]} : vector<2x32xf32> to vector<2x16xf32>
    %388 = vector.extract_strided_slice %386 {offsets = [0, 16], sizes = [2, 16], strides = [1, 1]} : vector<2x32xf32> to vector<2x16xf32>
    %cst_159 = arith.constant dense<0.000000e+00> : vector<2x96xf32>
    %389 = tpu.matmul %386, %307, %cst_159 {dimension_numbers = #tpu.dot_dimension_numbers<[1], [0], [0], [1], [0, 0, 1, 1], [], []>} : vector<2x32xf32>, vector<32x96xf32>, vector<2x96xf32> -> vector<2x96xf32>
    %390 = vector.broadcast %308 : vector<1x96xf32> to vector<2x96xf32>
    %391 = arith.addf %389, %390 : vector<2x96xf32>
    %392 = vector.extract_strided_slice %306 {offsets = [4, 0], sizes = [2, 96], strides = [1, 1]} : vector<16x96xf32> to vector<2x96xf32>
    %393 = vector.extract_strided_slice %306 {offsets = [10, 0], sizes = [2, 96], strides = [1, 1]} : vector<16x96xf32> to vector<2x96xf32>
    %394 = vector.shape_cast %327 : vector<1x96xi1> to vector<1x96xi1>
    %395 = vector.broadcast %394 : vector<1x96xi1> to vector<2x96xi1>
    %396 = arith.select %395, %392, %393 : vector<2x96xi1>, vector<2x96xf32>
    %397 = vector.extract_strided_slice %396 {offsets = [0, 0], sizes = [2, 64], strides = [1, 1]} : vector<2x96xf32> to vector<2x64xf32>
    %398 = vector.extract_strided_slice %391 {offsets = [0, 0], sizes = [2, 64], strides = [1, 1]} : vector<2x96xf32> to vector<2x64xf32>
    %399 = arith.addf %397, %398 : vector<2x64xf32>
    %400 = arith.negf %399 : vector<2x64xf32>
    %401 = math.exp %400 : vector<2x64xf32>
    %cst_160 = arith.constant 1.000000e+00 : f32
    %402 = vector.broadcast %cst_160 : f32 to vector<2x64xf32>
    %403 = arith.addf %402, %401 : vector<2x64xf32>
    %404 = arith.divf %402, %403 : vector<2x64xf32>
    %405 = vector.extract_strided_slice %404 {offsets = [0, 0], sizes = [2, 32], strides = [1, 1]} : vector<2x64xf32> to vector<2x32xf32>
    %406 = vector.extract_strided_slice %404 {offsets = [0, 32], sizes = [2, 32], strides = [1, 1]} : vector<2x64xf32> to vector<2x32xf32>
    %407 = vector.extract_strided_slice %396 {offsets = [0, 64], sizes = [2, 32], strides = [1, 1]} : vector<2x96xf32> to vector<2x32xf32>
    %408 = vector.extract_strided_slice %391 {offsets = [0, 64], sizes = [2, 32], strides = [1, 1]} : vector<2x96xf32> to vector<2x32xf32>
    %409 = arith.mulf %405, %408 : vector<2x32xf32>
    %410 = arith.addf %407, %409 : vector<2x32xf32>
    %411 = math.tanh %410 : vector<2x32xf32>
    %cst_161 = arith.constant 1.000000e+00 : f32
    %412 = vector.broadcast %cst_161 : f32 to vector<2x32xf32>
    %413 = arith.subf %412, %406 : vector<2x32xf32>
    %414 = arith.mulf %413, %411 : vector<2x32xf32>
    %415 = arith.mulf %406, %386 : vector<2x32xf32>
    %416 = arith.addf %414, %415 : vector<2x32xf32>
    %417 = vector.extract_strided_slice %416 {offsets = [0, 0], sizes = [2, 16], strides = [1, 1]} : vector<2x32xf32> to vector<2x16xf32>
    %418 = vector.extract_strided_slice %416 {offsets = [0, 16], sizes = [2, 16], strides = [1, 1]} : vector<2x32xf32> to vector<2x16xf32>
    %cst_162 = arith.constant dense<0.000000e+00> : vector<2x96xf32>
    %419 = tpu.matmul %416, %307, %cst_162 {dimension_numbers = #tpu.dot_dimension_numbers<[1], [0], [0], [1], [0, 0, 1, 1], [], []>} : vector<2x32xf32>, vector<32x96xf32>, vector<2x96xf32> -> vector<2x96xf32>
    %420 = vector.broadcast %308 : vector<1x96xf32> to vector<2x96xf32>
    %421 = arith.addf %419, %420 : vector<2x96xf32>
    %422 = vector.extract_strided_slice %306 {offsets = [6, 0], sizes = [2, 96], strides = [1, 1]} : vector<16x96xf32> to vector<2x96xf32>
    %423 = vector.extract_strided_slice %306 {offsets = [8, 0], sizes = [2, 96], strides = [1, 1]} : vector<16x96xf32> to vector<2x96xf32>
    %424 = vector.shape_cast %327 : vector<1x96xi1> to vector<1x96xi1>
    %425 = vector.broadcast %424 : vector<1x96xi1> to vector<2x96xi1>
    %426 = arith.select %425, %422, %423 : vector<2x96xi1>, vector<2x96xf32>
    %427 = vector.extract_strided_slice %426 {offsets = [0, 0], sizes = [2, 64], strides = [1, 1]} : vector<2x96xf32> to vector<2x64xf32>
    %428 = vector.extract_strided_slice %421 {offsets = [0, 0], sizes = [2, 64], strides = [1, 1]} : vector<2x96xf32> to vector<2x64xf32>
    %429 = arith.addf %427, %428 : vector<2x64xf32>
    %430 = arith.negf %429 : vector<2x64xf32>
    %431 = math.exp %430 : vector<2x64xf32>
    %cst_163 = arith.constant 1.000000e+00 : f32
    %432 = vector.broadcast %cst_163 : f32 to vector<2x64xf32>
    %433 = arith.addf %432, %431 : vector<2x64xf32>
    %434 = arith.divf %432, %433 : vector<2x64xf32>
    %435 = vector.extract_strided_slice %434 {offsets = [0, 0], sizes = [2, 32], strides = [1, 1]} : vector<2x64xf32> to vector<2x32xf32>
    %436 = vector.extract_strided_slice %434 {offsets = [0, 32], sizes = [2, 32], strides = [1, 1]} : vector<2x64xf32> to vector<2x32xf32>
    %437 = vector.extract_strided_slice %426 {offsets = [0, 64], sizes = [2, 32], strides = [1, 1]} : vector<2x96xf32> to vector<2x32xf32>
    %438 = vector.extract_strided_slice %421 {offsets = [0, 64], sizes = [2, 32], strides = [1, 1]} : vector<2x96xf32> to vector<2x32xf32>
    %439 = arith.mulf %435, %438 : vector<2x32xf32>
    %440 = arith.addf %437, %439 : vector<2x32xf32>
    %441 = math.tanh %440 : vector<2x32xf32>
    %cst_164 = arith.constant 1.000000e+00 : f32
    %442 = vector.broadcast %cst_164 : f32 to vector<2x32xf32>
    %443 = arith.subf %442, %436 : vector<2x32xf32>
    %444 = arith.mulf %443, %441 : vector<2x32xf32>
    %445 = arith.mulf %436, %416 : vector<2x32xf32>
    %446 = arith.addf %444, %445 : vector<2x32xf32>
    %447 = vector.extract_strided_slice %446 {offsets = [0, 0], sizes = [2, 16], strides = [1, 1]} : vector<2x32xf32> to vector<2x16xf32>
    %448 = vector.extract_strided_slice %446 {offsets = [0, 16], sizes = [2, 16], strides = [1, 1]} : vector<2x32xf32> to vector<2x16xf32>
    %cst_165 = arith.constant dense<0.000000e+00> : vector<2x96xf32>
    %449 = tpu.matmul %446, %307, %cst_165 {dimension_numbers = #tpu.dot_dimension_numbers<[1], [0], [0], [1], [0, 0, 1, 1], [], []>} : vector<2x32xf32>, vector<32x96xf32>, vector<2x96xf32> -> vector<2x96xf32>
    %450 = vector.broadcast %308 : vector<1x96xf32> to vector<2x96xf32>
    %451 = arith.addf %449, %450 : vector<2x96xf32>
    %452 = vector.extract_strided_slice %306 {offsets = [8, 0], sizes = [2, 96], strides = [1, 1]} : vector<16x96xf32> to vector<2x96xf32>
    %453 = vector.extract_strided_slice %306 {offsets = [6, 0], sizes = [2, 96], strides = [1, 1]} : vector<16x96xf32> to vector<2x96xf32>
    %454 = vector.shape_cast %327 : vector<1x96xi1> to vector<1x96xi1>
    %455 = vector.broadcast %454 : vector<1x96xi1> to vector<2x96xi1>
    %456 = arith.select %455, %452, %453 : vector<2x96xi1>, vector<2x96xf32>
    %457 = vector.extract_strided_slice %456 {offsets = [0, 0], sizes = [2, 64], strides = [1, 1]} : vector<2x96xf32> to vector<2x64xf32>
    %458 = vector.extract_strided_slice %451 {offsets = [0, 0], sizes = [2, 64], strides = [1, 1]} : vector<2x96xf32> to vector<2x64xf32>
    %459 = arith.addf %457, %458 : vector<2x64xf32>
    %460 = arith.negf %459 : vector<2x64xf32>
    %461 = math.exp %460 : vector<2x64xf32>
    %cst_166 = arith.constant 1.000000e+00 : f32
    %462 = vector.broadcast %cst_166 : f32 to vector<2x64xf32>
    %463 = arith.addf %462, %461 : vector<2x64xf32>
    %464 = arith.divf %462, %463 : vector<2x64xf32>
    %465 = vector.extract_strided_slice %464 {offsets = [0, 0], sizes = [2, 32], strides = [1, 1]} : vector<2x64xf32> to vector<2x32xf32>
    %466 = vector.extract_strided_slice %464 {offsets = [0, 32], sizes = [2, 32], strides = [1, 1]} : vector<2x64xf32> to vector<2x32xf32>
    %467 = vector.extract_strided_slice %456 {offsets = [0, 64], sizes = [2, 32], strides = [1, 1]} : vector<2x96xf32> to vector<2x32xf32>
    %468 = vector.extract_strided_slice %451 {offsets = [0, 64], sizes = [2, 32], strides = [1, 1]} : vector<2x96xf32> to vector<2x32xf32>
    %469 = arith.mulf %465, %468 : vector<2x32xf32>
    %470 = arith.addf %467, %469 : vector<2x32xf32>
    %471 = math.tanh %470 : vector<2x32xf32>
    %cst_167 = arith.constant 1.000000e+00 : f32
    %472 = vector.broadcast %cst_167 : f32 to vector<2x32xf32>
    %473 = arith.subf %472, %466 : vector<2x32xf32>
    %474 = arith.mulf %473, %471 : vector<2x32xf32>
    %475 = arith.mulf %466, %446 : vector<2x32xf32>
    %476 = arith.addf %474, %475 : vector<2x32xf32>
    %477 = vector.extract_strided_slice %476 {offsets = [0, 0], sizes = [2, 16], strides = [1, 1]} : vector<2x32xf32> to vector<2x16xf32>
    %478 = vector.extract_strided_slice %476 {offsets = [0, 16], sizes = [2, 16], strides = [1, 1]} : vector<2x32xf32> to vector<2x16xf32>
    %cst_168 = arith.constant dense<0.000000e+00> : vector<2x96xf32>
    %479 = tpu.matmul %476, %307, %cst_168 {dimension_numbers = #tpu.dot_dimension_numbers<[1], [0], [0], [1], [0, 0, 1, 1], [], []>} : vector<2x32xf32>, vector<32x96xf32>, vector<2x96xf32> -> vector<2x96xf32>
    %480 = vector.broadcast %308 : vector<1x96xf32> to vector<2x96xf32>
    %481 = arith.addf %479, %480 : vector<2x96xf32>
    %482 = vector.extract_strided_slice %306 {offsets = [10, 0], sizes = [2, 96], strides = [1, 1]} : vector<16x96xf32> to vector<2x96xf32>
    %483 = vector.extract_strided_slice %306 {offsets = [4, 0], sizes = [2, 96], strides = [1, 1]} : vector<16x96xf32> to vector<2x96xf32>
    %484 = vector.shape_cast %327 : vector<1x96xi1> to vector<1x96xi1>
    %485 = vector.broadcast %484 : vector<1x96xi1> to vector<2x96xi1>
    %486 = arith.select %485, %482, %483 : vector<2x96xi1>, vector<2x96xf32>
    %487 = vector.extract_strided_slice %486 {offsets = [0, 0], sizes = [2, 64], strides = [1, 1]} : vector<2x96xf32> to vector<2x64xf32>
    %488 = vector.extract_strided_slice %481 {offsets = [0, 0], sizes = [2, 64], strides = [1, 1]} : vector<2x96xf32> to vector<2x64xf32>
    %489 = arith.addf %487, %488 : vector<2x64xf32>
    %490 = arith.negf %489 : vector<2x64xf32>
    %491 = math.exp %490 : vector<2x64xf32>
    %cst_169 = arith.constant 1.000000e+00 : f32
    %492 = vector.broadcast %cst_169 : f32 to vector<2x64xf32>
    %493 = arith.addf %492, %491 : vector<2x64xf32>
    %494 = arith.divf %492, %493 : vector<2x64xf32>
    %495 = vector.extract_strided_slice %494 {offsets = [0, 0], sizes = [2, 32], strides = [1, 1]} : vector<2x64xf32> to vector<2x32xf32>
    %496 = vector.extract_strided_slice %494 {offsets = [0, 32], sizes = [2, 32], strides = [1, 1]} : vector<2x64xf32> to vector<2x32xf32>
    %497 = vector.extract_strided_slice %486 {offsets = [0, 64], sizes = [2, 32], strides = [1, 1]} : vector<2x96xf32> to vector<2x32xf32>
    %498 = vector.extract_strided_slice %481 {offsets = [0, 64], sizes = [2, 32], strides = [1, 1]} : vector<2x96xf32> to vector<2x32xf32>
    %499 = arith.mulf %495, %498 : vector<2x32xf32>
    %500 = arith.addf %497, %499 : vector<2x32xf32>
    %501 = math.tanh %500 : vector<2x32xf32>
    %cst_170 = arith.constant 1.000000e+00 : f32
    %502 = vector.broadcast %cst_170 : f32 to vector<2x32xf32>
    %503 = arith.subf %502, %496 : vector<2x32xf32>
    %504 = arith.mulf %503, %501 : vector<2x32xf32>
    %505 = arith.mulf %496, %476 : vector<2x32xf32>
    %506 = arith.addf %504, %505 : vector<2x32xf32>
    %507 = vector.extract_strided_slice %506 {offsets = [0, 0], sizes = [2, 16], strides = [1, 1]} : vector<2x32xf32> to vector<2x16xf32>
    %508 = vector.extract_strided_slice %506 {offsets = [0, 16], sizes = [2, 16], strides = [1, 1]} : vector<2x32xf32> to vector<2x16xf32>
    %cst_171 = arith.constant dense<0.000000e+00> : vector<2x96xf32>
    %509 = tpu.matmul %506, %307, %cst_171 {dimension_numbers = #tpu.dot_dimension_numbers<[1], [0], [0], [1], [0, 0, 1, 1], [], []>} : vector<2x32xf32>, vector<32x96xf32>, vector<2x96xf32> -> vector<2x96xf32>
    %510 = vector.broadcast %308 : vector<1x96xf32> to vector<2x96xf32>
    %511 = arith.addf %509, %510 : vector<2x96xf32>
    %512 = vector.extract_strided_slice %306 {offsets = [12, 0], sizes = [2, 96], strides = [1, 1]} : vector<16x96xf32> to vector<2x96xf32>
    %513 = vector.extract_strided_slice %306 {offsets = [2, 0], sizes = [2, 96], strides = [1, 1]} : vector<16x96xf32> to vector<2x96xf32>
    %514 = vector.shape_cast %327 : vector<1x96xi1> to vector<1x96xi1>
    %515 = vector.broadcast %514 : vector<1x96xi1> to vector<2x96xi1>
    %516 = arith.select %515, %512, %513 : vector<2x96xi1>, vector<2x96xf32>
    %517 = vector.extract_strided_slice %516 {offsets = [0, 0], sizes = [2, 64], strides = [1, 1]} : vector<2x96xf32> to vector<2x64xf32>
    %518 = vector.extract_strided_slice %511 {offsets = [0, 0], sizes = [2, 64], strides = [1, 1]} : vector<2x96xf32> to vector<2x64xf32>
    %519 = arith.addf %517, %518 : vector<2x64xf32>
    %520 = arith.negf %519 : vector<2x64xf32>
    %521 = math.exp %520 : vector<2x64xf32>
    %cst_172 = arith.constant 1.000000e+00 : f32
    %522 = vector.broadcast %cst_172 : f32 to vector<2x64xf32>
    %523 = arith.addf %522, %521 : vector<2x64xf32>
    %524 = arith.divf %522, %523 : vector<2x64xf32>
    %525 = vector.extract_strided_slice %524 {offsets = [0, 0], sizes = [2, 32], strides = [1, 1]} : vector<2x64xf32> to vector<2x32xf32>
    %526 = vector.extract_strided_slice %524 {offsets = [0, 32], sizes = [2, 32], strides = [1, 1]} : vector<2x64xf32> to vector<2x32xf32>
    %527 = vector.extract_strided_slice %516 {offsets = [0, 64], sizes = [2, 32], strides = [1, 1]} : vector<2x96xf32> to vector<2x32xf32>
    %528 = vector.extract_strided_slice %511 {offsets = [0, 64], sizes = [2, 32], strides = [1, 1]} : vector<2x96xf32> to vector<2x32xf32>
    %529 = arith.mulf %525, %528 : vector<2x32xf32>
    %530 = arith.addf %527, %529 : vector<2x32xf32>
    %531 = math.tanh %530 : vector<2x32xf32>
    %cst_173 = arith.constant 1.000000e+00 : f32
    %532 = vector.broadcast %cst_173 : f32 to vector<2x32xf32>
    %533 = arith.subf %532, %526 : vector<2x32xf32>
    %534 = arith.mulf %533, %531 : vector<2x32xf32>
    %535 = arith.mulf %526, %506 : vector<2x32xf32>
    %536 = arith.addf %534, %535 : vector<2x32xf32>
    %537 = vector.extract_strided_slice %536 {offsets = [0, 0], sizes = [2, 16], strides = [1, 1]} : vector<2x32xf32> to vector<2x16xf32>
    %538 = vector.extract_strided_slice %536 {offsets = [0, 16], sizes = [2, 16], strides = [1, 1]} : vector<2x32xf32> to vector<2x16xf32>
    %cst_174 = arith.constant dense<0.000000e+00> : vector<2x96xf32>
    %539 = tpu.matmul %536, %307, %cst_174 {dimension_numbers = #tpu.dot_dimension_numbers<[1], [0], [0], [1], [0, 0, 1, 1], [], []>} : vector<2x32xf32>, vector<32x96xf32>, vector<2x96xf32> -> vector<2x96xf32>
    %540 = vector.broadcast %308 : vector<1x96xf32> to vector<2x96xf32>
    %541 = arith.addf %539, %540 : vector<2x96xf32>
    %542 = vector.extract_strided_slice %306 {offsets = [14, 0], sizes = [2, 96], strides = [1, 1]} : vector<16x96xf32> to vector<2x96xf32>
    %543 = vector.extract_strided_slice %306 {offsets = [0, 0], sizes = [2, 96], strides = [1, 1]} : vector<16x96xf32> to vector<2x96xf32>
    %544 = vector.shape_cast %327 : vector<1x96xi1> to vector<1x96xi1>
    %545 = vector.broadcast %544 : vector<1x96xi1> to vector<2x96xi1>
    %546 = arith.select %545, %542, %543 : vector<2x96xi1>, vector<2x96xf32>
    %547 = vector.extract_strided_slice %546 {offsets = [0, 0], sizes = [2, 64], strides = [1, 1]} : vector<2x96xf32> to vector<2x64xf32>
    %548 = vector.extract_strided_slice %541 {offsets = [0, 0], sizes = [2, 64], strides = [1, 1]} : vector<2x96xf32> to vector<2x64xf32>
    %549 = arith.addf %547, %548 : vector<2x64xf32>
    %550 = arith.negf %549 : vector<2x64xf32>
    %551 = math.exp %550 : vector<2x64xf32>
    %cst_175 = arith.constant 1.000000e+00 : f32
    %552 = vector.broadcast %cst_175 : f32 to vector<2x64xf32>
    %553 = arith.addf %552, %551 : vector<2x64xf32>
    %554 = arith.divf %552, %553 : vector<2x64xf32>
    %555 = vector.extract_strided_slice %554 {offsets = [0, 0], sizes = [2, 32], strides = [1, 1]} : vector<2x64xf32> to vector<2x32xf32>
    %556 = vector.extract_strided_slice %554 {offsets = [0, 32], sizes = [2, 32], strides = [1, 1]} : vector<2x64xf32> to vector<2x32xf32>
    %557 = vector.extract_strided_slice %546 {offsets = [0, 64], sizes = [2, 32], strides = [1, 1]} : vector<2x96xf32> to vector<2x32xf32>
    %558 = vector.extract_strided_slice %541 {offsets = [0, 64], sizes = [2, 32], strides = [1, 1]} : vector<2x96xf32> to vector<2x32xf32>
    %559 = arith.mulf %555, %558 : vector<2x32xf32>
    %560 = arith.addf %557, %559 : vector<2x32xf32>
    %561 = math.tanh %560 : vector<2x32xf32>
    %cst_176 = arith.constant 1.000000e+00 : f32
    %562 = vector.broadcast %cst_176 : f32 to vector<2x32xf32>
    %563 = arith.subf %562, %556 : vector<2x32xf32>
    %564 = arith.mulf %563, %561 : vector<2x32xf32>
    %565 = arith.mulf %556, %536 : vector<2x32xf32>
    %566 = arith.addf %564, %565 : vector<2x32xf32>
    %567 = vector.extract_strided_slice %566 {offsets = [0, 0], sizes = [2, 16], strides = [1, 1]} : vector<2x32xf32> to vector<2x16xf32>
    %568 = vector.extract_strided_slice %566 {offsets = [0, 16], sizes = [2, 16], strides = [1, 1]} : vector<2x32xf32> to vector<2x16xf32>
    %569 = tpu.concatenate %357, %387, %417, %447, %477, %507, %537, %567 in 0 : vector<2x16xf32>, vector<2x16xf32>, vector<2x16xf32>, vector<2x16xf32>, vector<2x16xf32>, vector<2x16xf32>, vector<2x16xf32>, vector<2x16xf32> -> vector<16x16xf32>
    %570 = tpu.concatenate %568, %538, %508, %478, %448, %418, %388, %358 in 0 : vector<2x16xf32>, vector<2x16xf32>, vector<2x16xf32>, vector<2x16xf32>, vector<2x16xf32>, vector<2x16xf32>, vector<2x16xf32>, vector<2x16xf32> -> vector<16x16xf32>
    %c0_177 = arith.constant 0 : index
    %c0_178 = arith.constant 0 : index
    %571 = vector.load %arg27[%c0_177, %c0_178] : memref<16x8xf32, #tpu.memory_space<vmem>>, vector<16x8xf32>
    %cst_179 = arith.constant dense<0.000000e+00> : vector<16x8xf32>
    %572 = tpu.matmul %569, %571, %cst_179 {dimension_numbers = #tpu.dot_dimension_numbers<[1], [0], [0], [1], [0, 0, 1, 1], [], []>} : vector<16x16xf32>, vector<16x8xf32>, vector<16x8xf32> -> vector<16x8xf32>
    %c0_180 = arith.constant 0 : index
    %c0_181 = arith.constant 0 : index
    %573 = vector.load %arg28[%c0_180, %c0_181] : memref<16x8xf32, #tpu.memory_space<vmem>>, vector<16x8xf32>
    %cst_182 = arith.constant dense<0.000000e+00> : vector<16x8xf32>
    %574 = tpu.matmul %570, %573, %cst_182 {dimension_numbers = #tpu.dot_dimension_numbers<[1], [0], [0], [1], [0, 0, 1, 1], [], []>} : vector<16x16xf32>, vector<16x8xf32>, vector<16x8xf32> -> vector<16x8xf32>
    %575 = arith.addf %572, %574 : vector<16x8xf32>
    %c0_183 = arith.constant 0 : index
    %c0_184 = arith.constant 0 : index
    %576 = vector.load %arg29[%c0_183, %c0_184] : memref<1x8xf32, #tpu.memory_space<vmem>>, vector<1x8xf32>
    %577 = vector.broadcast %576 : vector<1x8xf32> to vector<16x8xf32>
    %578 = arith.addf %575, %577 : vector<16x8xf32>
    %cst_185 = arith.constant dense<0xFF800000> : vector<16xf32>
    %579 = vector.multi_reduction <maximumf>, %578, %cst_185 [1] : vector<16x8xf32> to vector<16xf32>
    %580 = vector.shape_cast %579 : vector<16xf32> to vector<16x1xf32>
    %581 = vector.broadcast %580 : vector<16x1xf32> to vector<16x8xf32>
    %582 = arith.subf %578, %581 : vector<16x8xf32>
    %583 = math.exp %582 : vector<16x8xf32>
    %cst_186 = arith.constant dense<0.000000e+00> : vector<16xf32>
    %584 = vector.multi_reduction <add>, %583, %cst_186 [1] : vector<16x8xf32> to vector<16xf32>
    %585 = vector.shape_cast %584 : vector<16xf32> to vector<16x1xf32>
    %586 = math.log %585 : vector<16x1xf32>
    %587 = arith.addf %580, %586 : vector<16x1xf32>
    %588 = vector.broadcast %587 : vector<16x1xf32> to vector<16x8xf32>
    %589 = arith.subf %578, %588 : vector<16x8xf32>
    %c0_187 = arith.constant 0 : index
    %c0_188 = arith.constant 0 : index
    %590 = vector.load %arg30[%c0_187, %c0_188] : memref<8x8xf32, #tpu.memory_space<vmem>>, vector<8x8xf32>
    %c0_189 = arith.constant 0 : index
    %c0_190 = arith.constant 0 : index
    %591 = vector.load %arg31[%c0_189, %c0_190] : memref<1x8xf32, #tpu.memory_space<vmem>>, vector<1x8xf32>
    %c0_191 = arith.constant 0 : index
    %c0_192 = arith.constant 0 : index
    %592 = vector.load %arg32[%c0_191, %c0_192] : memref<1x8xf32, #tpu.memory_space<vmem>>, vector<1x8xf32>
    %c0_193 = arith.constant 0 : index
    %c0_194 = arith.constant 0 : index
    %593 = vector.load %arg5[%c0_193, %c0_194] : memref<16x1xf32, #tpu.memory_space<vmem>>, vector<16x1xf32>
    %c0_195 = arith.constant 0 : index
    %c0_196 = arith.constant 0 : index
    %594 = vector.load %arg6[%c0_195, %c0_196] : memref<16x1xf32, #tpu.memory_space<vmem>>, vector<16x1xf32>
    %c0_197 = arith.constant 0 : index
    %c0_198 = arith.constant 0 : index
    %595 = vector.load %arg7[%c0_197, %c0_198] : memref<16x1xf32, #tpu.memory_space<vmem>>, vector<16x1xf32>
    %596 = tpu.iota {dimensions = array<i32: 1>} : vector<16x8xi32>
    %c0_199 = arith.constant 0 : index
    %c0_200 = arith.constant 0 : index
    %597 = vector.load %arg3[%c0_199, %c0_200] : memref<16x1xi32, #tpu.memory_space<vmem>>, vector<16x1xi32>
    %598 = vector.broadcast %597 : vector<16x1xi32> to vector<16x8xi32>
    %599 = arith.cmpi eq, %596, %598 : vector<16x8xi32>
    %600 = arith.extui %599 : vector<16x8xi1> to vector<16x8xi32>
    %601 = arith.sitofp %600 : vector<16x8xi32> to vector<16x8xf32>
    %c0_201 = arith.constant 0 : index
    %c0_202 = arith.constant 0 : index
    %602 = vector.load %arg4[%c0_201, %c0_202] : memref<16x1xi32, #tpu.memory_space<vmem>>, vector<16x1xi32>
    %603 = vector.broadcast %602 : vector<16x1xi32> to vector<16x8xi32>
    %604 = arith.cmpi eq, %596, %603 : vector<16x8xi32>
    %605 = arith.extui %604 : vector<16x8xi1> to vector<16x8xi32>
    %606 = arith.sitofp %605 : vector<16x8xi32> to vector<16x8xf32>
    %cst_203 = arith.constant dense<0.000000e+00> : vector<16x8xf32>
    %607 = tpu.matmul %606, %590, %cst_203 {dimension_numbers = #tpu.dot_dimension_numbers<[1], [0], [0], [1], [0, 0, 1, 1], [], []>} : vector<16x8xf32>, vector<8x8xf32>, vector<16x8xf32> -> vector<16x8xf32>
    %608 = vector.broadcast %593 : vector<16x1xf32> to vector<16x8xf32>
    %609 = arith.mulf %608, %589 : vector<16x8xf32>
    %610 = vector.broadcast %594 : vector<16x1xf32> to vector<16x8xf32>
    %611 = vector.broadcast %591 : vector<1x8xf32> to vector<16x8xf32>
    %612 = arith.mulf %610, %611 : vector<16x8xf32>
    %613 = arith.addf %609, %612 : vector<16x8xf32>
    %cst_204 = arith.constant 1.000000e+00 : f32
    %614 = vector.broadcast %cst_204 : f32 to vector<16x1xf32>
    %615 = arith.subf %614, %594 : vector<16x1xf32>
    %616 = arith.mulf %615, %593 : vector<16x1xf32>
    %617 = vector.broadcast %616 : vector<16x1xf32> to vector<16x8xf32>
    %618 = arith.mulf %617, %607 : vector<16x8xf32>
    %619 = arith.addf %613, %618 : vector<16x8xf32>
    %620 = vector.broadcast %595 : vector<16x1xf32> to vector<16x8xf32>
    %621 = vector.broadcast %592 : vector<1x8xf32> to vector<16x8xf32>
    %622 = arith.mulf %620, %621 : vector<16x8xf32>
    %623 = arith.addf %619, %622 : vector<16x8xf32>
    %624 = arith.mulf %601, %623 : vector<16x8xf32>
    %c0_205 = arith.constant 0 : index
    %c0_206 = arith.constant 0 : index
    %625 = vector.load %arg8[%c0_205, %c0_206] : memref<2x16xf32, #tpu.memory_space<vmem>>, vector<2x16xf32>
    %cst_207 = arith.constant dense<0.000000e+00> : vector<2x8xf32>
    %626 = tpu.matmul %625, %624, %cst_207 {dimension_numbers = #tpu.dot_dimension_numbers<[1], [0], [0], [1], [0, 0, 1, 1], [], []>} : vector<2x16xf32>, vector<16x8xf32>, vector<2x8xf32> -> vector<2x8xf32>
    %cst_208 = arith.constant dense<0.000000e+00> : vector<2xf32>
    %627 = vector.multi_reduction <add>, %626, %cst_208 [1] : vector<2x8xf32> to vector<2xf32>
    %628 = vector.shape_cast %627 : vector<2xf32> to vector<2x1xf32>
    %cst_209 = arith.constant dense<0xFF800000> : vector<8xf32>
    %629 = vector.multi_reduction <maximumf>, %590, %cst_209 [0] : vector<8x8xf32> to vector<8xf32>
    %630 = vector.shape_cast %629 : vector<8xf32> to vector<1x8xf32>
    %631 = vector.broadcast %630 : vector<1x8xf32> to vector<8x8xf32>
    %632 = arith.subf %590, %631 : vector<8x8xf32>
    %633 = math.exp %632 : vector<8x8xf32>
    %634 = vector.extract_strided_slice %589 {offsets = [0, 0], sizes = [2, 8], strides = [1, 1]} : vector<16x8xf32> to vector<2x8xf32>
    %635 = vector.broadcast %591 : vector<1x8xf32> to vector<2x8xf32>
    %636 = arith.addf %635, %634 : vector<2x8xf32>
    %637 = vector.extract_strided_slice %589 {offsets = [2, 0], sizes = [2, 8], strides = [1, 1]} : vector<16x8xf32> to vector<2x8xf32>
    %638 = vector.extract_strided_slice %593 {offsets = [2, 0], sizes = [2, 1], strides = [1, 1]} : vector<16x1xf32> to vector<2x1xf32>
    %cst_210 = arith.constant dense<0xFF800000> : vector<2xf32>
    %639 = vector.multi_reduction <maximumf>, %636, %cst_210 [1] : vector<2x8xf32> to vector<2xf32>
    %640 = vector.shape_cast %639 : vector<2xf32> to vector<2x1xf32>
    %641 = vector.broadcast %640 : vector<2x1xf32> to vector<2x8xf32>
    %642 = arith.subf %636, %641 : vector<2x8xf32>
    %643 = math.exp %642 : vector<2x8xf32>
    %cst_211 = arith.constant dense<0.000000e+00> : vector<2x8xf32>
    %644 = tpu.matmul %643, %633, %cst_211 {dimension_numbers = #tpu.dot_dimension_numbers<[1], [0], [0], [1], [0, 0, 1, 1], [], []>} : vector<2x8xf32>, vector<8x8xf32>, vector<2x8xf32> -> vector<2x8xf32>
    %645 = math.log %644 : vector<2x8xf32>
    %646 = vector.broadcast %640 : vector<2x1xf32> to vector<2x8xf32>
    %647 = arith.addf %645, %646 : vector<2x8xf32>
    %648 = vector.broadcast %630 : vector<1x8xf32> to vector<2x8xf32>
    %649 = arith.addf %647, %648 : vector<2x8xf32>
    %650 = arith.addf %649, %637 : vector<2x8xf32>
    %cst_212 = arith.constant 0.000000e+00 : f32
    %651 = vector.broadcast %cst_212 : f32 to vector<2x1xf32>
    %652 = arith.cmpf ogt, %638, %651 : vector<2x1xf32>
    %653 = vector.shape_cast %652 : vector<2x1xi1> to vector<2x1xi1>
    %654 = vector.broadcast %653 : vector<2x1xi1> to vector<2x8xi1>
    %655 = arith.select %654, %650, %636 : vector<2x8xi1>, vector<2x8xf32>
    %656 = vector.extract_strided_slice %589 {offsets = [4, 0], sizes = [2, 8], strides = [1, 1]} : vector<16x8xf32> to vector<2x8xf32>
    %657 = vector.extract_strided_slice %593 {offsets = [4, 0], sizes = [2, 1], strides = [1, 1]} : vector<16x1xf32> to vector<2x1xf32>
    %cst_213 = arith.constant dense<0xFF800000> : vector<2xf32>
    %658 = vector.multi_reduction <maximumf>, %655, %cst_213 [1] : vector<2x8xf32> to vector<2xf32>
    %659 = vector.shape_cast %658 : vector<2xf32> to vector<2x1xf32>
    %660 = vector.broadcast %659 : vector<2x1xf32> to vector<2x8xf32>
    %661 = arith.subf %655, %660 : vector<2x8xf32>
    %662 = math.exp %661 : vector<2x8xf32>
    %cst_214 = arith.constant dense<0.000000e+00> : vector<2x8xf32>
    %663 = tpu.matmul %662, %633, %cst_214 {dimension_numbers = #tpu.dot_dimension_numbers<[1], [0], [0], [1], [0, 0, 1, 1], [], []>} : vector<2x8xf32>, vector<8x8xf32>, vector<2x8xf32> -> vector<2x8xf32>
    %664 = math.log %663 : vector<2x8xf32>
    %665 = vector.broadcast %659 : vector<2x1xf32> to vector<2x8xf32>
    %666 = arith.addf %664, %665 : vector<2x8xf32>
    %667 = vector.broadcast %630 : vector<1x8xf32> to vector<2x8xf32>
    %668 = arith.addf %666, %667 : vector<2x8xf32>
    %669 = arith.addf %668, %656 : vector<2x8xf32>
    %cst_215 = arith.constant 0.000000e+00 : f32
    %670 = vector.broadcast %cst_215 : f32 to vector<2x1xf32>
    %671 = arith.cmpf ogt, %657, %670 : vector<2x1xf32>
    %672 = vector.shape_cast %671 : vector<2x1xi1> to vector<2x1xi1>
    %673 = vector.broadcast %672 : vector<2x1xi1> to vector<2x8xi1>
    %674 = arith.select %673, %669, %655 : vector<2x8xi1>, vector<2x8xf32>
    %675 = vector.extract_strided_slice %589 {offsets = [6, 0], sizes = [2, 8], strides = [1, 1]} : vector<16x8xf32> to vector<2x8xf32>
    %676 = vector.extract_strided_slice %593 {offsets = [6, 0], sizes = [2, 1], strides = [1, 1]} : vector<16x1xf32> to vector<2x1xf32>
    %cst_216 = arith.constant dense<0xFF800000> : vector<2xf32>
    %677 = vector.multi_reduction <maximumf>, %674, %cst_216 [1] : vector<2x8xf32> to vector<2xf32>
    %678 = vector.shape_cast %677 : vector<2xf32> to vector<2x1xf32>
    %679 = vector.broadcast %678 : vector<2x1xf32> to vector<2x8xf32>
    %680 = arith.subf %674, %679 : vector<2x8xf32>
    %681 = math.exp %680 : vector<2x8xf32>
    %cst_217 = arith.constant dense<0.000000e+00> : vector<2x8xf32>
    %682 = tpu.matmul %681, %633, %cst_217 {dimension_numbers = #tpu.dot_dimension_numbers<[1], [0], [0], [1], [0, 0, 1, 1], [], []>} : vector<2x8xf32>, vector<8x8xf32>, vector<2x8xf32> -> vector<2x8xf32>
    %683 = math.log %682 : vector<2x8xf32>
    %684 = vector.broadcast %678 : vector<2x1xf32> to vector<2x8xf32>
    %685 = arith.addf %683, %684 : vector<2x8xf32>
    %686 = vector.broadcast %630 : vector<1x8xf32> to vector<2x8xf32>
    %687 = arith.addf %685, %686 : vector<2x8xf32>
    %688 = arith.addf %687, %675 : vector<2x8xf32>
    %cst_218 = arith.constant 0.000000e+00 : f32
    %689 = vector.broadcast %cst_218 : f32 to vector<2x1xf32>
    %690 = arith.cmpf ogt, %676, %689 : vector<2x1xf32>
    %691 = vector.shape_cast %690 : vector<2x1xi1> to vector<2x1xi1>
    %692 = vector.broadcast %691 : vector<2x1xi1> to vector<2x8xi1>
    %693 = arith.select %692, %688, %674 : vector<2x8xi1>, vector<2x8xf32>
    %694 = vector.extract_strided_slice %589 {offsets = [8, 0], sizes = [2, 8], strides = [1, 1]} : vector<16x8xf32> to vector<2x8xf32>
    %695 = vector.extract_strided_slice %593 {offsets = [8, 0], sizes = [2, 1], strides = [1, 1]} : vector<16x1xf32> to vector<2x1xf32>
    %cst_219 = arith.constant dense<0xFF800000> : vector<2xf32>
    %696 = vector.multi_reduction <maximumf>, %693, %cst_219 [1] : vector<2x8xf32> to vector<2xf32>
    %697 = vector.shape_cast %696 : vector<2xf32> to vector<2x1xf32>
    %698 = vector.broadcast %697 : vector<2x1xf32> to vector<2x8xf32>
    %699 = arith.subf %693, %698 : vector<2x8xf32>
    %700 = math.exp %699 : vector<2x8xf32>
    %cst_220 = arith.constant dense<0.000000e+00> : vector<2x8xf32>
    %701 = tpu.matmul %700, %633, %cst_220 {dimension_numbers = #tpu.dot_dimension_numbers<[1], [0], [0], [1], [0, 0, 1, 1], [], []>} : vector<2x8xf32>, vector<8x8xf32>, vector<2x8xf32> -> vector<2x8xf32>
    %702 = math.log %701 : vector<2x8xf32>
    %703 = vector.broadcast %697 : vector<2x1xf32> to vector<2x8xf32>
    %704 = arith.addf %702, %703 : vector<2x8xf32>
    %705 = vector.broadcast %630 : vector<1x8xf32> to vector<2x8xf32>
    %706 = arith.addf %704, %705 : vector<2x8xf32>
    %707 = arith.addf %706, %694 : vector<2x8xf32>
    %cst_221 = arith.constant 0.000000e+00 : f32
    %708 = vector.broadcast %cst_221 : f32 to vector<2x1xf32>
    %709 = arith.cmpf ogt, %695, %708 : vector<2x1xf32>
    %710 = vector.shape_cast %709 : vector<2x1xi1> to vector<2x1xi1>
    %711 = vector.broadcast %710 : vector<2x1xi1> to vector<2x8xi1>
    %712 = arith.select %711, %707, %693 : vector<2x8xi1>, vector<2x8xf32>
    %713 = vector.extract_strided_slice %589 {offsets = [10, 0], sizes = [2, 8], strides = [1, 1]} : vector<16x8xf32> to vector<2x8xf32>
    %714 = vector.extract_strided_slice %593 {offsets = [10, 0], sizes = [2, 1], strides = [1, 1]} : vector<16x1xf32> to vector<2x1xf32>
    %cst_222 = arith.constant dense<0xFF800000> : vector<2xf32>
    %715 = vector.multi_reduction <maximumf>, %712, %cst_222 [1] : vector<2x8xf32> to vector<2xf32>
    %716 = vector.shape_cast %715 : vector<2xf32> to vector<2x1xf32>
    %717 = vector.broadcast %716 : vector<2x1xf32> to vector<2x8xf32>
    %718 = arith.subf %712, %717 : vector<2x8xf32>
    %719 = math.exp %718 : vector<2x8xf32>
    %cst_223 = arith.constant dense<0.000000e+00> : vector<2x8xf32>
    %720 = tpu.matmul %719, %633, %cst_223 {dimension_numbers = #tpu.dot_dimension_numbers<[1], [0], [0], [1], [0, 0, 1, 1], [], []>} : vector<2x8xf32>, vector<8x8xf32>, vector<2x8xf32> -> vector<2x8xf32>
    %721 = math.log %720 : vector<2x8xf32>
    %722 = vector.broadcast %716 : vector<2x1xf32> to vector<2x8xf32>
    %723 = arith.addf %721, %722 : vector<2x8xf32>
    %724 = vector.broadcast %630 : vector<1x8xf32> to vector<2x8xf32>
    %725 = arith.addf %723, %724 : vector<2x8xf32>
    %726 = arith.addf %725, %713 : vector<2x8xf32>
    %cst_224 = arith.constant 0.000000e+00 : f32
    %727 = vector.broadcast %cst_224 : f32 to vector<2x1xf32>
    %728 = arith.cmpf ogt, %714, %727 : vector<2x1xf32>
    %729 = vector.shape_cast %728 : vector<2x1xi1> to vector<2x1xi1>
    %730 = vector.broadcast %729 : vector<2x1xi1> to vector<2x8xi1>
    %731 = arith.select %730, %726, %712 : vector<2x8xi1>, vector<2x8xf32>
    %732 = vector.extract_strided_slice %589 {offsets = [12, 0], sizes = [2, 8], strides = [1, 1]} : vector<16x8xf32> to vector<2x8xf32>
    %733 = vector.extract_strided_slice %593 {offsets = [12, 0], sizes = [2, 1], strides = [1, 1]} : vector<16x1xf32> to vector<2x1xf32>
    %cst_225 = arith.constant dense<0xFF800000> : vector<2xf32>
    %734 = vector.multi_reduction <maximumf>, %731, %cst_225 [1] : vector<2x8xf32> to vector<2xf32>
    %735 = vector.shape_cast %734 : vector<2xf32> to vector<2x1xf32>
    %736 = vector.broadcast %735 : vector<2x1xf32> to vector<2x8xf32>
    %737 = arith.subf %731, %736 : vector<2x8xf32>
    %738 = math.exp %737 : vector<2x8xf32>
    %cst_226 = arith.constant dense<0.000000e+00> : vector<2x8xf32>
    %739 = tpu.matmul %738, %633, %cst_226 {dimension_numbers = #tpu.dot_dimension_numbers<[1], [0], [0], [1], [0, 0, 1, 1], [], []>} : vector<2x8xf32>, vector<8x8xf32>, vector<2x8xf32> -> vector<2x8xf32>
    %740 = math.log %739 : vector<2x8xf32>
    %741 = vector.broadcast %735 : vector<2x1xf32> to vector<2x8xf32>
    %742 = arith.addf %740, %741 : vector<2x8xf32>
    %743 = vector.broadcast %630 : vector<1x8xf32> to vector<2x8xf32>
    %744 = arith.addf %742, %743 : vector<2x8xf32>
    %745 = arith.addf %744, %732 : vector<2x8xf32>
    %cst_227 = arith.constant 0.000000e+00 : f32
    %746 = vector.broadcast %cst_227 : f32 to vector<2x1xf32>
    %747 = arith.cmpf ogt, %733, %746 : vector<2x1xf32>
    %748 = vector.shape_cast %747 : vector<2x1xi1> to vector<2x1xi1>
    %749 = vector.broadcast %748 : vector<2x1xi1> to vector<2x8xi1>
    %750 = arith.select %749, %745, %731 : vector<2x8xi1>, vector<2x8xf32>
    %751 = vector.extract_strided_slice %589 {offsets = [14, 0], sizes = [2, 8], strides = [1, 1]} : vector<16x8xf32> to vector<2x8xf32>
    %752 = vector.extract_strided_slice %593 {offsets = [14, 0], sizes = [2, 1], strides = [1, 1]} : vector<16x1xf32> to vector<2x1xf32>
    %cst_228 = arith.constant dense<0xFF800000> : vector<2xf32>
    %753 = vector.multi_reduction <maximumf>, %750, %cst_228 [1] : vector<2x8xf32> to vector<2xf32>
    %754 = vector.shape_cast %753 : vector<2xf32> to vector<2x1xf32>
    %755 = vector.broadcast %754 : vector<2x1xf32> to vector<2x8xf32>
    %756 = arith.subf %750, %755 : vector<2x8xf32>
    %757 = math.exp %756 : vector<2x8xf32>
    %cst_229 = arith.constant dense<0.000000e+00> : vector<2x8xf32>
    %758 = tpu.matmul %757, %633, %cst_229 {dimension_numbers = #tpu.dot_dimension_numbers<[1], [0], [0], [1], [0, 0, 1, 1], [], []>} : vector<2x8xf32>, vector<8x8xf32>, vector<2x8xf32> -> vector<2x8xf32>
    %759 = math.log %758 : vector<2x8xf32>
    %760 = vector.broadcast %754 : vector<2x1xf32> to vector<2x8xf32>
    %761 = arith.addf %759, %760 : vector<2x8xf32>
    %762 = vector.broadcast %630 : vector<1x8xf32> to vector<2x8xf32>
    %763 = arith.addf %761, %762 : vector<2x8xf32>
    %764 = arith.addf %763, %751 : vector<2x8xf32>
    %cst_230 = arith.constant 0.000000e+00 : f32
    %765 = vector.broadcast %cst_230 : f32 to vector<2x1xf32>
    %766 = arith.cmpf ogt, %752, %765 : vector<2x1xf32>
    %767 = vector.shape_cast %766 : vector<2x1xi1> to vector<2x1xi1>
    %768 = vector.broadcast %767 : vector<2x1xi1> to vector<2x8xi1>
    %769 = arith.select %768, %764, %750 : vector<2x8xi1>, vector<2x8xf32>
    %770 = vector.broadcast %592 : vector<1x8xf32> to vector<2x8xf32>
    %771 = arith.addf %769, %770 : vector<2x8xf32>
    %cst_231 = arith.constant dense<0xFF800000> : vector<2xf32>
    %772 = vector.multi_reduction <maximumf>, %771, %cst_231 [1] : vector<2x8xf32> to vector<2xf32>
    %773 = vector.shape_cast %772 : vector<2xf32> to vector<2x1xf32>
    %774 = vector.broadcast %773 : vector<2x1xf32> to vector<2x8xf32>
    %775 = arith.subf %771, %774 : vector<2x8xf32>
    %776 = math.exp %775 : vector<2x8xf32>
    %cst_232 = arith.constant dense<0.000000e+00> : vector<2xf32>
    %777 = vector.multi_reduction <add>, %776, %cst_232 [1] : vector<2x8xf32> to vector<2xf32>
    %778 = vector.shape_cast %777 : vector<2xf32> to vector<2x1xf32>
    %779 = math.log %778 : vector<2x1xf32>
    %780 = arith.addf %773, %779 : vector<2x1xf32>
    %781 = arith.subf %628, %780 : vector<2x1xf32>
    %c0_233 = arith.constant 0 : index
    %c0_234 = arith.constant 0 : index
    %782 = vector.load %arg33[%c0_233, %c0_234] : memref<2x1xf32, #tpu.memory_space<vmem>>, vector<2x1xf32>
    tpu.vector_store %arg33[%c0_233, %c0_234], %781 {strides = array<i32>} : memref<2x1xf32, #tpu.memory_space<vmem>>, vector<2x1xf32>,
    return
  }
  func.func @transform_0(%arg0: i32) -> (i32, i32) {
    %c0_i32 = arith.constant 0 : i32
    %c0_i32_0 = arith.constant 0 : i32
    %c0_i32_1 = arith.constant 0 : i32
    return %c0_i32, %c0_i32_0 : i32, i32
  }
  func.func @transform_1(%arg0: i32) -> (i32, i32) {
    %c0_i32 = arith.constant 0 : i32
    %c0_i32_0 = arith.constant 0 : i32
    %c0_i32_1 = arith.constant 0 : i32
    return %c0_i32, %c0_i32_0 : i32, i32
  }
  func.func @transform_2(%arg0: i32) -> (i32, i32) {
    %c0_i32 = arith.constant 0 : i32
    %c0_i32_0 = arith.constant 0 : i32
    %c0_i32_1 = arith.constant 0 : i32
    return %c0_i32, %c0_i32_0 : i32, i32
  }
  func.func @transform_3(%arg0: i32) -> (i32, i32) {
    %c0_i32 = arith.constant 0 : i32
    %c0_i32_0 = arith.constant 0 : i32
    %c0_i32_1 = arith.constant 0 : i32
    return %c0_i32, %c0_i32_0 : i32, i32
  }
  func.func @transform_4(%arg0: i32) -> (i32, i32) {
    %c0_i32 = arith.constant 0 : i32
    %c0_i32_0 = arith.constant 0 : i32
    %c0_i32_1 = arith.constant 0 : i32
    return %c0_i32, %c0_i32_0 : i32, i32
  }
  func.func @transform_5(%arg0: i32) -> (i32, i32) {
    %c0_i32 = arith.constant 0 : i32
    %c0_i32_0 = arith.constant 0 : i32
    %c0_i32_1 = arith.constant 0 : i32
    return %c0_i32, %c0_i32_0 : i32, i32
  }
  func.func @transform_6(%arg0: i32) -> (i32, i32) {
    %c0_i32 = arith.constant 0 : i32
    %c0_i32_0 = arith.constant 0 : i32
    %c0_i32_1 = arith.constant 0 : i32
    return %c0_i32, %c0_i32_0 : i32, i32
  }
  func.func @transform_7(%arg0: i32) -> (i32, i32) {
    %c0_i32 = arith.constant 0 : i32
    %c0_i32_0 = arith.constant 0 : i32
    %c0_i32_1 = arith.constant 0 : i32
    return %c0_i32, %c0_i32_0 : i32, i32
  }
  func.func @transform_8(%arg0: i32) -> (i32, i32) {
    %c0_i32 = arith.constant 0 : i32
    %c0_i32_0 = arith.constant 0 : i32
    %c0_i32_1 = arith.constant 0 : i32
    return %c0_i32, %c0_i32_0 : i32, i32
  }
  func.func @transform_9(%arg0: i32) -> (i32, i32) {
    %c0_i32 = arith.constant 0 : i32
    %c0_i32_0 = arith.constant 0 : i32
    %c0_i32_1 = arith.constant 0 : i32
    return %c0_i32, %c0_i32_0 : i32, i32
  }
  func.func @transform_10(%arg0: i32) -> (i32, i32, i32) {
    %c0_i32 = arith.constant 0 : i32
    %c0_i32_0 = arith.constant 0 : i32
    %c0_i32_1 = arith.constant 0 : i32
    %c0_i32_2 = arith.constant 0 : i32
    return %c0_i32, %c0_i32_0, %c0_i32_1 : i32, i32, i32
  }
  func.func @transform_11(%arg0: i32) -> (i32, i32, i32) {
    %c0_i32 = arith.constant 0 : i32
    %c0_i32_0 = arith.constant 0 : i32
    %c0_i32_1 = arith.constant 0 : i32
    %c0_i32_2 = arith.constant 0 : i32
    return %c0_i32, %c0_i32_0, %c0_i32_1 : i32, i32, i32
  }
  func.func @transform_12(%arg0: i32) -> (i32, i32, i32) {
    %c0_i32 = arith.constant 0 : i32
    %c0_i32_0 = arith.constant 0 : i32
    %c0_i32_1 = arith.constant 0 : i32
    %c0_i32_2 = arith.constant 0 : i32
    return %c0_i32, %c0_i32_0, %c0_i32_1 : i32, i32, i32
  }
  func.func @transform_13(%arg0: i32) -> (i32, i32, i32) {
    %c0_i32 = arith.constant 0 : i32
    %c0_i32_0 = arith.constant 0 : i32
    %c0_i32_1 = arith.constant 0 : i32
    %c0_i32_2 = arith.constant 0 : i32
    return %c0_i32, %c0_i32_0, %c0_i32_1 : i32, i32, i32
  }
  func.func @transform_14(%arg0: i32) -> (i32, i32, i32) {
    %c0_i32 = arith.constant 0 : i32
    %c0_i32_0 = arith.constant 0 : i32
    %c0_i32_1 = arith.constant 0 : i32
    %c0_i32_2 = arith.constant 0 : i32
    return %c0_i32, %c0_i32_0, %c0_i32_1 : i32, i32, i32
  }
  func.func @transform_15(%arg0: i32) -> (i32, i32, i32) {
    %c0_i32 = arith.constant 0 : i32
    %c0_i32_0 = arith.constant 0 : i32
    %c0_i32_1 = arith.constant 0 : i32
    %c0_i32_2 = arith.constant 0 : i32
    return %c0_i32, %c0_i32_0, %c0_i32_1 : i32, i32, i32
  }
  func.func @transform_16(%arg0: i32) -> (i32, i32, i32) {
    %c0_i32 = arith.constant 0 : i32
    %c0_i32_0 = arith.constant 0 : i32
    %c0_i32_1 = arith.constant 0 : i32
    %c0_i32_2 = arith.constant 0 : i32
    return %c0_i32, %c0_i32_0, %c0_i32_1 : i32, i32, i32
  }
  func.func @transform_17(%arg0: i32) -> (i32, i32, i32) {
    %c0_i32 = arith.constant 0 : i32
    %c0_i32_0 = arith.constant 0 : i32
    %c0_i32_1 = arith.constant 0 : i32
    %c0_i32_2 = arith.constant 0 : i32
    return %c0_i32, %c0_i32_0, %c0_i32_1 : i32, i32, i32
  }
  func.func @transform_18(%arg0: i32) -> (i32, i32, i32) {
    %c0_i32 = arith.constant 0 : i32
    %c0_i32_0 = arith.constant 0 : i32
    %c0_i32_1 = arith.constant 0 : i32
    %c0_i32_2 = arith.constant 0 : i32
    return %c0_i32, %c0_i32_0, %c0_i32_1 : i32, i32, i32
  }
  func.func @transform_19(%arg0: i32) -> (i32, i32, i32) {
    %c0_i32 = arith.constant 0 : i32
    %c0_i32_0 = arith.constant 0 : i32
    %c0_i32_1 = arith.constant 0 : i32
    %c0_i32_2 = arith.constant 0 : i32
    return %c0_i32, %c0_i32_0, %c0_i32_1 : i32, i32, i32
  }
  func.func @transform_20(%arg0: i32) -> (i32, i32, i32) {
    %c0_i32 = arith.constant 0 : i32
    %c0_i32_0 = arith.constant 0 : i32
    %c0_i32_1 = arith.constant 0 : i32
    %c0_i32_2 = arith.constant 0 : i32
    return %c0_i32, %c0_i32_0, %c0_i32_1 : i32, i32, i32
  }
  func.func @transform_21(%arg0: i32) -> (i32, i32, i32) {
    %c0_i32 = arith.constant 0 : i32
    %c0_i32_0 = arith.constant 0 : i32
    %c0_i32_1 = arith.constant 0 : i32
    %c0_i32_2 = arith.constant 0 : i32
    return %c0_i32, %c0_i32_0, %c0_i32_1 : i32, i32, i32
  }
  func.func @transform_22(%arg0: i32) -> (i32, i32) {
    %c0_i32 = arith.constant 0 : i32
    %c0_i32_0 = arith.constant 0 : i32
    %c0_i32_1 = arith.constant 0 : i32
    return %c0_i32, %c0_i32_0 : i32, i32
  }
  func.func @transform_23(%arg0: i32) -> (i32, i32) {
    %c0_i32 = arith.constant 0 : i32
    %c0_i32_0 = arith.constant 0 : i32
    %c0_i32_1 = arith.constant 0 : i32
    return %c0_i32, %c0_i32_0 : i32, i32
  }
  func.func @transform_24(%arg0: i32) -> (i32, i32) {
    %c0_i32 = arith.constant 0 : i32
    %c0_i32_0 = arith.constant 0 : i32
    %c0_i32_1 = arith.constant 0 : i32
    return %c0_i32, %c0_i32_0 : i32, i32
  }
  func.func @transform_25(%arg0: i32) -> (i32, i32) {
    %c0_i32 = arith.constant 0 : i32
    %c0_i32_0 = arith.constant 0 : i32
    %c0_i32_1 = arith.constant 0 : i32
    return %c0_i32, %c0_i32_0 : i32, i32
  }
  func.func @transform_26(%arg0: i32) -> (i32, i32) {
    %c0_i32 = arith.constant 0 : i32
    %c0_i32_0 = arith.constant 0 : i32
    %c0_i32_1 = arith.constant 0 : i32
    return %c0_i32, %c0_i32_0 : i32, i32
  }
  func.func @transform_27(%arg0: i32) -> (i32, i32) {
    %c0_i32 = arith.constant 0 : i32
    %c0_i32_0 = arith.constant 0 : i32
    %c0_i32_1 = arith.constant 0 : i32
    return %c0_i32, %c0_i32_0 : i32, i32
  }
  func.func @transform_28(%arg0: i32) -> (i32, i32) {
    %c0_i32 = arith.constant 0 : i32
    %c0_i32_0 = arith.constant 0 : i32
    %c0_i32_1 = arith.constant 0 : i32
    return %c0_i32, %c0_i32_0 : i32, i32
  }
  func.func @transform_29(%arg0: i32) -> (i32, i32) {
    %c0_i32 = arith.constant 0 : i32
    %c0_i32_0 = arith.constant 0 : i32
    %c0_i32_1 = arith.constant 0 : i32
    return %c0_i32, %c0_i32_0 : i32, i32
  }
  func.func @transform_30(%arg0: i32) -> (i32, i32) {
    %c0_i32 = arith.constant 0 : i32
    %c0_i32_0 = arith.constant 0 : i32
    %c0_i32_1 = arith.constant 0 : i32
    return %c0_i32, %c0_i32_0 : i32, i32
  }
  func.func @transform_31(%arg0: i32) -> (i32, i32) {
    %c0_i32 = arith.constant 0 : i32
    %c0_i32_0 = arith.constant 0 : i32
    %c0_i32_1 = arith.constant 0 : i32
    return %c0_i32, %c0_i32_0 : i32, i32
  }
  func.func @transform_32(%arg0: i32) -> (i32, i32) {
    %c0_i32 = arith.constant 0 : i32
    %c0_i32_0 = arith.constant 0 : i32
    %c0_i32_1 = arith.constant 0 : i32
    return %c0_i32, %c0_i32_0 : i32, i32
  }
}

</mosaic_0001>

<bundles_post_ra>
// kernel: kobert_bigru_crf_loss.1
= control target key start
LH: loop header
LB: loop body
LE: loop exit
PB: predicated region body
PF: predicated region fallthrough
CT: control target
= control target key end

     0   :  { %vm138_vm0 = vcmask 261120   ;;  %s6085_s6 = smov 10   ;;  %s6086_s10 = smov 8   ;;  %vm288_vm1 = vcmask 64512   ;;  %vm661_vm2 = vcmask 130048   ;;  %vm1126_vm3 = vcmask 195584   ;;  %s7075_s0 = inlined_call_operand.smem [shape: u32[33], index: -1, kind: input, shape index: {}] }
   0x1   :  { %s1_s5 = sld [smem:[%s7075_s0]]   ;;  %s6087_s14 = smov 9   ;;  %vm6114_vm4 = vmmov 0   ;;  %vm3831_vm6 = vcmask 1041408   ;;  %vm3833_vm7 = vcmask 1043456   ;;  %vm3835_vm8 = vcmask 1045504  }
   0x2   :  { %s6146_s9 = sld [smem:[%s7075_s0 + %s6085_s6]]   ;;  %s6088_s18 = smov 11   ;;  %vm4330_vm9 = vcmask 58368   ;;  %vm4445_vm14 = vcmask 60418  }
   0x3   :  { %s5058_s13 = sld [smem:[%s7075_s0 + %s6086_s10]]   ;;  %s6089_s22 = smov 88  }
   0x4   :  { %s5059_s17 = sld [smem:[%s7075_s0 + %s6087_s14]]   ;;  %s6090_s23 = smov 96  }
   0x5   :  { %s6170_s21 = sld [smem:[%s7075_s0 + %s6088_s18]]   ;;  %s6091_s24 = smov 120  }
   0x6   :  { %s6092_s25 = smov 80   ;;  %s6093_s26 = smov 112  }
   0x7   :  { %v134_v0 = vld [vmem:[%s1_s5] sm:$0xff]  ;;  %v135_v1 = vld [vmem:[%s1_s5 + $0x8] sm:$0xff]  ;;  %s6094_s27 = smov 72   ;;  %s6095_s28 = smov 104  }
   0x8   :  { %v139_v2 = vsel %vm138_vm0, %v134_v0, 0.0  ;;  %v142_v3 = vsel %vm138_vm0, %v135_v1, 0.0  ;;  %v193_v14 = vld [vmem:[%s6146_s9 + $0x18] sm:$0xff]  ;;  %v192_v15 = vld [vmem:[%s6146_s9 + $0x10] sm:$0xff]  ;;  %v191_v16 = vld [vmem:[%s6146_s9 + $0x8] sm:$0xff]  ;;  %s6096_s29 = smov 1  }
   0x9   :  { %140 = vadd.xlane.f32.xlu0 %v139_v2  ;;  %5447 = vmatprep.subr.mxu0 %v193_v14  ;;  %v190_v17 = vld [vmem:[%s6146_s9] sm:$0xff]  ;;  %s6234_s2 = sld [smem:[%s7075_s0 + %s6096_s29]]   ;;  %s6097_s3 = smov 64  }
   0xa   :  { %5448 = vmatpush3.msra.mxu0 %v193_v14  ;;  %v5083_v25 = vld [vmem:[%s5058_s13] ss:$0 sm:$0xff]  ;;  %s6098_s4 = smov 56   ;;  %s6099_s5 = smov 40  }
   0xb   :  { %5449 = vmatprep.subr.mxu0 %v192_v15  ;;  %v5084_v27 = vld [vmem:[%s5059_s17] ss:$0 sm:$0xff]  ;;  %s6100_s6 = smov 48   ;;  %s6101_s7 = smov 12  }
   0xc   :  { %5450 = vmatpush3.msra.mxu0 %v192_v15  ;;  %v5085_v34 = vld [vmem:[%s6170_s21] ss:$0 sm:$0xff]  ;;  %s6327_s12 = sld [smem:[%s7075_s0 + %s6101_s7]]   ;;  %s6102_s13 = smov 16  }
   0xd   :  { %143 = vadd.xlane.f32.xlu0 %v142_v3  ;;  %5451 = vmatprep.subr.mxu0 %v191_v16  ;;  %s7076_s14 = smov 24   ;;  %s6104_s15 = smov 13  }
   0xe   :  { %5452 = vmatpush3.msra.mxu0 %v191_v16  ;;  %s6350_s18 = sld [smem:[%s7075_s0 + %s6104_s15]]   ;;  %s6105_s30 = smov 14  }
   0xf   :  { %5453 = vmatprep.subr.mxu0 %v190_v17  ;;  %v6237_v54 = vld [vmem:[%s6234_s2 + $0x8] sm:$0xff]  ;;  %v6242_v60 = vld [vmem:[%s6234_s2 + $0x18] sm:$0xff]  ;;  %s6363_s29 = sld [smem:[%s7075_s0 + %s6102_s13]]   ;;  %s6106_s8 = smov 15  }
  0x10   :  { %5454 = vmatpush3.msra.mxu0 %v190_v17  ;;  %v6249_v3 = vld [vmem:[%s6234_s2 + $0x28] sm:$0xff]  ;;  %s6372_s7 = sld [smem:[%s7075_s0 + %s6105_s30]]   ;;  %s6107_s17 = smov 18  }
  0x11   :  { %s6377_s16 = sld [smem:[%s7075_s0 + %s6106_s8]]   ;;  %s6108_s1 = smov 17  }
  0x12   :  { %s6392_s30 = sld [smem:[%s7075_s0 + %s6107_s17]]   ;;  %s6109_s15 = smov 19  }
  0x13   :  { %s6413_s11 = sld [smem:[%s7075_s0 + %s6108_s1]]   ;;  %s6110_s1 = smov 20  }
  0x14   :  { %s6419_s20 = sld [smem:[%s7075_s0 + %s6109_s15]]   ;;  %s6121_s17 = smov 3  }
  0x15   :  { %s6435_s15 = sld [smem:[%s7075_s0 + %s6110_s1]]  }
  0x92   :  { %v141_v4 = vpop.xlane.xlu0 %140 }
  0x93   :  { %v146_v5 = vmul.f32 0.03125, %v141_v4 }
  0x95   :  { %v148_v6 = vsub.f32 %v134_v0, %v146_v5  ;;  %v6245_v0 = vld [vmem:[%s6234_s2] sm:$0xff] }
  0x96   :  { %v144_v7 = vpop.xlane.xlu0 %143 }
  0x97   :  { %v147_v8 = vmul.f32 0.03125, %v144_v7  ;;  %v150_v9 = vmul.f32 %v148_v6, %v148_v6 }
  0x99   :  { %v149_v10 = vsub.f32 %v135_v1, %v147_v8  ;;  %v152_v11 = vsel %vm138_vm0, %v150_v9, 0.0 }
  0x9a   :  { %153 = vadd.xlane.f32.xlu1 %v152_v11 }
  0x9b   :  { %v151_v12 = vmul.f32 %v149_v10, %v149_v10 }
  0x9d   :  { %v155_v13 = vsel %vm138_vm0, %v151_v12, 0.0 }
  0x9e   :  { %156 = vadd.xlane.f32.xlu1 %v155_v13  ;;  %v6259_v13 = vld [vmem:[%s6234_s2 + $0x38] sm:$0xff] }
 0x123   :  { %v154_v18 = vpop.xlane.xlu1 %153 }
 0x124   :  { %v158_v19 = vmul.f32 0.03125, %v154_v18 }
 0x126   :  { %v160_v20 = vadd.f32 1e-12, %v158_v19  ;;  %v6264_v19 = vld [vmem:[%s6234_s2 + $0x20] sm:$0xff] }
 0x127   :  { %v157_v21 = vpop.xlane.xlu1 %156 }
 0x128   :  { %5903 = vrsqrt.f32 %v160_v20  ;;  %v159_v22 = vmul.f32 0.03125, %v157_v21 }
 0x12a   :  { %v161_v23 = vadd.f32 1e-12, %v159_v22 }
 0x12c   :  { %5905 = vrsqrt.f32 %v161_v23 }
 0x135   :  { %v5904_v24 = vpop.eup %5903 }
 0x136   :  { %v164_v26 = vmul.f32 %v5904_v24, %v148_v6 }
 0x138   :  { %v172_v28 = vmul.f32 %v5083_v25, %v164_v26 }
 0x139   :  { %v5906_v29 = vpop.eup %5905 }
 0x13a   :  { %v165_v30 = vmul.f32 %v5906_v29, %v149_v10  ;;  %v6159_v31 = vadd.f32 %v5084_v27, %v172_v28  ;;  %v6255_v10 = vld [vmem:[%s6234_s2 + $0x10] sm:$0xff] }
 0x13c   :  { %v173_v32 = vmul.f32 %v5083_v25, %v165_v30  ;;  %5455 = vmatprep.mubr.msk.f32.mxu0 %vm138_vm0, %v6159_v31  ;;  %v6271_v25 = vld [vmem:[%s6234_s2 + $0x30] sm:$0xff]  ;;  %s6127_s2 = smov 29  }
 0x13e   :  { %v6163_v33 = vadd.f32 %v5084_v27, %v173_v32 }
 0x140   :  { %5456 = vmatmul.mubr.msk.f32.vlgmr.msra.gmra.mxu0 %vm138_vm0, %v6163_v33 }
 0x200   :  { %v5457_v35 = vpop.f32.mrf.mxu0 }
 0x201   :  { %v6173_v36 = vadd.f32 %v5457_v35, %v5085_v34 }
 0x202   :  { %v273_v37 = vpop.f32.mrf.mxu0 }
 0x203   :  { %v6175_v38 = vadd.f32 %v5085_v34, %v273_v37  ;;  %378 = vrot.lane.b32.xlu1 %v6173_v36, %s6089_s22  ;;  %286 = vrot.lane.b32.xlu0 %v6173_v36, %s6090_s23 }
 0x205   :  { %5462 = vmatprep.mubr.msk.f32.mxu1 %vm288_vm1, %v6175_v38 }
 0x207   :  { %374 = vrot.lane.b32.xlu1 %v6173_v36, %s6091_s24  ;;  %469 = vrot.lane.b32.xlu0 %v6173_v36, %s6092_s25 }
 0x20b   :  { %465 = vrot.lane.b32.xlu1 %v6173_v36, %s6093_s26  ;;  %560 = vrot.lane.b32.xlu0 %v6173_v36, %s6094_s27 }
 0x20f   :  { %467 = vrot.lane.b32.xlu0 %v6175_v38, %s6092_s25  ;;  %284 = vrot.lane.b32.xlu1 %v6175_v38, %s6090_s23 }
 0x213   :  { %463 = vrot.lane.b32.xlu0 %v6175_v38, %s6093_s26  ;;  %376 = vrot.lane.b32.xlu1 %v6175_v38, %s6089_s22 }
 0x217   :  { %554 = vrot.lane.b32.xlu0 %v6175_v38, %s6095_s28  ;;  %372 = vrot.lane.b32.xlu1 %v6175_v38, %s6091_s24 }
 0x21b   :  { %558 = vrot.lane.b32.xlu1 %v6175_v38, %s6094_s27 }
 0x21f   :  { %556 = vrot.lane.b32.xlu1 %v6173_v36, %s6095_s28 }
 0x275   :  { %v379_v39 = vpop.permute.xlu1 %378  ;;  %v287_v40 = vpop.permute.xlu0 %286 }
 0x276   :  { %5458 = vmatprep.subr.msk.mxu1 %vm288_vm1, %v287_v40  ;;  %5465 = vmatprep.subr.msk.mxu0 %vm288_vm1, %v379_v39 }
 0x277   :  { %5459 = vmatpush3.xpose.msk.msra.mxu1 %vm288_vm1, %v287_v40  ;;  %5466 = vmatpush3.xpose.msk.msra.mxu0 %vm288_vm1, %v379_v39 }
 0x279   :  { %v375_v41 = vpop.permute.xlu1 %374  ;;  %v470_v42 = vpop.permute.xlu0 %469 }
 0x27d   :  { %v466_v43 = vpop.permute.xlu1 %465  ;;  %v561_v44 = vpop.permute.xlu0 %560 }
 0x281   :  { %v468_v45 = vpop.permute.xlu0 %467  ;;  %v285_v46 = vpop.permute.xlu1 %284 }
 0x282   :  { %5460 = vmatprep.subr.msk.mxu1 %vm288_vm1, %v285_v46 }
 0x283   :  { %5461 = vmatpush3.xpose.msk.msra.mxu1 %vm288_vm1, %v285_v46 }
 0x284   :  { %5472 = vmatprep.subr.msk.mxu1 %vm288_vm1, %v470_v42 }
 0x285   :  { %v464_v47 = vpop.permute.xlu0 %463  ;;  %v377_v48 = vpop.permute.xlu1 %376 }
 0x286   :  { %5463 = vmatmul.mubr.msk.f32.vlgmr.msra.gmra.mxu1 %vm288_vm1, %v6173_v36  ;;  %5467 = vmatprep.subr.msk.mxu0 %vm288_vm1, %v377_v48 }
 0x287   :  { %5468 = vmatpush3.xpose.msk.msra.mxu0 %vm288_vm1, %v377_v48  ;;  %5473 = vmatpush3.xpose.msk.msra.mxu1 %vm288_vm1, %v470_v42 }
 0x288   :  { %5476 = vmatprep.mubr.msk.f32.mxu1 %vm288_vm1, %v464_v47  ;;  %5474 = vmatprep.subr.msk.mxu1 %vm288_vm1, %v468_v45 }
 0x289   :  { %5479 = vmatprep.subr.msk.mxu0 %vm288_vm1, %v561_v44  ;;  %v373_v49 = vpop.permute.xlu1 %372  ;;  %v555_v50 = vpop.permute.xlu0 %554 }
 0x28a   :  { %5469 = vmatprep.mubr.msk.f32.mxu0 %vm288_vm1, %v373_v49 }
 0x28b   :  { %5470 = vmatmul.mubr.msk.f32.vlgmr.msra.gmra.mxu0 %vm288_vm1, %v375_v41  ;;  %5475 = vmatpush3.xpose.msk.msra.mxu1 %vm288_vm1, %v468_v45 }
 0x28c   :  { %5480 = vmatpush3.xpose.msk.msra.mxu0 %vm288_vm1, %v561_v44  ;;  %5483 = vmatprep.mubr.msk.f32.mxu0 %vm288_vm1, %v555_v50 }
 0x28d   :  { %v559_v51 = vpop.permute.xlu1 %558 }
 0x28e   :  { %5477 = vmatmul.mubr.msk.f32.vlgmr.msra.gmra.mxu1 %vm288_vm1, %v466_v43  ;;  %5481 = vmatprep.subr.msk.mxu0 %vm288_vm1, %v559_v51 }
 0x290   :  { %5482 = vmatpush3.xpose.msk.msra.mxu0 %vm288_vm1, %v559_v51 }
 0x291   :  { %v557_v52 = vpop.permute.xlu1 %556 }
 0x293   :  { %5484 = vmatmul.mubr.msk.f32.vlgmr.msra.gmra.mxu0 %vm288_vm1, %v557_v52 }
 0x346   :  { %v5464_v53 = vpop.f32.mrf.mxu1 }
 0x347   :  { %v646_v55 = vmul.f32 0.35355338, %v5464_v53 }
 0x348   :  { %v363_v56 = vpop.f32.mrf.mxu1 }
 0x349   :  { %v654_v57 = vadd.f32 %v646_v55, %v6237_v54  ;;  %v645_v61 = vmul.f32 0.35355338, %v363_v56 }
 0x34b   :  { %v5471_v58 = vpop.f32.mrf.mxu0  ;;  %v665_v59 = vsel %vm661_vm2, %v654_v57, -inf  ;;  %v653_v7 = vadd.f32 %v645_v61, %v6245_v0 }
 0x34c   :  { %v648_v62 = vmul.f32 0.35355338, %v5471_v58  ;;  %666 = vmax.xlane.f32.xlu1 %v665_v59 }
 0x34d   :  { %v454_v63 = vpop.f32.mrf.mxu0  ;;  %v662_v16 = vsel %vm661_vm2, %v653_v7, -inf }
 0x34e   :  { %v5478_v1 = vpop.f32.mrf.mxu1  ;;  %v656_v2 = vadd.f32 %v648_v62, %v6242_v60  ;;  %v647_v5 = vmul.f32 0.35355338, %v454_v63 }
 0x34f   :  { %v650_v4 = vmul.f32 0.35355338, %v5478_v1 }
 0x350   :  { %v671_v6 = vsel %vm661_vm2, %v656_v2, -inf  ;;  %v545_v8 = vpop.f32.mrf.mxu1  ;;  %v655_v17 = vadd.f32 %v647_v5, %v6255_v10 }
 0x351   :  { %672 = vmax.xlane.f32.xlu0 %v671_v6  ;;  %v658_v9 = vadd.f32 %v650_v4, %v6249_v3  ;;  %v649_v14 = vmul.f32 0.35355338, %v545_v8 }
 0x352   :  { %v668_v23 = vsel %vm661_vm2, %v655_v17, -inf }
 0x353   :  { %v5485_v11 = vpop.f32.mrf.mxu0  ;;  %v677_v12 = vsel %vm661_vm2, %v658_v9, -inf  ;;  %v657_v24 = vadd.f32 %v649_v14, %v6264_v19 }
 0x354   :  { %v652_v15 = vmul.f32 0.35355338, %v5485_v11  ;;  %678 = vmax.xlane.f32.xlu1 %v677_v12 }
 0x355   :  { %v636_v18 = vpop.f32.mrf.mxu0  ;;  %663 = vmax.xlane.f32.xlu0 %v662_v16  ;;  %v674_v26 = vsel %vm661_vm2, %v657_v24, -inf }
 0x356   :  { %v660_v20 = vadd.f32 %v652_v15, %v6259_v13  ;;  %v651_v21 = vmul.f32 0.35355338, %v636_v18 }
 0x358   :  { %v683_v22 = vsel %vm661_vm2, %v660_v20, -inf  ;;  %v659_v27 = vadd.f32 %v651_v21, %v6271_v25 }
 0x359   :  { %684 = vmax.xlane.f32.xlu1 %v683_v22  ;;  %669 = vmax.xlane.f32.xlu0 %v668_v23 }
 0x35a   :  { %v680_v28 = vsel %vm661_vm2, %v659_v27, -inf }
 0x35d   :  { %675 = vmax.xlane.f32.xlu0 %v674_v26 }
 0x361   :  { %681 = vmax.xlane.f32.xlu0 %v680_v28 }
 0x36a   :  { %750 = vrot.lane.b32.xlu1 %v6175_v38, %s6097_s3 }
 0x36e   :  { %839 = vrot.lane.b32.xlu1 %v6173_v36, %s6098_s4 }
 0x372   :  { %837 = vrot.lane.b32.xlu1 %v6175_v38, %s6098_s4 }
 0x376   :  { %1013 = vrot.lane.b32.xlu1 %v6173_v36, %s6099_s5 }
 0x377   :  { %752 = vrot.lane.b32.xlu0 %v6173_v36, %s6097_s3 }
 0x37b   :  { %926 = vrot.lane.b32.xlu0 %v6173_v36, %s6100_s6 }
 0x3d5   :  { %v667_v29 = vpop.xlane.xlu1 %666 }
 0x3d6   :  { %v687_v30 = vsub.f32 %v654_v57, %v667_v29 }
 0x3d8   :  { %v696_v32 = vmul.f32 1.442695, %v687_v30 }
 0x3da   :  { %5907 = vpow2.f32 %v696_v32  ;;  %v673_v34 = vpop.xlane.xlu0 %672 }
 0x3db   :  { %v689_v35 = vsub.f32 %v656_v2, %v673_v34 }
 0x3dd   :  { %v700_v37 = vmul.f32 1.442695, %v689_v35  ;;  %v679_v39 = vpop.xlane.xlu1 %678 }
 0x3de   :  { %v691_v40 = vsub.f32 %v658_v9, %v679_v39  ;;  %v664_v41 = vpop.xlane.xlu0 %663 }
 0x3df   :  { %5909 = vpow2.f32 %v700_v37  ;;  %v686_v42 = vsub.f32 %v653_v7, %v664_v41 }
 0x3e0   :  { %v704_v43 = vmul.f32 1.442695, %v691_v40 }
 0x3e1   :  { %v694_v44 = vmul.f32 1.442695, %v686_v42 }
 0x3e2   :  { %5911 = vpow2.f32 %v704_v43  ;;  %v685_v45 = vpop.xlane.xlu1 %684  ;;  %v670_v46 = vpop.xlane.xlu0 %669 }
 0x3e3   :  { %5913 = vpow2.f32 %v694_v44  ;;  %v693_v47 = vsub.f32 %v660_v20, %v685_v45  ;;  %v688_v36 = vsub.f32 %v655_v17, %v670_v46 }
 0x3e5   :  { %v708_v48 = vmul.f32 1.442695, %v693_v47  ;;  %v698_v49 = vmul.f32 1.442695, %v688_v36 }
 0x3e6   :  { %v676_v50 = vpop.xlane.xlu0 %675  ;;  %v751_v59 = vpop.permute.xlu1 %750 }
 0x3e7   :  { %v6288_v51 = vpop.eup %5907  ;;  %5915 = vpow2.f32 %v708_v48  ;;  %v690_v52 = vsub.f32 %v657_v24, %v676_v50  ;;  %v1132_v50 = vld [vmem:[%s6327_s12 + $0x18] sm:$0xff] }
 0x3e8   :  { %5917 = vpow2.f32 %v698_v49  ;;  %v713_v53 = vsel %vm661_vm2, %v6288_v51, 0.0 }
 0x3e9   :  { %v702_v55 = vmul.f32 1.442695, %v690_v52  ;;  %714 = vadd.xlane.f32.xlu1 %v713_v53  ;;  %v1130_v53 = vld [vmem:[%s6327_s12 + $0x8] sm:$0xff] }
 0x3ea   :  { %v682_v56 = vpop.xlane.xlu0 %681  ;;  %v840_v7 = vpop.permute.xlu1 %839 }
 0x3eb   :  { %5919 = vpow2.f32 %v702_v55  ;;  %v692_v57 = vsub.f32 %v659_v27, %v682_v56  ;;  %v1129_v56 = vld [vmem:[%s6327_s12] sm:$0xff] }
 0x3ec   :  { %v6292_v58 = vpop.eup %5909 }
 0x3ed   :  { %v706_v61 = vmul.f32 1.442695, %v692_v57  ;;  %v719_v62 = vsel %vm661_vm2, %v6292_v58, 0.0 }
 0x3ee   :  { %720 = vadd.xlane.f32.xlu1 %v719_v62  ;;  %v753_v63 = vpop.permute.xlu0 %752  ;;  %v838_v18 = vpop.permute.xlu1 %837 }
 0x3ef   :  { %v6296_v1 = vpop.eup %5911  ;;  %5921 = vpow2.f32 %v706_v61  ;;  %5486 = vmatprep.subr.mxu1 %v753_v63 }
 0x3f0   :  { %v5914_v2 = vpop.eup %5913  ;;  %5487 = vmatpush3.msra.mxu1 %v753_v63  ;;  %v725_v4 = vsel %vm661_vm2, %v6296_v1, 0.0 }
 0x3f1   :  { %5488 = vmatprep.subr.mxu1 %v751_v59  ;;  %v710_v5 = vsel %vm661_vm2, %v5914_v2, 0.0 }
 0x3f2   :  { %726 = vadd.xlane.f32.xlu1 %v725_v4  ;;  %711 = vadd.xlane.f32.xlu0 %v710_v5  ;;  %v927_v6 = vpop.permute.xlu0 %926  ;;  %v1014_v20 = vpop.permute.xlu1 %1013 }
 0x3f3   :  { %5489 = vmatpush3.msra.mxu1 %v751_v59  ;;  %5500 = vmatprep.subr.mxu0 %v927_v6 }
 0x3f4   :  { %v6301_v8 = vpop.eup %5915  ;;  %5493 = vmatprep.subr.mxu1 %v840_v7  ;;  %5501 = vmatpush3.msra.mxu0 %v927_v6 }
 0x3f5   :  { %v5918_v9 = vpop.eup %5917  ;;  %v731_v11 = vsel %vm661_vm2, %v6301_v8, 0.0 }
 0x3f6   :  { %732 = vadd.xlane.f32.xlu1 %v731_v11  ;;  %v716_v12 = vsel %vm661_vm2, %v5918_v9, 0.0 }
 0x3f7   :  { %717 = vadd.xlane.f32.xlu0 %v716_v12 }
 0x3f8   :  { %v5920_v14 = vpop.eup %5919 }
 0x3f9   :  { %v722_v15 = vsel %vm661_vm2, %v5920_v14, 0.0 }
 0x3fb   :  { %723 = vadd.xlane.f32.xlu0 %v722_v15 }
 0x3fc   :  { %v5922_v16 = vpop.eup %5921 }
 0x3fd   :  { %v728_v17 = vsel %vm661_vm2, %v5922_v16, 0.0 }
 0x3ff   :  { %729 = vadd.xlane.f32.xlu0 %v728_v17 }
 0x407   :  { %1011 = vrot.lane.b32.xlu1 %v6175_v38, %s6099_s5 }
 0x415   :  { %924 = vrot.lane.b32.xlu0 %v6175_v38, %s6100_s6 }
 0x472   :  { %v715_v21 = vpop.xlane.xlu1 %714 }
 0x473   :  { %5923 = vrcp.f32 %v715_v21 }
 0x477   :  { %v721_v22 = vpop.xlane.xlu1 %720 }
 0x47b   :  { %v712_v23 = vpop.xlane.xlu0 %711  ;;  %v727_v24 = vpop.xlane.xlu1 %726 }
 0x47c   :  { %5925 = vrcp.f32 %v712_v23 }
 0x47d   :  { %5927 = vrcp.f32 %v721_v22 }
 0x47f   :  { %v733_v28 = vpop.xlane.xlu1 %732 }
 0x480   :  { %v718_v26 = vpop.xlane.xlu0 %717  ;;  %v5924_v30 = vpop.eup %5923 }
 0x481   :  { %5929 = vrcp.f32 %v718_v26  ;;  %v743_v35 = vmul.f32 %v5924_v30, %v6288_v51  ;;  %v1131_v51 = vld [vmem:[%s6327_s12 + $0x10] sm:$0xff] }
 0x482   :  { %5931 = vrcp.f32 %v727_v24 }
 0x483   :  { %v1012_v44 = vpop.permute.xlu1 %1011 }
 0x484   :  { %v724_v27 = vpop.xlane.xlu0 %723 }
 0x485   :  { %5933 = vrcp.f32 %v724_v27 }
 0x486   :  { %5935 = vrcp.f32 %v733_v28 }
 0x488   :  { %v730_v29 = vpop.xlane.xlu0 %729 }
 0x489   :  { %5937 = vrcp.f32 %v730_v29  ;;  %v5926_v38 = vpop.eup %5925 }
 0x48a   :  { %v742_v32 = vmul.f32 %v5926_v38, %v5914_v2  ;;  %v5928_v37 = vpop.eup %5927 }
 0x48b   :  { %v745_v41 = vmul.f32 %v5928_v37, %v6292_v58 }
 0x48c   :  { %v925_v34 = vpop.permute.xlu0 %924  ;;  %5490 = vmatprep.mubr.msk.f32.mxu1 %vm661_vm2, %v742_v32 }
 0x48d   :  { %5502 = vmatprep.subr.mxu0 %v925_v34  ;;  %5491 = vmatmul.mubr.msk.f32.vlgmr.msra.gmra.mxu1 %vm661_vm2, %v743_v35 }
 0x48e   :  { %v5930_v39 = vpop.eup %5929  ;;  %5503 = vmatpush3.msra.mxu0 %v925_v34  ;;  %5494 = vmatpush3.msra.mxu1 %v840_v7 }
 0x48f   :  { %v744_v40 = vmul.f32 %v5930_v39, %v5918_v9  ;;  %5495 = vmatprep.subr.mxu1 %v838_v18  ;;  %v5932_v42 = vpop.eup %5931  ;;  %5514 = vmatprep.subr.mxu0 %v1132_v50  ;;  %v1269_v39 = vld [vmem:[%s6363_s29 + $0x10] sm:$0xff] }
 0x490   :  { %5496 = vmatpush3.msra.mxu1 %v838_v18  ;;  %v747_v46 = vmul.f32 %v5932_v42, %v6296_v1 }
 0x491   :  { %5497 = vmatprep.mubr.msk.f32.mxu1 %vm661_vm2, %v744_v40  ;;  %5507 = vmatprep.subr.mxu1 %v1014_v20  ;;  %v1268_v40 = vld [vmem:[%s6363_s29 + $0x8] sm:$0xff] }
 0x492   :  { %v5934_v43 = vpop.eup %5933  ;;  %5498 = vmatmul.mubr.msk.f32.vlgmr.msra.gmra.mxu1 %vm661_vm2, %v745_v41  ;;  %v1267_v41 = vld [vmem:[%s6363_s29] sm:$0xff] }
 0x493   :  { %5508 = vmatpush3.msra.mxu1 %v1014_v20  ;;  %v746_v45 = vmul.f32 %v5934_v43, %v5920_v14  ;;  %v5936_v47 = vpop.eup %5935 }
 0x494   :  { %5509 = vmatprep.subr.mxu1 %v1012_v44  ;;  %v749_v49 = vmul.f32 %v5936_v47, %v6301_v8 }
 0x495   :  { %5510 = vmatpush3.msra.mxu1 %v1012_v44  ;;  %5504 = vmatprep.mubr.msk.f32.mxu0 %vm661_vm2, %v746_v45 }
 0x496   :  { %v5938_v36 = vpop.eup %5937  ;;  %5505 = vmatmul.mubr.msk.f32.vlgmr.msra.gmra.mxu0 %vm661_vm2, %v747_v46 }
 0x497   :  { %v748_v48 = vmul.f32 %v5938_v36, %v5922_v16  ;;  %5515 = vmatpush3.msra.mxu0 %v1132_v50  ;;  %v5112_v16 = vld [vmem:[%s6350_s18] ss:$0 sm:$0xff] }
 0x498   :  { %5516 = vmatprep.subr.mxu0 %v1131_v51  ;;  %v5116_v50 = vld [vmem:[%s6377_s16] ss:$0 sm:$0xff] }
 0x499   :  { %5511 = vmatprep.mubr.msk.f32.mxu1 %vm661_vm2, %v748_v48  ;;  %5517 = vmatpush3.msra.mxu0 %v1131_v51  ;;  %v5115_v48 = vld [vmem:[%s6372_s7] ss:$0 sm:$0xff] }
 0x49a   :  { %5512 = vmatmul.mubr.msk.f32.vlgmr.msra.gmra.mxu1 %vm661_vm2, %v749_v49  ;;  %5518 = vmatprep.subr.mxu0 %v1130_v53 }
 0x49b   :  { %5519 = vmatpush3.msra.mxu0 %v1130_v53 }
 0x49c   :  { %5520 = vmatprep.subr.mxu0 %v1129_v56 }
 0x49d   :  { %5521 = vmatpush3.msra.mxu0 %v1129_v56 }
 0x54d   :  { %v5492_v52 = vpop.f32.mrf.mxu1 }
 0x54f   :  { %v828_v55 = vpop.f32.mrf.mxu1 }
 0x552   :  { %v5499_v57 = vpop.f32.mrf.mxu1 }
 0x553   :  { %1102 = vrot.lane.b32.xlu1 %v5499_v57, %s6086_s10 }
 0x554   :  { %v915_v58 = vpop.f32.mrf.mxu1 }
 0x555   :  { %1100 = vrot.lane.b32.xlu0 %v915_v58, %s6086_s10  ;;  %v1392_v58 = vld [vmem:[%s6392_s30 + $0x78] sm:$0xff] }
 0x556   :  { %v5506_v59 = vpop.f32.mrf.mxu0  ;;  %5536 = vmatprep.subr.mxu0 %v1392_v58 }
 0x557   :  { %1110 = vrot.lane.b32.xlu1 %v5506_v59, %s6102_s13  ;;  %v1391_v59 = vld [vmem:[%s6392_s30 + $0x70] sm:$0xff] }
 0x558   :  { %v1002_v61 = vpop.f32.mrf.mxu0 }
 0x559   :  { %1108 = vrot.lane.b32.xlu0 %v1002_v61, %s6102_s13  ;;  %v1390_v61 = vld [vmem:[%s6392_s30 + $0x68] sm:$0xff] }
 0x55a   :  { %v5513_v62 = vpop.f32.mrf.mxu1 }
 0x55b   :  { %1118 = vrot.lane.b32.xlu1 %v5513_v62, %s7076_s14  ;;  %v1389_v62 = vld [vmem:[%s6392_s30 + $0x60] sm:$0xff] }
 0x55c   :  { %v1089_v63 = vpop.f32.mrf.mxu1 }
 0x55d   :  { %1116 = vrot.lane.b32.xlu0 %v1089_v63, %s7076_s14  ;;  %v1388_v63 = vld [vmem:[%s6392_s30 + $0x58] sm:$0xff] }
 0x5c5   :  { %v1103_v1 = vpop.permute.xlu1 %1102 }
 0x5c6   :  { %v1123_v8 = vsel %vm288_vm1, %v5492_v52, %v1103_v1  ;;  %v1387_v1 = vld [vmem:[%s6392_s30 + $0x50] sm:$0xff] }
 0x5c7   :  { %v1101_v2 = vpop.permute.xlu0 %1100 }
 0x5c8   :  { %v1122_v6 = vsel %vm288_vm1, %v828_v55, %v1101_v2  ;;  %v1386_v2 = vld [vmem:[%s6392_s30 + $0x48] sm:$0xff] }
 0x5c9   :  { %v1111_v4 = vpop.permute.xlu1 %1110 }
 0x5ca   :  { %v1125_v12 = vsel %vm661_vm2, %v1123_v8, %v1111_v4  ;;  %v1385_v4 = vld [vmem:[%s6392_s30 + $0x40] sm:$0xff] }
 0x5cb   :  { %v1109_v5 = vpop.permute.xlu0 %1108  ;;  %v1381_v8 = vld [vmem:[%s6392_s30 + $0x20] sm:$0xff] }
 0x5cc   :  { %v1124_v9 = vsel %vm661_vm2, %v1122_v6, %v1109_v5  ;;  %v1384_v5 = vld [vmem:[%s6392_s30 + $0x38] sm:$0xff]  ;;  %v1383_v6 = vld [vmem:[%s6392_s30 + $0x30] sm:$0xff] }
 0x5cd   :  { %v1119_v7 = vpop.permute.xlu1 %1118 }
 0x5ce   :  { %v1128_v15 = vsel %vm1126_vm3, %v1125_v12, %v1119_v7  ;;  %v1382_v7 = vld [vmem:[%s6392_s30 + $0x28] sm:$0xff] }
 0x5cf   :  { %v1117_v11 = vpop.permute.xlu0 %1116  ;;  %v1378_v12 = vld [vmem:[%s6392_s30 + $0x8] sm:$0xff] }
 0x5d0   :  { %v1127_v14 = vsel %vm1126_vm3, %v1124_v9, %v1117_v11  ;;  %v1380_v9 = vld [vmem:[%s6392_s30 + $0x18] sm:$0xff]  ;;  %v1379_v11 = vld [vmem:[%s6392_s30 + $0x10] sm:$0xff] }
 0x5d1   :  { %5522 = vmatprep.mubr.msk.f32.mxu0 %vm138_vm0, %v1127_v14  ;;  %v1377_v14 = vld [vmem:[%s6392_s30] sm:$0xff] }
 0x5d2   :  { %5523 = vmatmul.mubr.msk.f32.vlgmr.msra.gmra.mxu0 %vm138_vm0, %v1128_v15  ;;  %v5117_v15 = vld [vmem:[%s6413_s11] ss:$0 sm:$0xff] }
 0x5d3   :  { %5537 = vmatpush3.msra.mxu0 %v1392_v58 }
 0x5d4   :  { %5538 = vmatprep.subr.mxu0 %v1391_v59 }
 0x5d5   :  { %5539 = vmatpush3.msra.mxu0 %v1391_v59 }
 0x5d6   :  { %5540 = vmatprep.subr.mxu0 %v1390_v61 }
 0x5d7   :  { %5541 = vmatpush3.msra.mxu0 %v1390_v61  ;;  %v5126_v61 = vld [vmem:[%s6146_s9 + $0x38] sm:$0xff] }
 0x5d8   :  { %5542 = vmatprep.subr.mxu0 %v1389_v62 }
 0x5d9   :  { %5543 = vmatpush3.msra.mxu0 %v1389_v62  ;;  %v5125_v62 = vld [vmem:[%s6146_s9 + $0x30] sm:$0xff] }
 0x5da   :  { %5544 = vmatprep.subr.mxu0 %v1388_v63 }
 0x5db   :  { %5545 = vmatpush3.msra.mxu0 %v1388_v63  ;;  %v5124_v63 = vld [vmem:[%s6146_s9 + $0x28] sm:$0xff] }
 0x5dc   :  { %5546 = vmatprep.subr.mxu0 %v1387_v1 }
 0x5dd   :  { %5547 = vmatpush3.msra.mxu0 %v1387_v1  ;;  %v5123_v1 = vld [vmem:[%s6146_s9 + $0x20] sm:$0xff]  ;;  %s6111_s9 = smov 21  }
 0x5de   :  { %5548 = vmatprep.subr.mxu0 %v1386_v2  ;;  %s6440_s14 = sld [smem:[%s7075_s0 + %s6111_s9]]  }
 0x5df   :  { %5549 = vmatpush3.msra.mxu0 %v1386_v2 }
 0x5e0   :  { %5550 = vmatprep.subr.mxu0 %v1385_v4 }
 0x5e1   :  { %5551 = vmatpush3.msra.mxu0 %v1385_v4 }
 0x5e2   :  { %5552 = vmatprep.subr.mxu0 %v1384_v5 }
 0x5e3   :  { %5553 = vmatpush3.msra.mxu0 %v1384_v5 }
 0x5e4   :  { %5554 = vmatprep.subr.mxu0 %v1383_v6 }
 0x5e5   :  { %5555 = vmatpush3.msra.mxu0 %v1383_v6 }
 0x5e6   :  { %5556 = vmatprep.subr.mxu0 %v1382_v7 }
 0x5e7   :  { %5557 = vmatpush3.msra.mxu0 %v1382_v7 }
 0x5e8   :  { %5558 = vmatprep.subr.mxu0 %v1381_v8 }
 0x5e9   :  { %5559 = vmatpush3.msra.mxu0 %v1381_v8 }
 0x5ea   :  { %5560 = vmatprep.subr.mxu0 %v1380_v9 }
 0x5eb   :  { %5561 = vmatpush3.msra.mxu0 %v1380_v9 }
 0x5ec   :  { %5562 = vmatprep.subr.mxu0 %v1379_v11 }
 0x5ed   :  { %5563 = vmatpush3.msra.mxu0 %v1379_v11  ;;  %v5121_v11 = vld [vmem:[%s6435_s15] ss:$0 sm:$0xff] }
 0x5ee   :  { %5564 = vmatprep.subr.mxu0 %v1378_v12 }
 0x5ef   :  { %5565 = vmatpush3.msra.mxu0 %v1378_v12 }
 0x5f0   :  { %5566 = vmatprep.subr.mxu0 %v1377_v14 }
 0x5f1   :  { %5567 = vmatpush3.msra.mxu0 %v1377_v14 }
 0x692   :  { %v5524_v17 = vpop.f32.mrf.mxu0 }
 0x693   :  { %v1218_v18 = vadd.f32 %v5524_v17, %v5112_v16 }
 0x694   :  { %v1212_v20 = vpop.f32.mrf.mxu0 }
 0x695   :  { %v1213_v21 = vadd.f32 %v5112_v16, %v1212_v20  ;;  %v1222_v22 = vadd.f32 %v1218_v18, %v6163_v33 }
 0x697   :  { %v1228_v23 = vsel %vm138_vm0, %v1222_v22, 0.0  ;;  %v1221_v24 = vadd.f32 %v1213_v21, %v6159_v31  ;;  %v1270_v31 = vld [vmem:[%s6363_s29 + $0x18] sm:$0xff] }
 0x698   :  { %1229 = vadd.xlane.f32.xlu1 %v1228_v23  ;;  %5525 = vmatprep.subr.mxu1 %v1270_v31 }
 0x699   :  { %v1225_v26 = vsel %vm138_vm0, %v1221_v24, 0.0  ;;  %5526 = vmatpush3.msra.mxu1 %v1270_v31 }
 0x69a   :  { %1226 = vadd.xlane.f32.xlu0 %v1225_v26  ;;  %5527 = vmatprep.subr.mxu1 %v1269_v39 }
 0x69b   :  { %5528 = vmatpush3.msra.mxu1 %v1269_v39 }
 0x69c   :  { %5529 = vmatprep.subr.mxu1 %v1268_v40 }
 0x69d   :  { %5530 = vmatpush3.msra.mxu1 %v1268_v40 }
 0x69e   :  { %5531 = vmatprep.subr.mxu1 %v1267_v41 }
 0x69f   :  { %5532 = vmatpush3.msra.mxu1 %v1267_v41  ;;  %v5120_v41 = vld [vmem:[%s6419_s20] ss:$0 sm:$0xff] }
 0x6a0   :  { %5571 = vmatprep.subr.mxu1 %v5126_v61 }
 0x721   :  { %v1230_v27 = vpop.xlane.xlu1 %1229 }
 0x722   :  { %v1232_v28 = vmul.f32 0.03125, %v1230_v27 }
 0x723   :  { %v1227_v29 = vpop.xlane.xlu0 %1226 }
 0x724   :  { %v1231_v30 = vmul.f32 0.03125, %v1227_v29  ;;  %v1234_v38 = vsub.f32 %v1222_v22, %v1232_v28 }
 0x726   :  { %v1233_v32 = vsub.f32 %v1221_v24, %v1231_v30  ;;  %v1236_v37 = vmul.f32 %v1234_v38, %v1234_v38 }
 0x728   :  { %v1235_v34 = vmul.f32 %v1233_v32, %v1233_v32  ;;  %v1240_v33 = vsel %vm138_vm0, %v1236_v37, 0.0 }
 0x72a   :  { %v1237_v35 = vsel %vm138_vm0, %v1235_v34, 0.0 }
 0x72b   :  { %1238 = vadd.xlane.f32.xlu0 %v1237_v35 }
 0x72f   :  { %1241 = vadd.xlane.f32.xlu0 %v1240_v33 }
 0x7b4   :  { %v1239_v42 = vpop.xlane.xlu0 %1238 }
 0x7b5   :  { %v1243_v43 = vmul.f32 0.03125, %v1239_v42 }
 0x7b7   :  { %v1245_v44 = vadd.f32 1e-12, %v1243_v43 }
 0x7b8   :  { %v1242_v45 = vpop.xlane.xlu0 %1241 }
 0x7b9   :  { %5939 = vrsqrt.f32 %v1245_v44  ;;  %v1244_v46 = vmul.f32 0.03125, %v1242_v45 }
 0x7bb   :  { %v1246_v47 = vadd.f32 1e-12, %v1244_v46 }
 0x7bd   :  { %5941 = vrsqrt.f32 %v1246_v47 }
 0x7c6   :  { %v5940_v36 = vpop.eup %5939 }
 0x7c7   :  { %v1249_v49 = vmul.f32 %v5940_v36, %v1233_v32 }
 0x7c9   :  { %v1257_v51 = vmul.f32 %v5115_v48, %v1249_v49 }
 0x7ca   :  { %v5942_v52 = vpop.eup %5941 }
 0x7cb   :  { %v1250_v53 = vmul.f32 %v5942_v52, %v1234_v38  ;;  %v6381_v55 = vadd.f32 %v5116_v50, %v1257_v51 }
 0x7cd   :  { %v1258_v56 = vmul.f32 %v5115_v48, %v1250_v53  ;;  %5533 = vmatprep.mubr.msk.f32.mxu1 %vm138_vm0, %v6381_v55 }
 0x7cf   :  { %v6385_v57 = vadd.f32 %v5116_v50, %v1258_v56 }
 0x7d1   :  { %5534 = vmatmul.mubr.msk.f32.vlgmr.msra.gmra.mxu1 %vm138_vm0, %v6385_v57 }
 0x7d2   :  { %5572 = vmatpush3.msra.mxu1 %v5126_v61 }
 0x7d3   :  { %5573 = vmatprep.subr.mxu1 %v5125_v62 }
 0x7d4   :  { %5574 = vmatpush3.msra.mxu1 %v5125_v62 }
 0x7d5   :  { %5575 = vmatprep.subr.mxu1 %v5124_v63 }
 0x7d6   :  { %5576 = vmatpush3.msra.mxu1 %v5124_v63 }
 0x7d7   :  { %5577 = vmatprep.subr.mxu1 %v5123_v1 }
 0x7d8   :  { %5578 = vmatpush3.msra.mxu1 %v5123_v1 }
 0x891   :  { %v5535_v16 = vpop.f32.mrf.mxu1 }
 0x892   :  { %v1356_v17 = vadd.f32 %v5535_v16, %v5117_v15 }
 0x893   :  { %v1350_v18 = vpop.f32.mrf.mxu1 }
 0x894   :  { %v1362_v20 = vmul.f32 0.044715, %v1356_v17  ;;  %v1351_v21 = vadd.f32 %v5117_v15, %v1350_v18  ;;  %v1360_v31 = vmul.f32 0.5, %v1356_v17 }
 0x896   :  { %v1364_v22 = vmul.f32 %v1362_v20, %v1356_v17  ;;  %v1361_v23 = vmul.f32 0.044715, %v1351_v21  ;;  %v1359_v37 = vmul.f32 0.5, %v1351_v21 }
 0x898   :  { %v1366_v24 = vmul.f32 %v1364_v22, %v1356_v17  ;;  %v1363_v26 = vmul.f32 %v1361_v23, %v1351_v21  ;;  %v5128_v22 = vld [vmem:[%s6170_s21 + $0x1] ss:$0 sm:$0xff]  ;;  %s7078_s21 = smov 24  }
 0x89a   :  { %v1368_v27 = vadd.f32 %v1366_v24, %v1356_v17  ;;  %v1365_v28 = vmul.f32 %v1363_v26, %v1351_v21  ;;  %v5122_v17 = vld [vmem:[%s6440_s14] ss:$0 sm:$0xff] }
 0x89c   :  { %v1367_v29 = vadd.f32 %v1365_v28, %v1351_v21  ;;  %v1370_v30 = vmul.f32 0.7978846, %v1368_v27 }
 0x89e   :  { %v1369_v38 = vmul.f32 0.7978846, %v1367_v29  ;;  %5943 = vtanh.f32 %v1370_v30 }
 0x8a0   :  { %5945 = vtanh.f32 %v1369_v38 }
 0x8ab   :  { %v5944_v32 = vpop.eup %5943 }
 0x8ac   :  { %v1374_v35 = vadd.f32 1.0, %v5944_v32 }
 0x8ad   :  { %v5946_v34 = vpop.eup %5945 }
 0x8ae   :  { %v1373_v33 = vadd.f32 1.0, %v5946_v34  ;;  %v1376_v40 = vmul.f32 %v1374_v35, %v1360_v31 }
 0x8b0   :  { %v1375_v39 = vmul.f32 %v1373_v33, %v1359_v37 }
 0x8b2   :  { %5568 = vmatprep.mubr.f32.mxu0 %v1375_v39 }
 0x8b3   :  { %5569 = vmatmul.mubr.f32.vlgmr.msra.gmra.mxu0 %v1376_v40 }
 0x973   :  { %v5570_v42 = vpop.f32.mrf.mxu0 }
 0x974   :  { %v1472_v43 = vadd.f32 %v5570_v42, %v5120_v41 }
 0x975   :  { %v1466_v44 = vpop.f32.mrf.mxu0 }
 0x976   :  { %v1467_v45 = vadd.f32 %v5120_v41, %v1466_v44  ;;  %v1476_v46 = vadd.f32 %v1472_v43, %v6385_v57 }
 0x978   :  { %v1482_v47 = vsel %vm138_vm0, %v1476_v46, 0.0  ;;  %v1475_v36 = vadd.f32 %v1467_v45, %v6381_v55 }
 0x979   :  { %1483 = vadd.xlane.f32.xlu1 %v1482_v47 }
 0x97a   :  { %v1479_v48 = vsel %vm138_vm0, %v1475_v36, 0.0 }
 0x97b   :  { %1480 = vadd.xlane.f32.xlu0 %v1479_v48 }
 0xa02   :  { %v1484_v49 = vpop.xlane.xlu1 %1483 }
 0xa03   :  { %v1486_v50 = vmul.f32 0.03125, %v1484_v49 }
 0xa04   :  { %v1481_v51 = vpop.xlane.xlu0 %1480 }
 0xa05   :  { %v1488_v52 = vsub.f32 %v1476_v46, %v1486_v50  ;;  %v1485_v53 = vmul.f32 0.03125, %v1481_v51 }
 0xa07   :  { %v1487_v56 = vsub.f32 %v1475_v36, %v1485_v53  ;;  %v1490_v58 = vmul.f32 %v1488_v52, %v1488_v52 }
 0xa09   :  { %v1494_v57 = vsel %vm138_vm0, %v1490_v58, 0.0  ;;  %v1489_v59 = vmul.f32 %v1487_v56, %v1487_v56 }
 0xa0a   :  { %1495 = vadd.xlane.f32.xlu1 %v1494_v57 }
 0xa0b   :  { %v1491_v55 = vsel %vm138_vm0, %v1489_v59, 0.0 }
 0xa0c   :  { %1492 = vadd.xlane.f32.xlu0 %v1491_v55 }
 0xa93   :  { %v1496_v2 = vpop.xlane.xlu1 %1495 }
 0xa94   :  { %v1498_v4 = vmul.f32 0.03125, %v1496_v2 }
 0xa95   :  { %v1493_v5 = vpop.xlane.xlu0 %1492 }
 0xa96   :  { %v1500_v6 = vadd.f32 1e-12, %v1498_v4  ;;  %v1497_v7 = vmul.f32 0.03125, %v1493_v5 }
 0xa98   :  { %5947 = vrsqrt.f32 %v1500_v6  ;;  %v1499_v8 = vadd.f32 1e-12, %v1497_v7 }
 0xa9a   :  { %5949 = vrsqrt.f32 %v1499_v8 }
 0xaa5   :  { %v5948_v9 = vpop.eup %5947 }
 0xaa6   :  { %v1504_v12 = vmul.f32 %v5948_v9, %v1488_v52 }
 0xaa7   :  { %v5950_v14 = vpop.eup %5949 }
 0xaa8   :  { %v1503_v15 = vmul.f32 %v5950_v14, %v1487_v56  ;;  %v1512_v16 = vmul.f32 %v5121_v11, %v1504_v12 }
 0xaaa   :  { %v1511_v18 = vmul.f32 %v5121_v11, %v1503_v15  ;;  %v6446_v21 = vadd.f32 %v5122_v17, %v1512_v16 }
 0xaac   :  { %v6444_v20 = vadd.f32 %v5122_v17, %v1511_v18 }
 0xaae   :  { %5579 = vmatprep.mubr.msk.f32.mxu1 %vm138_vm0, %v6444_v20 }
 0xaaf   :  { %5580 = vmatmul.mubr.msk.f32.vlgmr.msra.gmra.mxu1 %vm138_vm0, %v6446_v21 }
 0xb6f   :  { %v5581_v23 = vpop.f32.mrf.mxu1 }
 0xb70   :  { %v6453_v24 = vadd.f32 %v5581_v23, %v5128_v22 }
 0xb71   :  { %v1606_v26 = vpop.f32.mrf.mxu1 }
 0xb72   :  { %v6455_v27 = vadd.f32 %v5128_v22, %v1606_v26  ;;  %1710 = vrot.lane.b32.xlu1 %v6453_v24, %s6089_s22  ;;  %1619 = vrot.lane.b32.xlu0 %v6453_v24, %s6090_s23 }
 0xb74   :  { %5586 = vmatprep.mubr.msk.f32.mxu1 %vm288_vm1, %v6455_v27 }
 0xb76   :  { %1706 = vrot.lane.b32.xlu0 %v6453_v24, %s6091_s24  ;;  %1617 = vrot.lane.b32.xlu1 %v6455_v27, %s6090_s23 }
 0xb7a   :  { %1704 = vrot.lane.b32.xlu0 %v6455_v27, %s6091_s24  ;;  %1801 = vrot.lane.b32.xlu1 %v6453_v24, %s6092_s25 }
 0xb7e   :  { %1799 = vrot.lane.b32.xlu0 %v6455_v27, %s6092_s25  ;;  %1708 = vrot.lane.b32.xlu1 %v6455_v27, %s6089_s22  ;;  %s6122_s22 = smov 4  }
 0xb82   :  { %1795 = vrot.lane.b32.xlu0 %v6455_v27, %s6093_s26  ;;  %1892 = vrot.lane.b32.xlu1 %v6453_v24, %s6094_s27 }
 0xb86   :  { %1886 = vrot.lane.b32.xlu0 %v6455_v27, %s6095_s28  ;;  %1797 = vrot.lane.b32.xlu1 %v6453_v24, %s6093_s26 }
 0xb8a   :  { %1890 = vrot.lane.b32.xlu1 %v6455_v27, %s6094_s27  ;;  %s5054_s27 = sld [smem:[%s7075_s0 + %s6122_s22]]  }
 0xb8e   :  { %1888 = vrot.lane.b32.xlu1 %v6453_v24, %s6095_s28  ;;  %s6123_s28 = smov 5  }
 0xbe4   :  { %v1711_v28 = vpop.permute.xlu1 %1710  ;;  %v1620_v29 = vpop.permute.xlu0 %1619 }
 0xbe5   :  { %5582 = vmatprep.subr.msk.mxu1 %vm288_vm1, %v1620_v29 }
 0xbe6   :  { %5583 = vmatpush3.xpose.msk.msra.mxu1 %vm288_vm1, %v1620_v29 }
 0xbe8   :  { %v1707_v30 = vpop.permute.xlu0 %1706  ;;  %v1618_v38 = vpop.permute.xlu1 %1617 }
 0xbe9   :  { %5584 = vmatprep.subr.msk.mxu1 %vm288_vm1, %v1618_v38 }
 0xbea   :  { %5585 = vmatpush3.xpose.msk.msra.mxu1 %vm288_vm1, %v1618_v38 }
 0xbeb   :  { %5589 = vmatprep.subr.msk.mxu1 %vm288_vm1, %v1711_v28 }
 0xbec   :  { %v1705_v32 = vpop.permute.xlu0 %1704  ;;  %v1802_v34 = vpop.permute.xlu1 %1801 }
 0xbed   :  { %5587 = vmatmul.mubr.msk.f32.vlgmr.msra.gmra.mxu1 %vm288_vm1, %v6453_v24 }
 0xbee   :  { %5590 = vmatpush3.xpose.msk.msra.mxu1 %vm288_vm1, %v1711_v28  ;;  %5593 = vmatprep.mubr.msk.f32.mxu1 %vm288_vm1, %v1705_v32 }
 0xbf0   :  { %v1800_v35 = vpop.permute.xlu0 %1799  ;;  %v1709_v37 = vpop.permute.xlu1 %1708 }
 0xbf1   :  { %5591 = vmatprep.subr.msk.mxu1 %vm288_vm1, %v1709_v37 }
 0xbf2   :  { %5592 = vmatpush3.xpose.msk.msra.mxu1 %vm288_vm1, %v1709_v37 }
 0xbf3   :  { %5596 = vmatprep.subr.msk.mxu1 %vm288_vm1, %v1802_v34 }
 0xbf4   :  { %v1796_v33 = vpop.permute.xlu0 %1795  ;;  %v1893_v31 = vpop.permute.xlu1 %1892 }
 0xbf5   :  { %5594 = vmatmul.mubr.msk.f32.vlgmr.msra.gmra.mxu1 %vm288_vm1, %v1707_v30  ;;  %5603 = vmatprep.subr.msk.mxu0 %vm288_vm1, %v1893_v31 }
 0xbf6   :  { %5597 = vmatpush3.xpose.msk.msra.mxu1 %vm288_vm1, %v1802_v34  ;;  %5600 = vmatprep.mubr.msk.f32.mxu1 %vm288_vm1, %v1796_v33 }
 0xbf7   :  { %5604 = vmatpush3.xpose.msk.msra.mxu0 %vm288_vm1, %v1893_v31  ;;  %5598 = vmatprep.subr.msk.mxu1 %vm288_vm1, %v1800_v35 }
 0xbf8   :  { %v1887_v39 = vpop.permute.xlu0 %1886  ;;  %v1798_v40 = vpop.permute.xlu1 %1797 }
 0xbf9   :  { %5607 = vmatprep.mubr.msk.f32.mxu0 %vm288_vm1, %v1887_v39 }
 0xbfa   :  { %5599 = vmatpush3.xpose.msk.msra.mxu1 %vm288_vm1, %v1800_v35 }
 0xbfc   :  { %v1891_v41 = vpop.permute.xlu1 %1890 }
 0xbfd   :  { %5601 = vmatmul.mubr.msk.f32.vlgmr.msra.gmra.mxu1 %vm288_vm1, %v1798_v40  ;;  %5605 = vmatprep.subr.msk.mxu0 %vm288_vm1, %v1891_v41 }
 0xbfe   :  { %5606 = vmatpush3.xpose.msk.msra.mxu0 %vm288_vm1, %v1891_v41 }
 0xc00   :  { %v1889_v42 = vpop.permute.xlu1 %1888 }
 0xc01   :  { %5608 = vmatmul.mubr.msk.f32.vlgmr.msra.gmra.mxu0 %vm288_vm1, %v1889_v42 }
 0xcad   :  { %v5588_v43 = vpop.f32.mrf.mxu1 }
 0xcae   :  { %v1978_v44 = vmul.f32 0.35355338, %v5588_v43 }
 0xcaf   :  { %v1695_v45 = vpop.f32.mrf.mxu1 }
 0xcb0   :  { %v1977_v46 = vmul.f32 0.35355338, %v1695_v45  ;;  %v1986_v47 = vadd.f32 %v1978_v44, %v6237_v54 }
 0xcb2   :  { %v1996_v36 = vsel %vm661_vm2, %v1986_v47, -inf  ;;  %v1985_v48 = vadd.f32 %v1977_v46, %v6245_v0 }
 0xcb3   :  { %1997 = vmax.xlane.f32.xlu1 %v1996_v36 }
 0xcb4   :  { %v1993_v49 = vsel %vm661_vm2, %v1985_v48, -inf }
 0xcb5   :  { %1994 = vmax.xlane.f32.xlu0 %v1993_v49  ;;  %v5595_v50 = vpop.f32.mrf.mxu1 }
 0xcb6   :  { %v1980_v51 = vmul.f32 0.35355338, %v5595_v50 }
 0xcb7   :  { %v1786_v52 = vpop.f32.mrf.mxu1 }
 0xcb8   :  { %v1979_v53 = vmul.f32 0.35355338, %v1786_v52  ;;  %v1988_v56 = vadd.f32 %v1980_v51, %v6242_v60 }
 0xcba   :  { %v2002_v58 = vsel %vm661_vm2, %v1988_v56, -inf  ;;  %v1987_v57 = vadd.f32 %v1979_v53, %v6255_v10 }
 0xcbb   :  { %2003 = vmax.xlane.f32.xlu0 %v2002_v58 }
 0xcbc   :  { %v1999_v55 = vsel %vm661_vm2, %v1987_v57, -inf }
 0xcbd   :  { %v5602_v54 = vpop.f32.mrf.mxu1 }
 0xcbe   :  { %v1982_v59 = vmul.f32 0.35355338, %v5602_v54 }
 0xcbf   :  { %2000 = vmax.xlane.f32.xlu0 %v1999_v55  ;;  %v1877_v0 = vpop.f32.mrf.mxu1 }
 0xcc0   :  { %v1981_v61 = vmul.f32 0.35355338, %v1877_v0  ;;  %v1990_v62 = vadd.f32 %v1982_v59, %v6249_v3 }
 0xcc1   :  { %v5609_v63 = vpop.f32.mrf.mxu0 }
 0xcc2   :  { %v1984_v1 = vmul.f32 0.35355338, %v5609_v63  ;;  %v2008_v2 = vsel %vm661_vm2, %v1990_v62, -inf  ;;  %v1989_v60 = vadd.f32 %v1981_v61, %v6264_v19 }
 0xcc3   :  { %v1968_v4 = vpop.f32.mrf.mxu0  ;;  %2009 = vmax.xlane.f32.xlu1 %v2008_v2 }
 0xcc4   :  { %v1983_v5 = vmul.f32 0.35355338, %v1968_v4  ;;  %v2005_v10 = vsel %vm661_vm2, %v1989_v60, -inf  ;;  %v1992_v6 = vadd.f32 %v1984_v1, %v6259_v13 }
 0xcc5   :  { %2006 = vmax.xlane.f32.xlu0 %v2005_v10 }
 0xcc6   :  { %v2014_v7 = vsel %vm661_vm2, %v1992_v6, -inf  ;;  %v1991_v8 = vadd.f32 %v1983_v5, %v6271_v25 }
 0xcc7   :  { %2015 = vmax.xlane.f32.xlu1 %v2014_v7 }
 0xcc8   :  { %v2011_v3 = vsel %vm661_vm2, %v1991_v8, -inf }
 0xcc9   :  { %2012 = vmax.xlane.f32.xlu0 %v2011_v3 }
 0xcd8   :  { %2081 = vrot.lane.b32.xlu1 %v6455_v27, %s6097_s3 }
 0xcdc   :  { %2170 = vrot.lane.b32.xlu1 %v6453_v24, %s6098_s4 }
 0xcdf   :  { %2083 = vrot.lane.b32.xlu0 %v6453_v24, %s6097_s3 }
 0xce0   :  { %2168 = vrot.lane.b32.xlu1 %v6455_v27, %s6098_s4  ;;  %s5074_s4 = sld [smem:[%s7075_s0 + %s7078_s21]]  }
 0xce3   :  { %2257 = vrot.lane.b32.xlu0 %v6453_v24, %s6100_s6 }
 0xce4   :  { %2344 = vrot.lane.b32.xlu1 %v6453_v24, %s6099_s5 }
 0xd3c   :  { %v1998_v13 = vpop.xlane.xlu1 %1997 }
 0xd3d   :  { %v2018_v19 = vsub.f32 %v1986_v47, %v1998_v13 }
 0xd3e   :  { %v1995_v25 = vpop.xlane.xlu0 %1994 }
 0xd3f   :  { %v2027_v9 = vmul.f32 1.442695, %v2018_v19  ;;  %v2017_v11 = vsub.f32 %v1985_v48, %v1995_v25 }
 0xd41   :  { %5951 = vpow2.f32 %v2027_v9  ;;  %v2025_v12 = vmul.f32 1.442695, %v2017_v11 }
 0xd43   :  { %5953 = vpow2.f32 %v2025_v12 }
 0xd44   :  { %v2004_v14 = vpop.xlane.xlu0 %2003 }
 0xd45   :  { %v2020_v18 = vsub.f32 %v1988_v56, %v2004_v14 }
 0xd47   :  { %v2031_v38 = vmul.f32 1.442695, %v2020_v18  ;;  %v5158_v18 = vld [vmem:[%s6327_s12 + $0x38] sm:$0xff] }
 0xd48   :  { %v2001_v15 = vpop.xlane.xlu0 %2000 }
 0xd49   :  { %v2019_v28 = vsub.f32 %v1987_v57, %v2001_v15 }
 0xd4b   :  { %v2029_v31 = vmul.f32 1.442695, %v2019_v28  ;;  %v5155_v28 = vld [vmem:[%s6327_s12 + $0x20] sm:$0xff] }
 0xd4c   :  { %v2010_v16 = vpop.xlane.xlu1 %2009 }
 0xd4d   :  { %v2022_v34 = vsub.f32 %v1990_v62, %v2010_v16 }
 0xd4e   :  { %v6539_v17 = vpop.eup %5951  ;;  %v2007_v22 = vpop.xlane.xlu0 %2006 }
 0xd4f   :  { %v2044_v23 = vsel %vm661_vm2, %v6539_v17, 0.0  ;;  %v2021_v39 = vsub.f32 %v1989_v60, %v2007_v22  ;;  %v2035_v42 = vmul.f32 1.442695, %v2022_v34 }
 0xd50   :  { %v5954_v26 = vpop.eup %5953  ;;  %2045 = vadd.xlane.f32.xlu1 %v2044_v23  ;;  %v2016_v24 = vpop.xlane.xlu1 %2015  ;;  %v5157_v23 = vld [vmem:[%s6327_s12 + $0x30] sm:$0xff] }
 0xd51   :  { %v2024_v29 = vsub.f32 %v1992_v6, %v2016_v24  ;;  %v2041_v30 = vsel %vm661_vm2, %v5954_v26, 0.0  ;;  %v2033_v43 = vmul.f32 1.442695, %v2021_v39 }
 0xd52   :  { %2042 = vadd.xlane.f32.xlu0 %v2041_v30  ;;  %v2013_v32 = vpop.xlane.xlu0 %2012 }
 0xd53   :  { %v2039_v35 = vmul.f32 1.442695, %v2024_v29  ;;  %v2023_v37 = vsub.f32 %v1991_v8, %v2013_v32 }
 0xd54   :  { %v2082_v33 = vpop.permute.xlu1 %2081 }
 0xd55   :  { %5955 = vpow2.f32 %v2039_v35  ;;  %v2037_v40 = vmul.f32 1.442695, %v2023_v37 }
 0xd56   :  { %5957 = vpow2.f32 %v2031_v38  ;;  %v2084_v41 = vpop.permute.xlu0 %2083 }
 0xd57   :  { %5959 = vpow2.f32 %v2037_v40  ;;  %5610 = vmatprep.subr.mxu1 %v2084_v41 }
 0xd58   :  { %5611 = vmatpush3.msra.mxu1 %v2084_v41  ;;  %5961 = vpow2.f32 %v2029_v31  ;;  %v2171_v44 = vpop.permute.xlu1 %2170 }
 0xd59   :  { %5612 = vmatprep.subr.mxu1 %v2082_v33  ;;  %5963 = vpow2.f32 %v2035_v42 }
 0xd5a   :  { %5613 = vmatpush3.msra.mxu1 %v2082_v33  ;;  %v2258_v45 = vpop.permute.xlu0 %2257  ;;  %5965 = vpow2.f32 %v2033_v43 }
 0xd5b   :  { %5617 = vmatprep.subr.mxu1 %v2171_v44  ;;  %5624 = vmatprep.subr.mxu0 %v2258_v45 }
 0xd5c   :  { %5625 = vmatpush3.msra.mxu0 %v2258_v45  ;;  %v2169_v54 = vpop.permute.xlu1 %2168 }
 0xd60   :  { %v2345_v59 = vpop.permute.xlu1 %2344 }
 0xd62   :  { %v6544_v46 = vpop.eup %5955 }
 0xd63   :  { %v5958_v47 = vpop.eup %5957  ;;  %v2062_v36 = vsel %vm661_vm2, %v6544_v46, 0.0 }
 0xd64   :  { %v5960_v48 = vpop.eup %5959  ;;  %2063 = vadd.xlane.f32.xlu1 %v2062_v36  ;;  %v2050_v51 = vsel %vm661_vm2, %v5958_v47, 0.0  ;;  %v5160_v36 = vld [vmem:[%s6350_s18 + $0x1] ss:$0 sm:$0xff] }
 0xd65   :  { %v2059_v49 = vsel %vm661_vm2, %v5960_v48, 0.0  ;;  %v5962_v50 = vpop.eup %5961 }
 0xd66   :  { %2060 = vadd.xlane.f32.xlu0 %v2059_v49  ;;  %v5964_v52 = vpop.eup %5963  ;;  %v2047_v53 = vsel %vm661_vm2, %v5962_v50, 0.0 }
 0xd67   :  { %v5966_v56 = vpop.eup %5965  ;;  %v2056_v58 = vsel %vm661_vm2, %v5964_v52, 0.0 }
 0xd68   :  { %2051 = vadd.xlane.f32.xlu1 %v2050_v51  ;;  %v2053_v57 = vsel %vm661_vm2, %v5966_v56, 0.0 }
 0xd6a   :  { %2048 = vadd.xlane.f32.xlu0 %v2047_v53 }
 0xd6c   :  { %2057 = vadd.xlane.f32.xlu1 %v2056_v58 }
 0xd6e   :  { %2054 = vadd.xlane.f32.xlu0 %v2053_v57 }
 0xd7d   :  { %2342 = vrot.lane.b32.xlu1 %v6455_v27, %s6099_s5  ;;  %s6115_s5 = smov 23  }
 0xd84   :  { %2255 = vrot.lane.b32.xlu0 %v6455_v27, %s6100_s6  ;;  %s5055_s6 = sld [smem:[%s7075_s0 + %s6123_s28]]  }
 0xdd9   :  { %v2046_v55 = vpop.xlane.xlu1 %2045 }
 0xdda   :  { %5967 = vrcp.f32 %v2046_v55 }
 0xddb   :  { %v2043_v0 = vpop.xlane.xlu0 %2042 }
 0xddc   :  { %5969 = vrcp.f32 %v2043_v0 }
 0xde7   :  { %v5968_v61 = vpop.eup %5967 }
 0xde8   :  { %v2074_v1 = vmul.f32 %v5968_v61, %v6539_v17 }
 0xde9   :  { %v5970_v62 = vpop.eup %5969 }
 0xdea   :  { %v2073_v63 = vmul.f32 %v5970_v62, %v5954_v26  ;;  %v5156_v26 = vld [vmem:[%s6327_s12 + $0x28] sm:$0xff]  ;;  %s6124_s12 = smov 6  }
 0xdeb   :  { %s6910_s18 = sld [smem:[%s7075_s0 + %s6124_s12]]  }
 0xdec   :  { %5614 = vmatprep.mubr.msk.f32.mxu1 %vm661_vm2, %v2073_v63 }
 0xded   :  { %v2064_v2 = vpop.xlane.xlu1 %2063  ;;  %5615 = vmatmul.mubr.msk.f32.vlgmr.msra.gmra.mxu1 %vm661_vm2, %v2074_v1  ;;  %v5170_v1 = vld [vmem:[%s6363_s29 + $0x38] sm:$0xff] }
 0xdee   :  { %5618 = vmatpush3.msra.mxu1 %v2171_v44 }
 0xdef   :  { %5619 = vmatprep.subr.mxu1 %v2169_v54  ;;  %v2061_v60 = vpop.xlane.xlu0 %2060 }
 0xdf0   :  { %5620 = vmatpush3.msra.mxu1 %v2169_v54  ;;  %5971 = vrcp.f32 %v2061_v60  ;;  %v5168_v60 = vld [vmem:[%s6363_s29 + $0x28] sm:$0xff] }
 0xdf1   :  { %5631 = vmatprep.subr.mxu1 %v2345_v59  ;;  %v2052_v27 = vpop.xlane.xlu1 %2051 }
 0xdf2   :  { %5973 = vrcp.f32 %v2052_v27  ;;  %v5167_v27 = vld [vmem:[%s6363_s29 + $0x20] sm:$0xff] }
 0xdf3   :  { %v2049_v4 = vpop.xlane.xlu0 %2048 }
 0xdf4   :  { %5975 = vrcp.f32 %v2049_v4 }
 0xdf5   :  { %v2058_v5 = vpop.xlane.xlu1 %2057  ;;  %5977 = vrcp.f32 %v2064_v2  ;;  %v5169_v2 = vld [vmem:[%s6363_s29 + $0x30] sm:$0xff]  ;;  %s6125_s29 = smov 2  }
 0xdf6   :  { %5979 = vrcp.f32 %v2058_v5 }
 0xdf7   :  { %v2055_v10 = vpop.xlane.xlu0 %2054 }
 0xdf8   :  { %5981 = vrcp.f32 %v2055_v10 }
 0xdf9   :  { %v2343_v14 = vpop.permute.xlu1 %2342 }
 0xdfb   :  { %v2256_v6 = vpop.permute.xlu0 %2255 }
 0xdfc   :  { %5626 = vmatprep.subr.mxu0 %v2256_v6 }
 0xdfd   :  { %5627 = vmatpush3.msra.mxu0 %v2256_v6  ;;  %v5972_v7 = vpop.eup %5971 }
 0xdfe   :  { %v2079_v11 = vmul.f32 %v5972_v7, %v5960_v48  ;;  %5638 = vmatprep.subr.mxu0 %v5158_v18 }
 0xdff   :  { %v5974_v8 = vpop.eup %5973 }
 0xe00   :  { %v2076_v25 = vmul.f32 %v5974_v8, %v5958_v47 }
 0xe01   :  { %v5976_v3 = vpop.eup %5975 }
 0xe02   :  { %v2075_v13 = vmul.f32 %v5976_v3, %v5962_v50  ;;  %v5978_v19 = vpop.eup %5977 }
 0xe03   :  { %v5980_v9 = vpop.eup %5979  ;;  %v2080_v17 = vmul.f32 %v5978_v19, %v6544_v46 }
 0xe04   :  { %5621 = vmatprep.mubr.msk.f32.mxu1 %vm661_vm2, %v2075_v13  ;;  %v2078_v16 = vmul.f32 %v5980_v9, %v5964_v52  ;;  %v5165_v13 = vld [vmem:[%s6372_s7 + $0x1] ss:$0 sm:$0xff] }
 0xe05   :  { %v5982_v12 = vpop.eup %5981  ;;  %5622 = vmatmul.mubr.msk.f32.vlgmr.msra.gmra.mxu1 %vm661_vm2, %v2076_v25  ;;  %v5166_v25 = vld [vmem:[%s6377_s16 + $0x1] ss:$0 sm:$0xff]  ;;  %s6916_s16 = sld [smem:[%s7075_s0 + %s6125_s29]]  }
 0xe06   :  { %5632 = vmatpush3.msra.mxu1 %v2345_v59  ;;  %5635 = vmatprep.mubr.msk.f32.mxu1 %vm661_vm2, %v2079_v11  ;;  %v2077_v15 = vmul.f32 %v5982_v12, %v5966_v56 }
 0xe07   :  { %5633 = vmatprep.subr.mxu1 %v2343_v14 }
 0xe08   :  { %5634 = vmatpush3.msra.mxu1 %v2343_v14  ;;  %5628 = vmatprep.mubr.msk.f32.mxu0 %vm661_vm2, %v2077_v15 }
 0xe09   :  { %5629 = vmatmul.mubr.msk.f32.vlgmr.msra.gmra.mxu0 %vm661_vm2, %v2078_v16  ;;  %5636 = vmatmul.mubr.msk.f32.vlgmr.msra.gmra.mxu1 %vm661_vm2, %v2080_v17  ;;  %v5190_v17 = vld [vmem:[%s6392_s30 + $0xf8] sm:$0xff] }
 0xe0a   :  { %5639 = vmatpush3.msra.mxu0 %v5158_v18  ;;  %5649 = vmatprep.subr.mxu1 %v5170_v1  ;;  %v5189_v18 = vld [vmem:[%s6392_s30 + $0xf0] sm:$0xff] }
 0xe0b   :  { %5640 = vmatprep.subr.mxu0 %v5157_v23  ;;  %5650 = vmatpush3.msra.mxu1 %v5170_v1 }
 0xe0c   :  { %5641 = vmatpush3.msra.mxu0 %v5157_v23  ;;  %5651 = vmatprep.subr.mxu1 %v5169_v2  ;;  %v5187_v23 = vld [vmem:[%s6392_s30 + $0xe0] sm:$0xff] }
 0xe0d   :  { %5642 = vmatprep.subr.mxu0 %v5156_v26  ;;  %5652 = vmatpush3.msra.mxu1 %v5169_v2 }
 0xe0e   :  { %5643 = vmatpush3.msra.mxu0 %v5156_v26  ;;  %5653 = vmatprep.subr.mxu1 %v5168_v60  ;;  %v5186_v26 = vld [vmem:[%s6392_s30 + $0xd8] sm:$0xff] }
 0xe0f   :  { %5644 = vmatprep.subr.mxu0 %v5155_v28  ;;  %5654 = vmatpush3.msra.mxu1 %v5168_v60 }
 0xe10   :  { %5645 = vmatpush3.msra.mxu0 %v5155_v28  ;;  %5655 = vmatprep.subr.mxu1 %v5167_v27  ;;  %v5184_v28 = vld [vmem:[%s6392_s30 + $0xc8] sm:$0xff] }
 0xe11   :  { %5656 = vmatpush3.msra.mxu1 %v5167_v27  ;;  %5660 = vmatprep.subr.mxu0 %v5190_v17 }
 0xead   :  { %v5616_v22 = vpop.f32.mrf.mxu1 }
 0xeaf   :  { %v2159_v24 = vpop.f32.mrf.mxu1 }
 0xec5   :  { %v5623_v29 = vpop.f32.mrf.mxu1 }
 0xec6   :  { %2433 = vrot.lane.b32.xlu1 %v5623_v29, %s6086_s10  ;;  %v5183_v29 = vld [vmem:[%s6392_s30 + $0xc0] sm:$0xff] }
 0xec7   :  { %v2246_v30 = vpop.f32.mrf.mxu1 }
 0xec8   :  { %2431 = vrot.lane.b32.xlu0 %v2246_v30, %s6086_s10  ;;  %v5182_v30 = vld [vmem:[%s6392_s30 + $0xb8] sm:$0xff]  ;;  %s6112_s10 = smov 22  }
 0xec9   :  { %v5630_v38 = vpop.f32.mrf.mxu0  ;;  %v5637_v32 = vpop.f32.mrf.mxu1  ;;  %s5072_s26 = sld [smem:[%s7075_s0 + %s6112_s10]]  }
 0xeca   :  { %2441 = vrot.lane.b32.xlu1 %v5630_v38, %s6102_s13  ;;  %v5181_v38 = vld [vmem:[%s6392_s30 + $0xb0] sm:$0xff]  ;;  %s6889_s10 = sld [smem:[%s7075_s0 + %s6121_s17]]  }
 0xecb   :  { %v2333_v34 = vpop.f32.mrf.mxu0  ;;  %v2420_v35 = vpop.f32.mrf.mxu1 }
 0xecc   :  { %2439 = vrot.lane.b32.xlu0 %v2333_v34, %s6102_s13  ;;  %v5179_v34 = vld [vmem:[%s6392_s30 + $0xa0] sm:$0xff]  ;;  %s5073_s13 = sld [smem:[%s7075_s0 + %s6115_s5]]  }
 0xece   :  { %2449 = vrot.lane.b32.xlu1 %v5637_v32, %s7078_s21  ;;  %v5180_v32 = vld [vmem:[%s6392_s30 + $0xa8] sm:$0xff] }
 0xed0   :  { %2447 = vrot.lane.b32.xlu0 %v2420_v35, %s7078_s21  ;;  %v5178_v35 = vld [vmem:[%s6392_s30 + $0x98] sm:$0xff]  ;;  %s6129_s21 = smov 7  }
 0xed1   :  { %s5057_s24 = sld [smem:[%s7075_s0 + %s6129_s21]]  }
 0xf38   :  { %v2434_v37 = vpop.permute.xlu1 %2433 }
 0xf39   :  { %v2454_v42 = vsel %vm288_vm1, %v5616_v22, %v2434_v37  ;;  %v5188_v22 = vld [vmem:[%s6392_s30 + $0xe8] sm:$0xff]  ;;  %v5177_v37 = vld [vmem:[%s6392_s30 + $0x90] sm:$0xff] }
 0xf3a   :  { %v2432_v33 = vpop.permute.xlu0 %2431 }
 0xf3b   :  { %v2453_v40 = vsel %vm288_vm1, %v2159_v24, %v2432_v33  ;;  %v5185_v24 = vld [vmem:[%s6392_s30 + $0xd0] sm:$0xff]  ;;  %v5176_v33 = vld [vmem:[%s6392_s30 + $0x88] sm:$0xff] }
 0xf3c   :  { %v2442_v31 = vpop.permute.xlu1 %2441 }
 0xf3d   :  { %v2456_v45 = vsel %vm661_vm2, %v2454_v42, %v2442_v31  ;;  %v5175_v31 = vld [vmem:[%s6392_s30 + $0x80] sm:$0xff]  ;;  %s6126_s30 = smov 30  }
 0xf3e   :  { %v2440_v39 = vpop.permute.xlu0 %2439  ;;  %s5080_s1 = sld [smem:[%s7075_s0 + %s6126_s30]]  }
 0xf3f   :  { %v2455_v43 = vsel %vm661_vm2, %v2453_v40, %v2440_v39  ;;  %v5172_v39 = vld [vmem:[%s6413_s11 + $0x1] ss:$0 sm:$0xff] }
 0xf40   :  { %v2450_v41 = vpop.permute.xlu1 %2449 }
 0xf41   :  { %v2458_v47 = vsel %vm1126_vm3, %v2456_v45, %v2450_v41 }
 0xf42   :  { %v2448_v44 = vpop.permute.xlu0 %2447 }
 0xf43   :  { %v2457_v46 = vsel %vm1126_vm3, %v2455_v43, %v2448_v44  ;;  %vm4641_vm3 = vcmask 64518  }
 0xf44   :  { %5646 = vmatprep.mubr.msk.f32.mxu0 %vm138_vm0, %v2457_v46 }
 0xf45   :  { %5647 = vmatmul.mubr.msk.f32.vlgmr.msra.gmra.mxu0 %vm138_vm0, %v2458_v47 }
 0xf46   :  { %5661 = vmatpush3.msra.mxu0 %v5190_v17  ;;  %v6642_v17 = vld [vmem:[%s5074_s4 + $0x10] sm:$0xff] }
 0xf47   :  { %5662 = vmatprep.subr.mxu0 %v5189_v18 }
 0xf48   :  { %5663 = vmatpush3.msra.mxu0 %v5189_v18  ;;  %v6646_v18 = vld [vmem:[%s5074_s4 + $0x8] sm:$0xff] }
 0xf49   :  { %5664 = vmatprep.subr.mxu0 %v5188_v22 }
 0xf4a   :  { %5665 = vmatpush3.msra.mxu0 %v5188_v22  ;;  %v6650_v22 = vld [vmem:[%s5074_s4] sm:$0xff] }
 0xf4b   :  { %5666 = vmatprep.subr.mxu0 %v5187_v23 }
 0xf4c   :  { %5667 = vmatpush3.msra.mxu0 %v5187_v23 }
 0xf4d   :  { %5668 = vmatprep.subr.mxu0 %v5186_v26 }
 0xf4e   :  { %5669 = vmatpush3.msra.mxu0 %v5186_v26 }
 0xf4f   :  { %5670 = vmatprep.subr.mxu0 %v5185_v24 }
 0xf50   :  { %5671 = vmatpush3.msra.mxu0 %v5185_v24 }
 0xf51   :  { %5672 = vmatprep.subr.mxu0 %v5184_v28 }
 0xf52   :  { %5673 = vmatpush3.msra.mxu0 %v5184_v28 }
 0xf53   :  { %5674 = vmatprep.subr.mxu0 %v5183_v29 }
 0xf54   :  { %5675 = vmatpush3.msra.mxu0 %v5183_v29 }
 0xf55   :  { %5676 = vmatprep.subr.mxu0 %v5182_v30 }
 0xf56   :  { %5677 = vmatpush3.msra.mxu0 %v5182_v30 }
 0xf57   :  { %5678 = vmatprep.subr.mxu0 %v5181_v38 }
 0xf58   :  { %5679 = vmatpush3.msra.mxu0 %v5181_v38 }
 0xf59   :  { %5680 = vmatprep.subr.mxu0 %v5180_v32 }
 0xf5a   :  { %5681 = vmatpush3.msra.mxu0 %v5180_v32  ;;  %v5195_v32 = vld [vmem:[%s6435_s15 + $0x1] ss:$0 sm:$0xff]  ;;  %s6128_s15 = smov 31  }
 0xf5b   :  { %5682 = vmatprep.subr.mxu0 %v5179_v34  ;;  %s5081_s19 = sld [smem:[%s7075_s0 + %s6128_s15]]  }
 0xf5c   :  { %5683 = vmatpush3.msra.mxu0 %v5179_v34 }
 0xf5d   :  { %5684 = vmatprep.subr.mxu0 %v5178_v35 }
 0xf5e   :  { %5685 = vmatpush3.msra.mxu0 %v5178_v35 }
 0xf5f   :  { %5686 = vmatprep.subr.mxu0 %v5177_v37 }
 0xf60   :  { %5687 = vmatpush3.msra.mxu0 %v5177_v37 }
 0xf61   :  { %5688 = vmatprep.subr.mxu0 %v5176_v33 }
 0xf62   :  { %5689 = vmatpush3.msra.mxu0 %v5176_v33 }
 0xf63   :  { %5690 = vmatprep.subr.mxu0 %v5175_v31 }
 0xf64   :  { %5691 = vmatpush3.msra.mxu0 %v5175_v31  ;;  %v5196_v31 = vld [vmem:[%s6440_s14 + $0x1] ss:$0 sm:$0xff]  ;;  %s6116_s14 = smov 25  }
 0xf65   :  { %s5075_s7 = sld [smem:[%s7075_s0 + %s6116_s14]]  }
0x1005   :  { %v5648_v48 = vpop.f32.mrf.mxu0 }
0x1006   :  { %v2550_v49 = vadd.f32 %v5648_v48, %v5160_v36 }
0x1007   :  { %v2544_v50 = vpop.f32.mrf.mxu0 }
0x1008   :  { %v2554_v51 = vadd.f32 %v2550_v49, %v6446_v21  ;;  %v2545_v52 = vadd.f32 %v5160_v36, %v2544_v50 }
0x100a   :  { %v2553_v53 = vadd.f32 %v2545_v52, %v6444_v20  ;;  %v2562_v56 = vsel %vm138_vm0, %v2554_v51, 0.0 }
0x100b   :  { %2563 = vadd.xlane.f32.xlu1 %v2562_v56 }
0x100c   :  { %v2559_v58 = vsel %vm138_vm0, %v2553_v53, 0.0 }
0x100d   :  { %2560 = vadd.xlane.f32.xlu0 %v2559_v58 }
0x1094   :  { %v2564_v57 = vpop.xlane.xlu1 %2563 }
0x1095   :  { %v2566_v54 = vmul.f32 0.03125, %v2564_v57 }
0x1096   :  { %v2561_v59 = vpop.xlane.xlu0 %2560 }
0x1097   :  { %v2565_v55 = vmul.f32 0.03125, %v2561_v59  ;;  %v2568_v0 = vsub.f32 %v2554_v51, %v2566_v54 }
0x1099   :  { %v2567_v61 = vsub.f32 %v2553_v53, %v2565_v55  ;;  %v2570_v20 = vmul.f32 %v2568_v0, %v2568_v0 }
0x109b   :  { %v2569_v21 = vmul.f32 %v2567_v61, %v2567_v61  ;;  %v2574_v63 = vsel %vm138_vm0, %v2570_v20, 0.0 }
0x109d   :  { %v2571_v62 = vsel %vm138_vm0, %v2569_v21, 0.0 }
0x109e   :  { %2572 = vadd.xlane.f32.xlu0 %v2571_v62 }
0x10a2   :  { %2575 = vadd.xlane.f32.xlu0 %v2574_v63 }
0x1127   :  { %v2573_v4 = vpop.xlane.xlu0 %2572 }
0x1128   :  { %v2577_v5 = vmul.f32 0.03125, %v2573_v4 }
0x112a   :  { %v2579_v10 = vadd.f32 1e-12, %v2577_v5 }
0x112b   :  { %v2576_v6 = vpop.xlane.xlu0 %2575 }
0x112c   :  { %5983 = vrsqrt.f32 %v2579_v10  ;;  %v2578_v7 = vmul.f32 0.03125, %v2576_v6 }
0x112e   :  { %v2580_v8 = vadd.f32 1e-12, %v2578_v7 }
0x1130   :  { %5985 = vrsqrt.f32 %v2580_v8 }
0x1139   :  { %v5984_v3 = vpop.eup %5983 }
0x113a   :  { %v2583_v19 = vmul.f32 %v5984_v3, %v2567_v61  ;;  %v5192_v61 = vld [vmem:[%s6419_s20 + $0x1] ss:$0 sm:$0xff]  ;;  %s6118_s20 = smov 26  }
0x113b   :  { %s5076_s8 = sld [smem:[%s7075_s0 + %s6118_s20]]  }
0x113c   :  { %v2591_v9 = vmul.f32 %v5165_v13, %v2583_v19 }
0x113d   :  { %v5986_v11 = vpop.eup %5985 }
0x113e   :  { %v2584_v12 = vmul.f32 %v5986_v11, %v2568_v0  ;;  %v6598_v14 = vadd.f32 %v5166_v25, %v2591_v9  ;;  %v2864_v9 = vld [vmem:[%s5072_s26 + $0x18] sm:$0xff]  ;;  %v2863_v11 = vld [vmem:[%s5072_s26 + $0x10] sm:$0xff] }
0x113f   :  { %5695 = vmatprep.subr.mxu1 %v2864_v9 }
0x1140   :  { %v2592_v15 = vmul.f32 %v5165_v13, %v2584_v12  ;;  %5657 = vmatprep.mubr.msk.f32.mxu1 %vm138_vm0, %v6598_v14  ;;  %v2862_v12 = vld [vmem:[%s5072_s26 + $0x8] sm:$0xff] }
0x1142   :  { %v6602_v16 = vadd.f32 %v5166_v25, %v2592_v15  ;;  %v6113_v15 = vmov 0.0  }
0x1143   :  { %5739 = vmatprep.subr.mxu0 %v6113_v15 }
0x1144   :  { %5658 = vmatmul.mubr.msk.f32.vlgmr.msra.gmra.mxu1 %vm138_vm0, %v6602_v16 }
0x1145   :  { %5696 = vmatpush3.msra.mxu1 %v2864_v9 }
0x1146   :  { %5697 = vmatprep.subr.mxu1 %v2863_v11 }
0x1147   :  { %5698 = vmatpush3.msra.mxu1 %v2863_v11 }
0x1148   :  { %5699 = vmatprep.subr.mxu1 %v2862_v12 }
0x1149   :  { %5700 = vmatpush3.msra.mxu1 %v2862_v12 }
0x1204   :  { %v5659_v40 = vpop.f32.mrf.mxu1 }
0x1205   :  { %v2692_v41 = vadd.f32 %v5659_v40, %v5172_v39 }
0x1206   :  { %v2686_v42 = vpop.f32.mrf.mxu1 }
0x1207   :  { %v2698_v43 = vmul.f32 0.044715, %v2692_v41  ;;  %v2687_v44 = vadd.f32 %v5172_v39, %v2686_v42  ;;  %v2696_v59 = vmul.f32 0.5, %v2692_v41  ;;  %v2958_v42 = vlaneseq }
0x1209   :  { %v2700_v45 = vmul.f32 %v2698_v43, %v2692_v41  ;;  %v2697_v46 = vmul.f32 0.044715, %v2687_v44  ;;  %v2695_v57 = vmul.f32 0.5, %v2687_v44  ;;  %v6685_v43 = vand.u32 127, %v2958_v42 }
0x120b   :  { %v2702_v47 = vmul.f32 %v2700_v45, %v2692_v41  ;;  %v2699_v36 = vmul.f32 %v2697_v46, %v2687_v44  ;;  %v2964_v45 = vand.u32 31, %v6685_v43 }
0x120d   :  { %v2704_v48 = vadd.f32 %v2702_v47, %v2692_v41  ;;  %v2701_v49 = vmul.f32 %v2699_v36, %v2687_v44  ;;  %vm2972_vm5 = vcmp.lt.s32.totalorder %v2964_v45, 16 }
0x120f   :  { %v2703_v50 = vadd.f32 %v2701_v49, %v2687_v44  ;;  %v2706_v51 = vmul.f32 0.7978846, %v2704_v48  ;;  %v5197_v44 = vld [vmem:[%s5073_s13] ss:$0 sm:$0xff] }
0x1211   :  { %v2705_v52 = vmul.f32 0.7978846, %v2703_v50  ;;  %5987 = vtanh.f32 %v2706_v51 }
0x1213   :  { %5989 = vtanh.f32 %v2705_v52 }
0x121e   :  { %v5988_v53 = vpop.eup %5987 }
0x121f   :  { %v2710_v58 = vadd.f32 1.0, %v5988_v53 }
0x1220   :  { %v5990_v56 = vpop.eup %5989 }
0x1221   :  { %v2709_v54 = vadd.f32 1.0, %v5990_v56  ;;  %v2712_v0 = vmul.f32 %v2710_v58, %v2696_v59  ;;  %v6695_v58 = vld [vmem:[%s5075_s7] ss:$0 sm:$0xff] }
0x1223   :  { %v2711_v55 = vmul.f32 %v2709_v54, %v2695_v57 }
0x1225   :  { %5692 = vmatprep.mubr.f32.mxu0 %v2711_v55 }
0x1226   :  { %5693 = vmatmul.mubr.f32.vlgmr.msra.gmra.mxu0 %v2712_v0 }
0x1227   :  { %5747 = vmatprep.mubr.msk.f32.mxu0 %vm6114_vm4, %v6113_v15 }
0x12e6   :  { %v5694_v21 = vpop.f32.mrf.mxu0 }
0x12e7   :  { %v2810_v62 = vadd.f32 %v5694_v21, %v5192_v61 }
0x12e8   :  { %v2804_v20 = vpop.f32.mrf.mxu0 }
0x12e9   :  { %v2814_v63 = vadd.f32 %v2810_v62, %v6602_v16  ;;  %v2805_v1 = vadd.f32 %v5192_v61, %v2804_v20  ;;  %v6638_v16 = vld [vmem:[%s5074_s4 + $0x18] sm:$0xff] }
0x12ea   :  { %5740 = vmatpush3.msra.mxu0 %v6638_v16 }
0x12eb   :  { %v2813_v2 = vadd.f32 %v2805_v1, %v6598_v14  ;;  %v2822_v60 = vsel %vm138_vm0, %v2814_v63, 0.0  ;;  %v2861_v14 = vld [vmem:[%s5072_s26] sm:$0xff]  ;;  %5741 = vmatprep.subr.mxu0 %v6113_v15  ;;  %s6130_s26 = smov 32  }
0x12ec   :  { %2823 = vadd.xlane.f32.xlu1 %v2822_v60  ;;  %5701 = vmatprep.subr.mxu1 %v2861_v14  ;;  %s5082_s4 = sld [smem:[%s7075_s0 + %s6130_s26]]  }
0x12ed   :  { %v2819_v27 = vsel %vm138_vm0, %v2813_v2, 0.0  ;;  %5702 = vmatpush3.msra.mxu1 %v2861_v14  ;;  %5742 = vmatpush3.msra.mxu0 %v6642_v17 }
0x12ee   :  { %2820 = vadd.xlane.f32.xlu0 %v2819_v27  ;;  %5706 = vmatprep.subr.mxu1 %v6113_v15 }
0x12ef   :  { %5743 = vmatprep.subr.mxu0 %v6113_v15 }
0x12f0   :  { %5744 = vmatpush3.msra.mxu0 %v6646_v18 }
0x12f1   :  { %5745 = vmatprep.subr.mxu0 %v6113_v15 }
0x12f2   :  { %5746 = vmatpush3.msra.mxu0 %v6650_v22 }
0x12f3   :  { %5761 = vmatprep.subr.mxu0 %v6113_v15 }
0x1375   :  { %v2824_v4 = vpop.xlane.xlu1 %2823 }
0x1376   :  { %v2826_v5 = vmul.f32 0.03125, %v2824_v4 }
0x1377   :  { %v2821_v10 = vpop.xlane.xlu0 %2820 }
0x1378   :  { %v2828_v6 = vsub.f32 %v2814_v63, %v2826_v5  ;;  %v2825_v7 = vmul.f32 0.03125, %v2821_v10 }
0x137a   :  { %v2827_v8 = vsub.f32 %v2813_v2, %v2825_v7  ;;  %v2830_v3 = vmul.f32 %v2828_v6, %v2828_v6 }
0x137c   :  { %v2834_v13 = vsel %vm138_vm0, %v2830_v3, 0.0  ;;  %v2829_v19 = vmul.f32 %v2827_v8, %v2827_v8 }
0x137d   :  { %2835 = vadd.xlane.f32.xlu1 %v2834_v13 }
0x137e   :  { %v2831_v25 = vsel %vm138_vm0, %v2829_v19, 0.0 }
0x137f   :  { %2832 = vadd.xlane.f32.xlu0 %v2831_v25 }
0x1406   :  { %v2836_v23 = vpop.xlane.xlu1 %2835 }
0x1407   :  { %v2838_v26 = vmul.f32 0.03125, %v2836_v23 }
0x1408   :  { %v2833_v24 = vpop.xlane.xlu0 %2832 }
0x1409   :  { %v2840_v28 = vadd.f32 1e-12, %v2838_v26  ;;  %v2837_v29 = vmul.f32 0.03125, %v2833_v24 }
0x140b   :  { %5991 = vrsqrt.f32 %v2840_v28  ;;  %v2839_v30 = vadd.f32 1e-12, %v2837_v29 }
0x140d   :  { %5993 = vrsqrt.f32 %v2839_v30 }
0x1418   :  { %v5992_v38 = vpop.eup %5991 }
0x1419   :  { %v2844_v34 = vmul.f32 %v5992_v38, %v2828_v6 }
0x141a   :  { %v5994_v35 = vpop.eup %5993 }
0x141b   :  { %v2843_v37 = vmul.f32 %v5994_v35, %v2827_v8  ;;  %v2852_v33 = vmul.f32 %v5195_v32, %v2844_v34 }
0x141d   :  { %v2851_v39 = vmul.f32 %v5195_v32, %v2843_v37  ;;  %v2860_v41 = vadd.f32 %v5196_v31, %v2852_v33 }
0x141f   :  { %v2859_v40 = vadd.f32 %v5196_v31, %v2851_v39 }
0x1421   :  { %5703 = vmatprep.mubr.msk.f32.mxu1 %vm138_vm0, %v2859_v40 }
0x1422   :  { %5704 = vmatmul.mubr.msk.f32.vlgmr.msra.gmra.mxu1 %vm138_vm0, %v2860_v41 }
0x1423   :  { %5707 = vmatpush3.msra.mxu1 %v6638_v16  ;;  %5714 = vmatprep.mubr.msk.f32.mxu1 %vm6114_vm4, %v6113_v15 }
0x1424   :  { %5708 = vmatprep.subr.mxu1 %v6113_v15 }
0x1425   :  { %5709 = vmatpush3.msra.mxu1 %v6642_v17 }
0x1426   :  { %5710 = vmatprep.subr.mxu1 %v6113_v15 }
0x1427   :  { %5711 = vmatpush3.msra.mxu1 %v6646_v18 }
0x1428   :  { %5712 = vmatprep.subr.mxu1 %v6113_v15 }
0x1429   :  { %5713 = vmatpush3.msra.mxu1 %v6650_v22 }
0x142a   :  { %5715 = vmatmul.mubr.f32.vlgmr.msra.gmra.mxu1 %v6113_v15  ;;  %5717 = vmatprep.subr.mxu1 %v6113_v15 }
0x142b   :  { %5718 = vmatpush3.msra.mxu1 %v6638_v16  ;;  %5725 = vmatprep.mubr.msk.f32.mxu1 %vm6114_vm4, %v6113_v15 }
0x142c   :  { %5719 = vmatprep.subr.mxu1 %v6113_v15 }
0x142d   :  { %5720 = vmatpush3.msra.mxu1 %v6642_v17 }
0x142e   :  { %5721 = vmatprep.subr.mxu1 %v6113_v15 }
0x142f   :  { %5722 = vmatpush3.msra.mxu1 %v6646_v18 }
0x1430   :  { %5723 = vmatprep.subr.mxu1 %v6113_v15 }
0x1431   :  { %5724 = vmatpush3.msra.mxu1 %v6650_v22 }
0x1432   :  { %5728 = vmatprep.subr.mxu1 %v6113_v15 }
0x14e2   :  { %v5705_v46 = vpop.f32.mrf.mxu1 }
0x14e3   :  { %v2950_v47 = vadd.f32 %v5705_v46, %v5197_v44 }
0x14e4   :  { %v2944_v36 = vpop.f32.mrf.mxu1 }
0x14e5   :  { %v3055_v48 = vrot.slane %v2950_v47, 6  ;;  %v3159_v49 = vrot.slane %v2950_v47, 2  ;;  %v2945_v50 = vadd.f32 %v5197_v44, %v2944_v36 }
0x14e7   :  { %v3481_v51 = vrot.slane %v2945_v50, 6  ;;  %v3586_v52 = vrot.slane %v2945_v50, 2  ;;  %v6691_v53 = vsel %vm2972_vm5, %v2945_v50, %v3055_v48  ;;  %v6693_v56 = vsel %vm2972_vm5, %v2945_v50, %v3159_v49 }
0x14e9   :  { %v6697_v57 = vsel %vm2972_vm5, %v2950_v47, %v3481_v51  ;;  %v6699_v54 = vsel %vm2972_vm5, %v2950_v47, %v3586_v52 }
0x14ea   :  { %v3048_v59 = vpop.f32.mrf.mxu1 }
0x14eb   :  { %v3049_v55 = vadd.f32 %v6695_v58, %v3048_v59 }
0x14ec   :  { %v5716_v0 = vpop.f32.mrf.mxu1 }
0x14ed   :  { %3066 = vrot.lane.b32.xlu0 %v3049_v55, %s6097_s3  ;;  %v3058_v61 = vadd.f32 %v6691_v53, %v3049_v55 }
0x14ef   :  { %v5201_v21 = vmul.f32 -1.442695, %v3058_v61 }
0x14f1   :  { %5995 = vpow2.f32 %v5201_v21 }
0x14fe   :  { %v5996_v62 = vpop.eup %5995 }
0x14ff   :  { %v3062_v20 = vadd.f32 1.0, %v5996_v62 }
0x1501   :  { %5997 = vrcp.f32 %v3062_v20 }
0x150e   :  { %v5998_v63 = vpop.eup %5997 }
0x150f   :  { %v3076_v5 = vsub.f32 1.0, %v5998_v63  ;;  %v3082_v6 = vmul.f32 0.0, %v5998_v63 }
0x155f   :  { %v3067_v1 = vpop.permute.xlu0 %3066 }
0x1560   :  { %v3069_v2 = vmul.f32 %v5998_v63, %v3067_v1 }
0x1562   :  { %3071 = vrot.lane.b32.xlu1 %v3069_v2, %s6097_s3 }
0x15d4   :  { %v3072_v60 = vpop.permute.xlu1 %3071 }
0x15d5   :  { %v3074_v27 = vadd.f32 %v3072_v60, %v6691_v53 }
0x15d7   :  { %5999 = vtanh.f32 %v3074_v27 }
0x15e4   :  { %v6000_v4 = vpop.eup %5999 }
0x15e5   :  { %3078 = vrot.lane.b32.xlu1 %v6000_v4, %s6090_s23 }
0x1657   :  { %v3079_v10 = vpop.permute.xlu1 %3078 }
0x1658   :  { %v3081_v7 = vmul.f32 %v3079_v10, %v3076_v5 }
0x165a   :  { %v6707_v8 = vadd.f32 %v3082_v6, %v3081_v7 }
0x165c   :  { %3085 = vrot.lane.b32.xlu1 %v6707_v8, %s6090_s23  ;;  %v3188_v34 = vrot.slane %v6707_v8, 6 }
0x16ce   :  { %v3086_v3 = vpop.permute.xlu1 %3085 }
0x16cf   :  { %5726 = vmatmul.mubr.msk.f32.vlgmr.msra.gmra.mxu1 %vm138_vm0, %v3086_v3 }
0x16d0   :  { %5729 = vmatpush3.msra.mxu1 %v6638_v16  ;;  %5736 = vmatprep.mubr.msk.f32.mxu1 %vm6114_vm4, %v6113_v15 }
0x16d1   :  { %5730 = vmatprep.subr.mxu1 %v6113_v15 }
0x16d2   :  { %5731 = vmatpush3.msra.mxu1 %v6642_v17 }
0x16d3   :  { %5732 = vmatprep.subr.mxu1 %v6113_v15 }
0x16d4   :  { %5733 = vmatpush3.msra.mxu1 %v6646_v18 }
0x16d5   :  { %5734 = vmatprep.subr.mxu1 %v6113_v15 }
0x16d6   :  { %5735 = vmatpush3.msra.mxu1 %v6650_v22 }
0x16d7   :  { %5750 = vmatprep.subr.mxu1 %v6113_v15 }
0x178f   :  { %v3155_v13 = vpop.f32.mrf.mxu1 }
0x1790   :  { %v3156_v19 = vadd.f32 %v6695_v58, %v3155_v13 }
0x1791   :  { %v5727_v25 = vpop.f32.mrf.mxu1 }
0x1792   :  { %v3163_v9 = vrot.slane %v3156_v19, 6 }
0x1794   :  { %3172 = vrot.lane.b32.xlu0 %v3163_v9, %s6097_s3  ;;  %v3165_v11 = vadd.f32 %v3163_v9, %v6693_v56 }
0x1796   :  { %v5203_v12 = vmul.f32 -1.442695, %v3165_v11 }
0x1798   :  { %6001 = vpow2.f32 %v5203_v12 }
0x17a5   :  { %v6002_v14 = vpop.eup %6001 }
0x17a6   :  { %v3169_v23 = vadd.f32 1.0, %v6002_v14 }
0x17a8   :  { %6003 = vrcp.f32 %v3169_v23 }
0x17b5   :  { %v6004_v26 = vpop.eup %6003 }
0x17b6   :  { %v3182_v32 = vsub.f32 1.0, %v6004_v26  ;;  %v3190_v33 = vmul.f32 %v6004_v26, %v3188_v34 }
0x1806   :  { %v3173_v24 = vpop.permute.xlu0 %3172 }
0x1807   :  { %v3175_v28 = vmul.f32 %v6004_v26, %v3173_v24 }
0x1809   :  { %3177 = vrot.lane.b32.xlu1 %v3175_v28, %s6097_s3 }
0x187b   :  { %v3178_v29 = vpop.permute.xlu1 %3177 }
0x187c   :  { %v3180_v30 = vadd.f32 %v3178_v29, %v6693_v56 }
0x187e   :  { %6005 = vtanh.f32 %v3180_v30 }
0x188b   :  { %v6006_v38 = vpop.eup %6005 }
0x188c   :  { %3184 = vrot.lane.b32.xlu0 %v6006_v38, %s6090_s23 }
0x18fe   :  { %v3185_v35 = vpop.permute.xlu0 %3184 }
0x18ff   :  { %v3187_v37 = vmul.f32 %v3185_v35, %v3182_v32 }
0x1901   :  { %v6729_v31 = vadd.f32 %v3190_v33, %v3187_v37 }
0x1903   :  { %v3193_v39 = vrot.slane %v6729_v31, 2  ;;  %v3294_v61 = vrot.slane %v6729_v31, 6 }
0x1905   :  { %3194 = vrot.lane.b32.xlu1 %v3193_v39, %s6090_s23 }
0x1977   :  { %v3195_v40 = vpop.permute.xlu1 %3194 }
0x1978   :  { %5737 = vmatmul.mubr.msk.f32.vlgmr.msra.gmra.mxu1 %vm138_vm0, %v3195_v40 }
0x1979   :  { %5751 = vmatpush3.msra.mxu1 %v6638_v16  ;;  %5758 = vmatprep.mubr.msk.f32.mxu1 %vm6114_vm4, %v6113_v15 }
0x197a   :  { %5752 = vmatprep.subr.mxu1 %v6113_v15 }
0x197b   :  { %5753 = vmatpush3.msra.mxu1 %v6642_v17 }
0x197c   :  { %5754 = vmatprep.subr.mxu1 %v6113_v15 }
0x197d   :  { %5755 = vmatpush3.msra.mxu1 %v6646_v18 }
0x197e   :  { %5756 = vmatprep.subr.mxu1 %v6113_v15 }
0x197f   :  { %5757 = vmatpush3.msra.mxu1 %v6650_v22 }
0x1980   :  { %5772 = vmatprep.subr.mxu1 %v6113_v15 }
0x1a38   :  { %v3264_v41 = vpop.f32.mrf.mxu1 }
0x1a39   :  { %v3265_v42 = vadd.f32 %v6695_v58, %v3264_v41 }
0x1a3a   :  { %v5738_v44 = vpop.f32.mrf.mxu1 }
0x1a3b   :  { %v3269_v45 = vrot.slane %v3265_v42, 4 }
0x1a3d   :  { %3278 = vrot.lane.b32.xlu0 %v3269_v45, %s6097_s3  ;;  %v3271_v46 = vadd.f32 %v3269_v45, %v6691_v53 }
0x1a3f   :  { %v5205_v47 = vmul.f32 -1.442695, %v3271_v46 }
0x1a41   :  { %6007 = vpow2.f32 %v5205_v47 }
0x1a4e   :  { %v6008_v36 = vpop.eup %6007 }
0x1a4f   :  { %v3275_v48 = vadd.f32 1.0, %v6008_v36 }
0x1a51   :  { %6009 = vrcp.f32 %v3275_v48 }
0x1a5e   :  { %v6010_v49 = vpop.eup %6009 }
0x1a5f   :  { %v3288_v0 = vsub.f32 1.0, %v6010_v49  ;;  %v3296_v62 = vmul.f32 %v6010_v49, %v3294_v61 }
0x1aaf   :  { %v3279_v50 = vpop.permute.xlu0 %3278 }
0x1ab0   :  { %v3281_v51 = vmul.f32 %v6010_v49, %v3279_v50 }
0x1ab2   :  { %3283 = vrot.lane.b32.xlu1 %v3281_v51, %s6097_s3 }
0x1b24   :  { %v3284_v52 = vpop.permute.xlu1 %3283 }
0x1b25   :  { %v3286_v59 = vadd.f32 %v3284_v52, %v6691_v53  ;;  %v3832_v53 = vsel %vm3831_vm6, %v6707_v8, %v6729_v31 }
0x1b27   :  { %6011 = vtanh.f32 %v3286_v59 }
0x1b34   :  { %v6012_v55 = vpop.eup %6011 }
0x1b35   :  { %3290 = vrot.lane.b32.xlu0 %v6012_v55, %s6090_s23 }
0x1ba7   :  { %v3291_v21 = vpop.permute.xlu0 %3290 }
0x1ba8   :  { %v3293_v20 = vmul.f32 %v3291_v21, %v3288_v0 }
0x1baa   :  { %v6753_v63 = vadd.f32 %v3296_v62, %v3293_v20 }
0x1bac   :  { %v3299_v1 = vrot.slane %v6753_v63, 4  ;;  %v3834_v2 = vsel %vm3833_vm7, %v3832_v53, %v6753_v63  ;;  %v3400_v26 = vrot.slane %v6753_v63, 6 }
0x1bae   :  { %3300 = vrot.lane.b32.xlu1 %v3299_v1, %s6090_s23 }
0x1c20   :  { %v3301_v60 = vpop.permute.xlu1 %3300 }
0x1c21   :  { %5748 = vmatmul.mubr.msk.f32.vlgmr.msra.gmra.mxu0 %vm138_vm0, %v3301_v60 }
0x1c22   :  { %5762 = vmatpush3.msra.mxu0 %v6638_v16  ;;  %5769 = vmatprep.mubr.msk.f32.mxu0 %vm6114_vm4, %v6113_v15 }
0x1c23   :  { %5763 = vmatprep.subr.mxu0 %v6113_v15 }
0x1c24   :  { %5764 = vmatpush3.msra.mxu0 %v6642_v17 }
0x1c25   :  { %5765 = vmatprep.subr.mxu0 %v6113_v15 }
0x1c26   :  { %5766 = vmatpush3.msra.mxu0 %v6646_v18 }
0x1c27   :  { %5767 = vmatprep.subr.mxu0 %v6113_v15 }
0x1c28   :  { %5768 = vmatpush3.msra.mxu0 %v6650_v22 }
0x1c29   :  { %5783 = vmatprep.subr.mxu0 %v6113_v15 }
0x1ce1   :  { %v3370_v27 = vpop.f32.mrf.mxu0 }
0x1ce2   :  { %v3371_v4 = vadd.f32 %v6695_v58, %v3370_v27 }
0x1ce3   :  { %v5749_v5 = vpop.f32.mrf.mxu0 }
0x1ce4   :  { %v3375_v10 = vrot.slane %v3371_v4, 2 }
0x1ce6   :  { %3384 = vrot.lane.b32.xlu0 %v3375_v10, %s6097_s3  ;;  %v3377_v6 = vadd.f32 %v3375_v10, %v6693_v56 }
0x1ce8   :  { %v5207_v7 = vmul.f32 -1.442695, %v3377_v6 }
0x1cea   :  { %6013 = vpow2.f32 %v5207_v7 }
0x1cf7   :  { %v6014_v3 = vpop.eup %6013 }
0x1cf8   :  { %v3381_v13 = vadd.f32 1.0, %v6014_v3 }
0x1cfa   :  { %6015 = vrcp.f32 %v3381_v13 }
0x1d07   :  { %v6016_v19 = vpop.eup %6015 }
0x1d08   :  { %v3394_v23 = vsub.f32 1.0, %v6016_v19  ;;  %v3402_v28 = vmul.f32 %v6016_v19, %v3400_v26 }
0x1d58   :  { %v3385_v25 = vpop.permute.xlu0 %3384 }
0x1d59   :  { %v3387_v9 = vmul.f32 %v6016_v19, %v3385_v25 }
0x1d5b   :  { %3389 = vrot.lane.b32.xlu1 %v3387_v9, %s6097_s3 }
0x1dcd   :  { %v3390_v11 = vpop.permute.xlu1 %3389 }
0x1dce   :  { %v3392_v12 = vadd.f32 %v3390_v11, %v6693_v56 }
0x1dd0   :  { %6017 = vtanh.f32 %v3392_v12 }
0x1ddd   :  { %v6018_v14 = vpop.eup %6017 }
0x1dde   :  { %3396 = vrot.lane.b32.xlu0 %v6018_v14, %s6090_s23 }
0x1e50   :  { %v3397_v24 = vpop.permute.xlu0 %3396 }
0x1e51   :  { %v3399_v29 = vmul.f32 %v3397_v24, %v3394_v23 }
0x1e53   :  { %v3403_v30 = vadd.f32 %v3402_v28, %v3399_v29 }
0x1e55   :  { %v6780_v38 = vrot.slane %v3403_v30, 6  ;;  %v6783_v32 = vsel %vm3835_vm8, %v3834_v2, %v3403_v30 }
0x1e57   :  { %3406 = vrot.lane.b32.xlu1 %v6780_v38, %s6090_s23 }
0x1ec9   :  { %v3407_v56 = vpop.permute.xlu1 %3406 }
0x1eca   :  { %5759 = vmatmul.mubr.msk.f32.vlgmr.msra.gmra.mxu1 %vm138_vm0, %v3407_v56 }
0x1ecb   :  { %5773 = vmatpush3.msra.mxu1 %v6638_v16  ;;  %5780 = vmatprep.mubr.msk.f32.mxu1 %vm6114_vm4, %v6113_v15 }
0x1ecc   :  { %5774 = vmatprep.subr.mxu1 %v6113_v15 }
0x1ecd   :  { %5775 = vmatpush3.msra.mxu1 %v6642_v17 }
0x1ece   :  { %5776 = vmatprep.subr.mxu1 %v6113_v15 }
0x1ecf   :  { %5777 = vmatpush3.msra.mxu1 %v6646_v18 }
0x1ed0   :  { %5778 = vmatprep.subr.mxu1 %v6113_v15 }
0x1ed1   :  { %5779 = vmatpush3.msra.mxu1 %v6650_v22 }
0x1f8a   :  { %v3476_v34 = vpop.f32.mrf.mxu1 }
0x1f8b   :  { %v3477_v35 = vadd.f32 %v6695_v58, %v3476_v34 }
0x1f8c   :  { %v5760_v37 = vpop.f32.mrf.mxu1 }
0x1f8d   :  { %3492 = vrot.lane.b32.xlu0 %v3477_v35, %s6097_s3  ;;  %v3484_v33 = vadd.f32 %v6697_v57, %v3477_v35 }
0x1f8f   :  { %v5209_v39 = vmul.f32 -1.442695, %v3484_v33 }
0x1f91   :  { %6019 = vpow2.f32 %v5209_v39 }
0x1f9e   :  { %v6020_v40 = vpop.eup %6019 }
0x1f9f   :  { %v3488_v41 = vadd.f32 1.0, %v6020_v40 }
0x1fa1   :  { %6021 = vrcp.f32 %v3488_v41 }
0x1fae   :  { %v6022_v42 = vpop.eup %6021 }
0x1faf   :  { %v3502_v48 = vsub.f32 1.0, %v6022_v42  ;;  %v3509_v50 = vmul.f32 %v6022_v42, %v6780_v38 }
0x1fff   :  { %v3493_v44 = vpop.permute.xlu0 %3492 }
0x2000   :  { %v3495_v45 = vmul.f32 %v6022_v42, %v3493_v44 }
0x2002   :  { %3497 = vrot.lane.b32.xlu1 %v3495_v45, %s6097_s3 }
0x2074   :  { %v3498_v46 = vpop.permute.xlu1 %3497 }
0x2075   :  { %v3500_v47 = vadd.f32 %v3498_v46, %v6697_v57 }
0x2077   :  { %6023 = vtanh.f32 %v3500_v47 }
0x2084   :  { %v6024_v36 = vpop.eup %6023 }
0x2085   :  { %3504 = vrot.lane.b32.xlu0 %v6024_v36, %s6090_s23 }
0x20f7   :  { %v3505_v49 = vpop.permute.xlu0 %3504 }
0x20f8   :  { %v3507_v51 = vmul.f32 %v3505_v49, %v3502_v48 }
0x20fa   :  { %v6804_v52 = vadd.f32 %v3509_v50, %v3507_v51 }
0x20fc   :  { %3512 = vrot.lane.b32.xlu1 %v6804_v52, %s6090_s23  ;;  %v3615_v5 = vrot.slane %v6804_v52, 6 }
0x216e   :  { %v3513_v59 = vpop.permute.xlu1 %3512 }
0x216f   :  { %5770 = vmatmul.mubr.msk.f32.vlgmr.msra.gmra.mxu0 %vm138_vm0, %v3513_v59 }
0x2170   :  { %5784 = vmatpush3.msra.mxu0 %v6638_v16  ;;  %5791 = vmatprep.mubr.msk.f32.mxu0 %vm6114_vm4, %v6113_v15 }
0x2171   :  { %5785 = vmatprep.subr.mxu0 %v6113_v15 }
0x2172   :  { %5786 = vmatpush3.msra.mxu0 %v6642_v17 }
0x2173   :  { %5787 = vmatprep.subr.mxu0 %v6113_v15 }
0x2174   :  { %5788 = vmatpush3.msra.mxu0 %v6646_v18 }
0x2175   :  { %5789 = vmatprep.subr.mxu0 %v6113_v15 }
0x2176   :  { %5790 = vmatpush3.msra.mxu0 %v6650_v22 }
0x222f   :  { %v3582_v55 = vpop.f32.mrf.mxu0 }
0x2230   :  { %v3583_v0 = vadd.f32 %v6695_v58, %v3582_v55 }
0x2231   :  { %v5771_v21 = vpop.f32.mrf.mxu0 }
0x2232   :  { %v3590_v16 = vrot.slane %v3583_v0, 6 }
0x2234   :  { %3599 = vrot.lane.b32.xlu0 %v3590_v16, %s6097_s3  ;;  %v3592_v62 = vadd.f32 %v3590_v16, %v6699_v54 }
0x2236   :  { %v5211_v20 = vmul.f32 -1.442695, %v3592_v62 }
0x2238   :  { %6025 = vpow2.f32 %v5211_v20 }
0x2245   :  { %v6026_v17 = vpop.eup %6025 }
0x2246   :  { %v3596_v53 = vadd.f32 1.0, %v6026_v17 }
0x2248   :  { %6027 = vrcp.f32 %v3596_v53 }
0x2255   :  { %v6028_v1 = vpop.eup %6027 }
0x2256   :  { %v3609_v4 = vsub.f32 1.0, %v6028_v1  ;;  %v3617_v7 = vmul.f32 %v6028_v1, %v3615_v5 }
0x22a6   :  { %v3600_v18 = vpop.permute.xlu0 %3599 }
0x22a7   :  { %v3602_v2 = vmul.f32 %v6028_v1, %v3600_v18  ;;  %v3849_v18 = vrot.slane %v6707_v8, 2  ;;  %v3858_v8 = vld [vmem:[%s5076_s8 + $0x8] sm:$0xff] }
0x22a9   :  { %3604 = vrot.lane.b32.xlu1 %v3602_v2, %s6097_s3 }
0x231b   :  { %v3605_v22 = vpop.permute.xlu1 %3604 }
0x231c   :  { %v3607_v60 = vadd.f32 %v3605_v22, %v6699_v54 }
0x231e   :  { %6029 = vtanh.f32 %v3607_v60 }
0x232b   :  { %v6030_v27 = vpop.eup %6029 }
0x232c   :  { %3611 = vrot.lane.b32.xlu0 %v6030_v27, %s6090_s23 }
0x239e   :  { %v3612_v10 = vpop.permute.xlu0 %3611 }
0x239f   :  { %v3614_v6 = vmul.f32 %v3612_v10, %v3609_v4 }
0x23a1   :  { %v6825_v3 = vadd.f32 %v3617_v7, %v3614_v6  ;;  %v3845_v6 = vrot.slane %v6804_v52, 2 }
0x23a3   :  { %v3620_v13 = vrot.slane %v6825_v3, 2  ;;  %v3721_v33 = vrot.slane %v6825_v3, 6  ;;  %v3837_v44 = vsel %vm3831_vm6, %v6804_v52, %v6825_v3 }
0x23a5   :  { %3621 = vrot.lane.b32.xlu1 %v3620_v13, %s6090_s23 }
0x2417   :  { %v3622_v19 = vpop.permute.xlu1 %3621 }
0x2418   :  { %5781 = vmatmul.mubr.msk.f32.vlgmr.msra.gmra.mxu1 %vm138_vm0, %v3622_v19 }
0x24d8   :  { %v3691_v25 = vpop.f32.mrf.mxu1 }
0x24d9   :  { %v3692_v9 = vadd.f32 %v6695_v58, %v3691_v25 }
0x24da   :  { %v5782_v11 = vpop.f32.mrf.mxu1 }
0x24db   :  { %v3696_v12 = vrot.slane %v3692_v9, 4  ;;  %v3857_v9 = vld [vmem:[%s5076_s8] sm:$0xff] }
0x24dd   :  { %3705 = vrot.lane.b32.xlu0 %v3696_v12, %s6097_s3  ;;  %v3698_v14 = vadd.f32 %v3696_v12, %v6697_v57 }
0x24df   :  { %v5213_v23 = vmul.f32 -1.442695, %v3698_v14 }
0x24e1   :  { %6031 = vpow2.f32 %v5213_v23 }
0x24ee   :  { %v6032_v26 = vpop.eup %6031 }
0x24ef   :  { %v3702_v24 = vadd.f32 1.0, %v6032_v26 }
0x24f1   :  { %6033 = vrcp.f32 %v3702_v24 }
0x24fe   :  { %v6034_v28 = vpop.eup %6033 }
0x24ff   :  { %v3715_v37 = vsub.f32 1.0, %v6034_v28  ;;  %v3723_v40 = vmul.f32 %v6034_v28, %v3721_v33 }
0x254f   :  { %v3706_v29 = vpop.permute.xlu0 %3705 }
0x2550   :  { %v3708_v30 = vmul.f32 %v6034_v28, %v3706_v29 }
0x2552   :  { %3710 = vrot.lane.b32.xlu1 %v3708_v30, %s6097_s3 }
0x25c4   :  { %v3711_v56 = vpop.permute.xlu1 %3710 }
0x25c5   :  { %v3713_v34 = vadd.f32 %v3711_v56, %v6697_v57  ;;  %v4090_v56 = vld [vmem:[%s6889_s10 + $0x8] sm:$0xff] }
0x25c7   :  { %6035 = vtanh.f32 %v3713_v34 }
0x25d4   :  { %v6036_v35 = vpop.eup %6035 }
0x25d5   :  { %3717 = vrot.lane.b32.xlu0 %v6036_v35, %s6090_s23 }
0x2647   :  { %v3718_v39 = vpop.permute.xlu0 %3717 }
0x2648   :  { %v3720_v41 = vmul.f32 %v3718_v39, %v3715_v37  ;;  %v4072_v39 = vld [vmem:[%s5055_s6 + $0x8] sm:$0xff] }
0x264a   :  { %v3724_v42 = vadd.f32 %v3723_v40, %v3720_v41  ;;  %v4217_v40 = vsub.f32 1.0, %v4072_v39  ;;  %v4069_v41 = vld [vmem:[%s5054_s27] sm:$0xff] }
0x264b   :  { %vm4432_vm10 = vcmp.gt.f32.partialorder %v4069_v41, 0.0 }
0x264c   :  { %v3726_v45 = vrot.slane %v3724_v42, 4  ;;  %v3838_v46 = vsel %vm3833_vm7, %v3837_v44, %v3724_v42  ;;  %v3843_v4 = vrot.slane %v3724_v42, 2 }
0x264e   :  { %3727 = vrot.lane.b32.xlu1 %v3726_v45, %s6090_s23 }
0x26c0   :  { %v3728_v57 = vpop.permute.xlu1 %3727 }
0x26c1   :  { %5792 = vmatmul.mubr.msk.f32.vlgmr.msra.gmra.mxu0 %vm138_vm0, %v3728_v57 }
0x2781   :  { %v3797_v47 = vpop.f32.mrf.mxu0 }
0x2782   :  { %v3798_v36 = vadd.f32 %v6695_v58, %v3797_v47  ;;  %v3847_v58 = vrot.slane %v6753_v63, 2  ;;  %v3827_v63 = vrot.slane %v3724_v42, 6  ;;  %v4071_v42 = vld [vmem:[%s5055_s6] sm:$0xff] }
0x2783   :  { %v5793_v48 = vpop.f32.mrf.mxu0  ;;  %v4216_v45 = vsub.f32 1.0, %v4071_v42 }
0x2784   :  { %v3802_v49 = vrot.slane %v3798_v36, 2  ;;  %v3854_v17 = vsel %vm3831_vm6, %v6780_v38, %v3847_v58 }
0x2785   :  { %v3855_v1 = vsel %vm3833_vm7, %v3854_v17, %v3294_v61  ;;  %v6931_v17 = vld [vmem:[%s5080_s1] ss:$0 sm:$0xff] }
0x2786   :  { %3811 = vrot.lane.b32.xlu0 %v3802_v49, %s6097_s3  ;;  %v3804_v50 = vadd.f32 %v3802_v49, %v6699_v54  ;;  %v3856_v2 = vsel %vm3835_vm8, %v3855_v1, %v3849_v18 }
0x2788   :  { %v5215_v51 = vmul.f32 -1.442695, %v3804_v50  ;;  %v4074_v50 = vld [vmem:[%s6910_s18 + $0x8] sm:$0xff] }
0x278a   :  { %6037 = vpow2.f32 %v5215_v51  ;;  %v4076_v51 = vld [vmem:[%s6916_s16 + $0x8] sm:$0xff] }
0x2797   :  { %v6038_v59 = vpop.eup %6037 }
0x2798   :  { %v3808_v55 = vadd.f32 1.0, %v6038_v59 }
0x279a   :  { %6039 = vrcp.f32 %v3808_v55 }
0x27a7   :  { %v6040_v0 = vpop.eup %6039 }
0x27a8   :  { %v3821_v61 = vsub.f32 1.0, %v6040_v0  ;;  %v3829_v22 = vmul.f32 %v6040_v0, %v3827_v63 }
0x27f8   :  { %v3812_v21 = vpop.permute.xlu0 %3811 }
0x27f9   :  { %v3814_v16 = vmul.f32 %v6040_v0, %v3812_v21 }
0x27fb   :  { %3816 = vrot.lane.b32.xlu1 %v3814_v16, %s6097_s3  ;;  %s6117_s3 = smov 27  }
0x27fc   :  { %s5077_s11 = sld [smem:[%s7075_s0 + %s6117_s3]]  }
0x2802   :  { %v3859_v31 = vld [vmem:[%s5077_s11] sm:$0xff] }
0x286d   :  { %v3817_v62 = vpop.permute.xlu1 %3816 }
0x286e   :  { %v3819_v20 = vadd.f32 %v3817_v62, %v6699_v54  ;;  %v3860_v54 = vld [vmem:[%s5077_s11 + $0x8] sm:$0xff] }
0x286f   :  { %5794 = vmatprep.subr.mxu1 %v3860_v54 }
0x2870   :  { %6041 = vtanh.f32 %v3819_v20  ;;  %5795 = vmatpush3.msra.mxu1 %v3860_v54 }
0x2871   :  { %5796 = vmatprep.subr.mxu1 %v3859_v31 }
0x2872   :  { %5797 = vmatpush3.msra.mxu1 %v3859_v31 }
0x2873   :  { %5801 = vmatprep.subr.mxu1 %v3858_v8 }
0x287d   :  { %v6042_v53 = vpop.eup %6041 }
0x287e   :  { %3823 = vrot.lane.b32.xlu0 %v6042_v53, %s6090_s23 }
0x2882   :  { %3865 = vrot.lane.b32.xlu0 %v3856_v2, %s6092_s25 }
0x28f0   :  { %v3824_v38 = vpop.permute.xlu0 %3823 }
0x28f1   :  { %v3826_v60 = vmul.f32 %v3824_v38, %v3821_v61 }
0x28f3   :  { %v3830_v27 = vadd.f32 %v3829_v22, %v3826_v60 }
0x28f4   :  { %v3866_v25 = vpop.permute.xlu0 %3865 }
0x28f5   :  { %v3841_v5 = vrot.slane %v3830_v27, 6  ;;  %v3839_v10 = vsel %vm3835_vm8, %v3838_v46, %v3830_v27  ;;  %v4218_v46 = vmul.f32 %v4216_v45, %v4069_v41  ;;  %v4075_v27 = vld [vmem:[%s6916_s16] sm:$0xff] }
0x28f6   :  { %3950 = vrot.lane.b32.xlu0 %v3839_v10, %s6090_s23 }
0x28f7   :  { %v3851_v7 = vsel %vm3831_vm6, %v3841_v5, %v3843_v4 }
0x28f8   :  { %v3852_v3 = vsel %vm3833_vm7, %v3851_v7, %v3721_v33  ;;  %v6902_v33 = vld [vmem:[%s5054_s27 + $0x8] sm:$0xff] }
0x28f9   :  { %v3853_v13 = vsel %vm3835_vm8, %v3852_v3, %v3845_v6  ;;  %v4219_v44 = vmul.f32 %v4217_v40, %v6902_v33  ;;  %vm4730_vm5 = vcmp.gt.f32.partialorder %v6902_v33, 0.0 }
0x28fa   :  { %3863 = vrot.lane.b32.xlu1 %v3853_v13, %s6092_s25  ;;  %s5079_s25 = sld [smem:[%s7075_s0 + %s6127_s2]]  }
0x28fe   :  { %3948 = vrot.lane.b32.xlu1 %v6783_v32, %s6090_s23  ;;  %v6119_v32 = vmov 0   ;;  %s6120_s23 = smov 28  }
0x28ff   :  { %5902 = vset.pattern.permute.xlu1 %v6119_v32  ;;  %5901 = vset.pattern.permute.xlu0 %v6119_v32  ;;  %s5078_s9 = sld [smem:[%s7075_s0 + %s6120_s23]]   ;;  %v4433_v61 = vsel %vm4432_vm10, 1, %v6119_v32 }
0x2900   :  { %v4066_v18 = vld [vmem:[%s5079_s25] sm:$0xff] }
0x2901   :  { %5808 = vmatprep.subr.mxu0 %v4066_v18  ;;  %v4334_v4 = vsel %vm288_vm1, %v4066_v18, -inf }
0x2902   :  { %5809 = vmatpush3.msra.mxu0 %v4066_v18  ;;  %v4335_v5 = vrot.slane %v4334_v4, 4 }
0x2903   :  { %5820 = vmatprep.subr.mxu0 %v6113_v15 }
0x2904   :  { %v4336_v10 = vmax.f32 %v4334_v4, %v4335_v5 }
0x2905   :  { %v5220_v28 = vld [vmem:[%s5078_s9] ss:$0 sm:$0xff] }
0x2906   :  { %v4337_v6 = vrot.slane %v4336_v10, 2 }
0x2908   :  { %v4338_v7 = vmax.f32 %v4336_v10, %v4337_v6 }
0x290a   :  { %v4339_v3 = vrot.slane %v4338_v7, 1 }
0x290c   :  { %v6952_v13 = vmax.f32 %v4338_v7, %v4339_v3 }
0x2968   :  { %v3951_v11 = vpop.permute.xlu0 %3950 }
0x296c   :  { %v3864_v19 = vpop.permute.xlu1 %3863 }
0x296d   :  { %5798 = vmatprep.mubr.msk.f32.mxu1 %vm661_vm2, %v3864_v19  ;;  %v4341_v19 = vsub.f32 %v4066_v18, %v6952_v13 }
0x296e   :  { %5799 = vmatmul.mubr.msk.f32.vlgmr.msra.gmra.mxu1 %vm661_vm2, %v3866_v25 }
0x296f   :  { %5802 = vmatpush3.msra.mxu1 %v3858_v8  ;;  %v4089_v8 = vld [vmem:[%s6889_s10] sm:$0xff]  ;;  %v4342_v25 = vmul.f32 1.442695, %v4341_v19 }
0x2970   :  { %5803 = vmatprep.subr.mxu1 %v3857_v9  ;;  %v3949_v52 = vpop.permute.xlu1 %3948 }
0x2971   :  { %5804 = vmatpush3.msra.mxu1 %v3857_v9  ;;  %5805 = vmatprep.mubr.msk.f32.mxu1 %vm661_vm2, %v3949_v52 }
0x2972   :  { %5806 = vmatmul.mubr.msk.f32.vlgmr.msra.gmra.mxu1 %vm661_vm2, %v3951_v11  ;;  %5813 = vmatprep.subr.mxu1 %v6113_v15 }
0x2973   :  { %5817 = vmatprep.mubr.msk.f32.mxu1 %vm6114_vm4, %v6113_v15 }
0x2a2e   :  { %v5800_v12 = vpop.f32.mrf.mxu1 }
0x2a30   :  { %v3937_v14 = vpop.f32.mrf.mxu1 }
0x2a32   :  { %v5807_v23 = vpop.f32.mrf.mxu1 }
0x2a33   :  { %v4028_v34 = vadd.f32 %v5807_v23, %v5800_v12 }
0x2a34   :  { %v4022_v26 = vpop.f32.mrf.mxu1 }
0x2a35   :  { %v4023_v24 = vadd.f32 %v4022_v26, %v3937_v14  ;;  %v6892_v35 = vadd.f32 %v5220_v28, %v4028_v34 }
0x2a37   :  { %v4038_v29 = vadd.f32 %v5220_v28, %v4023_v24  ;;  %v4043_v37 = vsel %vm288_vm1, %v6892_v35, -inf }
0x2a39   :  { %v4040_v30 = vsel %vm288_vm1, %v4038_v29, -inf }
0x2a3a   :  { %4041 = vmax.xlane.f32.xlu1 %v4040_v30 }
0x2a4b   :  { %4095 = vperm.xlu1 %5902, %v4090_v56  }
0x2a6f   :  { %4044 = vmax.xlane.f32.xlu1 %v4043_v37 }
0x2a80   :  { %4191 = vperm.xlu1 %5902, %v6902_v33  }
0x2a84   :  { %4203 = vperm.xlu1 %5902, %v4072_v39  }
0x2a88   :  { %4186 = vperm.xlu1 %5902, %v4069_v41  }
0x2a8c   :  { %4227 = vperm.xlu1 %5902, %v4219_v44  }
0x2a90   :  { %4222 = vperm.xlu1 %5902, %v4218_v46   ;;  %v6986_v46 = vld [vmem:[%s5081_s19] ss:$0 sm:$0xff] }
0x2a94   :  { %4241 = vperm.xlu1 %5902, %v4074_v50  }
0x2a98   :  { %4081 = vperm.xlu1 %5902, %v4076_v51  }
0x2ac3   :  { %v4042_v57 = vpop.xlane.xlu1 %4041 }
0x2ac4   :  { %v4046_v47 = vsub.f32 %v4038_v29, %v4042_v57 }
0x2ac6   :  { %v4048_v36 = vmul.f32 1.442695, %v4046_v47 }
0x2ac7   :  { %v4096_v59 = vpop.permute.xlu1 %4095 }
0x2ac8   :  { %6043 = vpow2.f32 %v4048_v36  ;;  %vm4098_vm11 = vcmp.eq.s32.totalorder %v6685_v43, %v4096_v59 }
0x2ac9   :  { %v5224_v14 = vsel %vm4098_vm11, 1.0, %v6113_v15 }
0x2ad5   :  { %v6044_v48 = vpop.eup %6043 }
0x2ad6   :  { %v4052_v49 = vsel %vm288_vm1, %v6044_v48, 0.0 }
0x2ad7   :  { %4053 = vadd.xlane.f32.xlu0 %v4052_v49 }
0x2af8   :  { %v6919_v0 = vpop.xlane.xlu1 %4044 }
0x2af9   :  { %v4047_v63 = vsub.f32 %v6892_v35, %v6919_v0 }
0x2afb   :  { %v4050_v38 = vmul.f32 1.442695, %v4047_v63 }
0x2afc   :  { %v6921_v21 = vpop.permute.xlu1 %4191 }
0x2b00   :  { %v6926_v16 = vpop.permute.xlu1 %4203 }
0x2b01   :  { %v4213_v45 = vmul.f32 %v6931_v17, %v6926_v16 }
0x2b04   :  { %v4187_v53 = vpop.permute.xlu1 %4186 }
0x2b08   :  { %v4228_v56 = vpop.permute.xlu1 %4227 }
0x2b0c   :  { %v4223_v37 = vpop.permute.xlu1 %4222 }
0x2b10   :  { %v4242_v41 = vpop.permute.xlu1 %4241 }
0x2b11   :  { %v4251_v50 = vmul.f32 %v6986_v46, %v4242_v41 }
0x2b14   :  { %v4082_v47 = vpop.permute.xlu1 %4081 }
0x2b15   :  { %vm4084_vm13 = vcmp.eq.s32.totalorder %v6685_v43, %v4082_v47 }
0x2b16   :  { %v5222_v16 = vsel %vm4084_vm13, 1.0, %v6113_v15 }
0x2b60   :  { %v4054_v55 = vpop.xlane.xlu0 %4053 }
0x2b61   :  { %6045 = vlog2.f32 %v4054_v55 }
0x2b62   :  { %6047 = vpow2.f32 %v4050_v38 }
0x2b63   :  { %6049 = vpow2.f32 %v4342_v25  ;;  %v4256_v25 = vld [vmem:[%s5057_s24] sm:$0x3] }
0x2b6e   :  { %v6046_v62 = vpop.eup %6045 }
0x2b6f   :  { %v4059_v20 = vmul.f32 0.6931472, %v6046_v62  ;;  %v6048_v22 = vpop.eup %6047 }
0x2b70   :  { %v4055_v60 = vsel %vm288_vm1, %v6048_v22, 0.0  ;;  %v6959_v23 = vpop.eup %6049 }
0x2b71   :  { %v4062_v58 = vadd.f32 %v4059_v20, %v4042_v57 }
0x2b73   :  { %v6933_v1 = vsub.f32 %v4038_v29, %v4062_v58 }
0x2b75   :  { %v6937_v2 = vadd.f32 %v6931_v17, %v6933_v1  ;;  %v6940_v54 = vmul.f32 %v4187_v53, %v6933_v1 }
0x2b77   :  { %v4345_v31 = vsel %vm4330_vm9, %v6937_v2, -inf  ;;  %v4442_v63 = vrot.slane %v6937_v2, 6 }
0x2b78   :  { %4346 = vmax.xlane.f32.xlu0 %v4345_v31 }
0x2b8e   :  { %4092 = vperm.xlu0 %5901, %v4089_v8  }
0x2b92   :  { %4435 = vperm.xlu0 %5901, %v4433_v61  }
0x2bb1   :  { %4056 = vadd.xlane.f32.xlu0 %v4055_v60  ;;  %v4073_v60 = vld [vmem:[%s6910_s18] sm:$0xff] }
0x2bc7   :  { %4198 = vperm.xlu0 %5901, %v4071_v42  }
0x2bcb   :  { %4078 = vperm.xlu0 %5901, %v4075_v27  }
0x2c01   :  { %v4347_v9 = vpop.xlane.xlu0 %4346 }
0x2c02   :  { %v4348_v52 = vsub.f32 %v6937_v2, %v4347_v9 }
0x2c04   :  { %v4349_v11 = vmul.f32 1.442695, %v4348_v52 }
0x2c06   :  { %6051 = vpow2.f32 %v4349_v11 }
0x2c09   :  { %v4093_v12 = vpop.permute.xlu0 %4092 }
0x2c0a   :  { %vm4097_vm12 = vcmp.eq.s32.totalorder %v6685_v43, %v4093_v12 }
0x2c0b   :  { %v5223_v26 = vsel %vm4097_vm12, 1.0, %v6113_v15 }
0x2c0c   :  { %5810 = vmatprep.mubr.msk.f32.mxu0 %vm288_vm1, %v5223_v26 }
0x2c0d   :  { %5811 = vmatmul.mubr.msk.f32.vlgmr.msra.gmra.mxu0 %vm288_vm1, %v5224_v14  ;;  %v6973_v28 = vpop.permute.xlu0 %4435 }
0x2c0e   :  { %5821 = vmatpush3.msra.mxu0 %v6959_v23  ;;  %5822 = vmatprep.mubr.msk.f32.mxu0 %vm6114_vm4, %v6113_v15  ;;  %vm4437_vm15 = vcmp.eq.s32.totalorder %v6973_v28, 1 }
0x2c0f   :  { %5830 = vmatprep.subr.mxu0 %v6113_v15 }
0x2c13   :  { %v6052_v24 = vpop.eup %6051 }
0x2c14   :  { %5823 = vmatmul.mubr.msk.f32.vlgmr.msra.gmra.mxu0 %vm288_vm1, %v6052_v24 }
0x2c15   :  { %5831 = vmatpush3.msra.mxu0 %v6959_v23  ;;  %5832 = vmatprep.mubr.msk.f32.mxu0 %vm6114_vm4, %v6113_v15 }
0x2c16   :  { %5840 = vmatprep.subr.mxu0 %v6113_v15 }
0x2c3a   :  { %v4057_v29 = vpop.xlane.xlu0 %4056 }
0x2c3b   :  { %6053 = vlog2.f32 %v4057_v29 }
0x2c42   :  { %v4199_v42 = vpop.permute.xlu0 %4198 }
0x2c43   :  { %v4212_v57 = vmul.f32 %v6931_v17, %v4199_v42 }
0x2c45   :  { %v4214_v51 = vadd.f32 %v4212_v57, %v6940_v54  ;;  %v4429_v54 = vrot.slane %v6933_v1, 2 }
0x2c46   :  { %v4079_v5 = vpop.permute.xlu0 %4078 }
0x2c47   :  { %vm4083_vm0 = vcmp.eq.s32.totalorder %v6685_v43, %v4079_v5 }
0x2c48   :  { %v6054_v30 = vpop.eup %6053  ;;  %v5221_v3 = vsel %vm4083_vm0, 1.0, %v6113_v15 }
0x2c49   :  { %v4061_v34 = vmul.f32 0.6931472, %v6054_v30 }
0x2c4b   :  { %v4063_v39 = vadd.f32 %v4061_v34, %v6919_v0  ;;  %v4533_v34 = vrot.slane %v6933_v1, 4 }
0x2c4d   :  { %v6980_v40 = vsub.f32 %v6892_v35, %v4063_v39 }
0x2c4f   :  { %v4195_v44 = vmul.f32 %v6921_v21, %v6980_v40 }
0x2c51   :  { %v4215_v48 = vadd.f32 %v4213_v45, %v4195_v44 }
0x2ccd   :  { %v5812_v36 = vpop.f32.mrf.mxu0 }
0x2cce   :  { %v4231_v49 = vmul.f32 %v5812_v36, %v4228_v56 }
0x2ccf   :  { %v4175_v35 = vpop.f32.mrf.mxu0 }
0x2cd0   :  { %v4233_v59 = vadd.f32 %v4231_v49, %v4215_v48  ;;  %v4230_v55 = vmul.f32 %v4223_v37, %v4175_v35 }
0x2cd2   :  { %v4253_v0 = vadd.f32 %v4251_v50, %v4233_v59  ;;  %v4232_v21 = vadd.f32 %v4230_v55, %v4214_v51 }
0x2cd4   :  { %v4255_v62 = vmul.f32 %v5222_v16, %v4253_v0  ;;  %v4420_v20 = vpop.f32.mrf.mxu0 }
0x2cd5   :  { %6055 = vlog2.f32 %v4420_v20 }
0x2cd6   :  { %5814 = vmatpush3.msra.mxu1 %v4255_v62  ;;  %v5824_v58 = vpop.f32.mrf.mxu0 }
0x2cd7   :  { %5815 = vmatprep.subr.mxu1 %v6113_v15 }
0x2ce2   :  { %v6056_v17 = vpop.eup %6055 }
0x2ce3   :  { %v4425_v53 = vmul.f32 0.6931472, %v6056_v17 }
0x2ce5   :  { %v4426_v18 = vadd.f32 %v4425_v53, %v4347_v9  ;;  %v4731_v53 = vsel %vm4730_vm5, 1, %v6119_v32 }
0x2ce7   :  { %v4427_v31 = vadd.f32 %v4426_v18, %v6952_v13 }
0x2ce9   :  { %v4431_v8 = vadd.f32 %v4429_v54, %v4427_v31 }
0x2ceb   :  { %v4439_v61 = vrot.slane %v4431_v8, 6 }
0x2ced   :  { %v4444_v38 = vsel %vm4437_vm15, %v4439_v61, %v4442_v63 }
0x2cee   :  { %v4446_v22 = vsel %vm4445_vm14, %v4444_v38, -inf  ;;  %v4540_v39 = vrot.slane %v4444_v38, 6 }
0x2cef   :  { %4447 = vmax.xlane.f32.xlu1 %v4446_v22 }
0x2d00   :  { %4236 = vperm.xlu1 %5902, %v4073_v60  }
0x2d78   :  { %v4448_v27 = vpop.xlane.xlu1 %4447 }
0x2d79   :  { %v4449_v4 = vsub.f32 %v4444_v38, %v4448_v27  ;;  %v4529_v24 = vrot.slane %v4448_v27, 2 }
0x2d7b   :  { %v4450_v2 = vmul.f32 1.442695, %v4449_v4 }
0x2d7c   :  { %v4237_v10 = vpop.permute.xlu1 %4236 }
0x2d7d   :  { %6057 = vpow2.f32 %v4450_v2  ;;  %v4250_v6 = vmul.f32 %v6986_v46, %v4237_v10 }
0x2d7f   :  { %v4252_v7 = vadd.f32 %v4250_v6, %v4232_v21  ;;  %v4631_v21 = vrot.slane %v6933_v1, 6 }
0x2d81   :  { %v4254_v19 = vmul.f32 %v5221_v3, %v4252_v7 }
0x2d83   :  { %5816 = vmatpush3.msra.mxu1 %v4254_v19 }
0x2d84   :  { %5818 = vmatmul.mubr.msk.f32.vlgmr.msra.gmra.mxu1 %vm661_vm2, %v4256_v25  ;;  %5825 = vmatprep.subr.mxu1 %v6113_v15  ;;  %vm4543_vm2 = vcmask 62468  }
0x2d85   :  { %5826 = vmatpush3.msra.mxu1 %v6959_v23  ;;  %5827 = vmatprep.mubr.msk.f32.mxu1 %vm6114_vm4, %v6113_v15 }
0x2d86   :  { %5835 = vmatprep.subr.mxu1 %v6113_v15 }
0x2d8a   :  { %v6058_v43 = vpop.eup %6057 }
0x2d8b   :  { %v4453_v9 = vrot.slane %v6058_v43, 2 }
0x2d8d   :  { %5828 = vmatmul.mubr.msk.f32.vlgmr.msra.gmra.mxu1 %vm288_vm1, %v4453_v9 }
0x2d8e   :  { %5836 = vmatpush3.msra.mxu1 %v6959_v23  ;;  %5837 = vmatprep.mubr.msk.f32.mxu1 %vm6114_vm4, %v6113_v15 }
0x2d8f   :  { %5845 = vmatprep.subr.mxu1 %v6113_v15 }
0x2e44   :  { %v4326_v52 = vpop.f32.mrf.mxu1 }
0x2e45   :  { %v4331_v18 = vsel %vm4330_vm9, %v4326_v52, 0.0 }
0x2e46   :  { %v5819_v11 = vpop.f32.mrf.mxu1 }
0x2e4d   :  { %v4522_v12 = vpop.f32.mrf.mxu1 }
0x2e4e   :  { %6059 = vlog2.f32 %v4522_v12 }
0x2e4f   :  { %v5829_v14 = vpop.f32.mrf.mxu1 }
0x2e50   :  { %v4824_v14 = vrot.slane %v6980_v40, 2 }
0x2e5b   :  { %v6060_v26 = vpop.eup %6059 }
0x2e5c   :  { %v4527_v29 = vmul.f32 0.6931472, %v6060_v26 }
0x2e5e   :  { %v4531_v30 = vadd.f32 %v4529_v24, %v4527_v29 }
0x2e60   :  { %v4532_v56 = vadd.f32 %v4531_v30, %v6952_v13 }
0x2e62   :  { %v4535_v37 = vadd.f32 %v4533_v34, %v4532_v56 }
0x2e64   :  { %v4537_v41 = vrot.slane %v4535_v37, 4 }
0x2e66   :  { %v4542_v42 = vsel %vm4437_vm15, %v4537_v41, %v4540_v39 }
0x2e67   :  { %v4544_v44 = vsel %vm4543_vm2, %v4542_v42, -inf  ;;  %v4638_v62 = vrot.slane %v4542_v42, 6 }
0x2e68   :  { %4545 = vmax.xlane.f32.xlu1 %v4544_v44 }
0x2ef1   :  { %v4546_v45 = vpop.xlane.xlu1 %4545 }
0x2ef2   :  { %v4547_v57 = vsub.f32 %v4542_v42, %v4546_v45  ;;  %v4627_v51 = vrot.slane %v4546_v45, 4 }
0x2ef4   :  { %v4548_v47 = vmul.f32 1.442695, %v4547_v57 }
0x2ef6   :  { %6061 = vpow2.f32 %v4548_v47 }
0x2f03   :  { %v6062_v36 = vpop.eup %6061 }
0x2f04   :  { %v4551_v48 = vrot.slane %v6062_v36, 4 }
0x2f06   :  { %5833 = vmatmul.mubr.msk.f32.vlgmr.msra.gmra.mxu0 %vm288_vm1, %v4551_v48  ;;  %v4921_v48 = vrot.slane %v6980_v40, 4 }
0x2f07   :  { %5841 = vmatpush3.msra.mxu0 %v6959_v23  ;;  %5842 = vmatprep.mubr.msk.f32.mxu0 %vm6114_vm4, %v6113_v15 }
0x2f08   :  { %5850 = vmatprep.subr.mxu0 %v6113_v15 }
0x2fc6   :  { %v4620_v49 = vpop.f32.mrf.mxu0 }
0x2fc7   :  { %6063 = vlog2.f32 %v4620_v49 }
0x2fc8   :  { %v5834_v50 = vpop.f32.mrf.mxu0 }
0x2fd4   :  { %v6064_v35 = vpop.eup %6063 }
0x2fd5   :  { %v4625_v59 = vmul.f32 0.6931472, %v6064_v35 }
0x2fd7   :  { %v4629_v55 = vadd.f32 %v4627_v51, %v4625_v59 }
0x2fd9   :  { %v4630_v0 = vadd.f32 %v4629_v55, %v6952_v13 }
0x2fdb   :  { %v4633_v16 = vadd.f32 %v4631_v21, %v4630_v0 }
0x2fdd   :  { %v4635_v20 = vrot.slane %v4633_v16, 2 }
0x2fdf   :  { %v4640_v58 = vsel %vm4437_vm15, %v4635_v20, %v4638_v62 }
0x2fe0   :  { %v4642_v17 = vsel %vm4641_vm3, %v4640_v58, -inf  ;;  %v4737_v4 = vrot.slane %v4640_v58, 6 }
0x2fe1   :  { %4643 = vmax.xlane.f32.xlu0 %v4642_v17 }
0x2ff7   :  { %4733 = vperm.xlu0 %5901, %v4731_v53  }
0x3016   :  { %4332 = vadd.xlane.f32.xlu0 %v4331_v18 }
0x306a   :  { %v4644_v31 = vpop.xlane.xlu0 %4643 }
0x306b   :  { %v4645_v1 = vsub.f32 %v4640_v58, %v4644_v31  ;;  %v4725_v63 = vrot.slane %v4644_v31, 6 }
0x306d   :  { %v4646_v54 = vmul.f32 1.442695, %v4645_v1 }
0x306f   :  { %6065 = vpow2.f32 %v4646_v54  ;;  %v5018_v54 = vrot.slane %v6980_v40, 6 }
0x3072   :  { %v7041_v60 = vpop.permute.xlu0 %4733 }
0x3073   :  { %vm4735_vm6 = vcmp.eq.s32.totalorder %v7041_v60, 1 }
0x307c   :  { %v6066_v8 = vpop.eup %6065 }
0x307d   :  { %v4649_v61 = vrot.slane %v6066_v8, 6 }
0x307f   :  { %5838 = vmatmul.mubr.msk.f32.vlgmr.msra.gmra.mxu1 %vm288_vm1, %v4649_v61 }
0x3080   :  { %5846 = vmatpush3.msra.mxu1 %v6959_v23  ;;  %5847 = vmatprep.mubr.msk.f32.mxu1 %vm6114_vm4, %v6113_v15 }
0x313f   :  { %v4718_v33 = vpop.f32.mrf.mxu1 }
0x3140   :  { %6067 = vlog2.f32 %v4718_v33 }
0x3141   :  { %v5839_v32 = vpop.f32.mrf.mxu1 }
0x314d   :  { %v6068_v28 = vpop.eup %6067 }
0x314e   :  { %v4723_v38 = vmul.f32 0.6931472, %v6068_v28 }
0x3150   :  { %v4727_v22 = vadd.f32 %v4725_v63, %v4723_v38 }
0x3152   :  { %v4728_v27 = vadd.f32 %v4727_v22, %v6952_v13 }
0x3154   :  { %v4729_v5 = vadd.f32 %v4728_v27, %v6980_v40 }
0x3156   :  { %v4739_v2 = vsel %vm4735_vm6, %v4729_v5, %v4737_v4 }
0x3157   :  { %v4740_v10 = vsel %vm4330_vm9, %v4739_v2, -inf  ;;  %v4831_v24 = vrot.slane %v4739_v2, 6 }
0x3158   :  { %4741 = vmax.xlane.f32.xlu1 %v4740_v10  ;;  %v4333_v10 = vpop.xlane.xlu0 %4332 }
0x31e1   :  { %v4742_v6 = vpop.xlane.xlu1 %4741 }
0x31e2   :  { %v4743_v7 = vsub.f32 %v4739_v2, %v4742_v6 }
0x31e4   :  { %v4744_v3 = vmul.f32 1.442695, %v4743_v7 }
0x31e6   :  { %6069 = vpow2.f32 %v4744_v3 }
0x31f3   :  { %v6070_v19 = vpop.eup %6069 }
0x31f4   :  { %5843 = vmatmul.mubr.msk.f32.vlgmr.msra.gmra.mxu0 %vm288_vm1, %v6070_v19 }
0x31f5   :  { %5851 = vmatpush3.msra.mxu0 %v6959_v23  ;;  %5852 = vmatprep.mubr.msk.f32.mxu0 %vm6114_vm4, %v6113_v15 }
0x32b4   :  { %v4815_v25 = vpop.f32.mrf.mxu0 }
0x32b5   :  { %6071 = vlog2.f32 %v4815_v25 }
0x32b6   :  { %v5844_v43 = vpop.f32.mrf.mxu0 }
0x32c2   :  { %v6072_v9 = vpop.eup %6071 }
0x32c3   :  { %v4820_v52 = vmul.f32 0.6931472, %v6072_v9 }
0x32c5   :  { %v4821_v11 = vadd.f32 %v4820_v52, %v4742_v6 }
0x32c7   :  { %v4822_v12 = vadd.f32 %v4821_v11, %v6952_v13 }
0x32c9   :  { %v4826_v26 = vadd.f32 %v4824_v14, %v4822_v12 }
0x32cb   :  { %v4828_v29 = vrot.slane %v4826_v26, 6 }
0x32cd   :  { %v4833_v30 = vsel %vm4735_vm6, %v4828_v29, %v4831_v24 }
0x32ce   :  { %v4834_v23 = vsel %vm4445_vm14, %v4833_v30, -inf  ;;  %v4928_v50 = vrot.slane %v4833_v30, 6 }
0x32cf   :  { %4835 = vmax.xlane.f32.xlu1 %v4834_v23 }
0x3358   :  { %v4836_v15 = vpop.xlane.xlu1 %4835 }
0x3359   :  { %v4837_v56 = vsub.f32 %v4833_v30, %v4836_v15  ;;  %v4917_v45 = vrot.slane %v4836_v15, 2 }
0x335b   :  { %v4838_v34 = vmul.f32 1.442695, %v4837_v56 }
0x335d   :  { %6073 = vpow2.f32 %v4838_v34 }
0x336a   :  { %v6074_v37 = vpop.eup %6073 }
0x336b   :  { %v4841_v39 = vrot.slane %v6074_v37, 2 }
0x336d   :  { %5848 = vmatmul.mubr.msk.f32.vlgmr.msra.gmra.mxu1 %vm288_vm1, %v4841_v39 }
0x342d   :  { %v4910_v41 = vpop.f32.mrf.mxu1 }
0x342e   :  { %6075 = vlog2.f32 %v4910_v41 }
0x342f   :  { %v5849_v42 = vpop.f32.mrf.mxu1 }
0x343b   :  { %v6076_v44 = vpop.eup %6075 }
0x343c   :  { %v4915_v57 = vmul.f32 0.6931472, %v6076_v44 }
0x343e   :  { %v4919_v47 = vadd.f32 %v4917_v45, %v4915_v57 }
0x3440   :  { %v4920_v36 = vadd.f32 %v4919_v47, %v6952_v13 }
0x3442   :  { %v4923_v49 = vadd.f32 %v4921_v48, %v4920_v36 }
0x3444   :  { %v4925_v35 = vrot.slane %v4923_v49, 4 }
0x3446   :  { %v4930_v51 = vsel %vm4735_vm6, %v4925_v35, %v4928_v50 }
0x3447   :  { %v4931_v59 = vsel %vm4543_vm2, %v4930_v51, -inf  ;;  %v5025_v61 = vrot.slane %v4930_v51, 6 }
0x3448   :  { %4932 = vmax.xlane.f32.xlu1 %v4931_v59 }
0x34d1   :  { %v4933_v55 = vpop.xlane.xlu1 %4932 }
0x34d2   :  { %v4934_v0 = vsub.f32 %v4930_v51, %v4933_v55  ;;  %v5014_v53 = vrot.slane %v4933_v55, 4 }
0x34d4   :  { %v4935_v21 = vmul.f32 1.442695, %v4934_v0 }
0x34d6   :  { %6077 = vpow2.f32 %v4935_v21 }
0x34e3   :  { %v6078_v16 = vpop.eup %6077 }
0x34e4   :  { %v4938_v62 = vrot.slane %v6078_v16, 4 }
0x34e6   :  { %5853 = vmatmul.mubr.msk.f32.vlgmr.msra.gmra.mxu0 %vm288_vm1, %v4938_v62  ;;  %vm5045_vm1 = vcmask 1024  }
0x35a6   :  { %v5007_v20 = vpop.f32.mrf.mxu0 }
0x35a7   :  { %6079 = vlog2.f32 %v5007_v20 }
0x35a8   :  { %v5854_v58 = vpop.f32.mrf.mxu0 }
0x35b4   :  { %v6080_v17 = vpop.eup %6079 }
0x35b5   :  { %v5012_v18 = vmul.f32 0.6931472, %v6080_v17 }
0x35b7   :  { %v5016_v31 = vadd.f32 %v5014_v53, %v5012_v18 }
0x35b9   :  { %v5017_v1 = vadd.f32 %v5016_v31, %v6952_v13 }
0x35bb   :  { %v5020_v8 = vadd.f32 %v5018_v54, %v5017_v1 }
0x35bd   :  { %v5022_v33 = vrot.slane %v5020_v8, 2 }
0x35bf   :  { %v5027_v32 = vsel %vm4735_vm6, %v5022_v33, %v5025_v61 }
0x35c0   :  { %v5028_v28 = vadd.f32 %v6986_v46, %v5027_v32 }
0x35c2   :  { %v5029_v63 = vsel %vm4641_vm3, %v5028_v28, -inf }
0x35c3   :  { %5030 = vmax.xlane.f32.xlu1 %v5029_v63 }
0x364c   :  { %v5031_v38 = vpop.xlane.xlu1 %5030 }
0x364d   :  { %v5032_v22 = vsub.f32 %v5028_v28, %v5031_v38 }
0x364f   :  { %v5033_v27 = vmul.f32 1.442695, %v5032_v22 }
0x3651   :  { %6081 = vpow2.f32 %v5033_v27 }
0x365e   :  { %v6082_v4 = vpop.eup %6081 }
0x365f   :  { %v5035_v13 = vsel %vm4641_vm3, %v6082_v4, 0.0 }
0x3660   :  { %5036 = vadd.xlane.f32.xlu1 %v5035_v13 }
0x36e9   :  { %v5037_v40 = vpop.xlane.xlu1 %5036 }
0x36ea   :  { %6083 = vlog2.f32 %v5037_v40 }
0x36f7   :  { %v6084_v5 = vpop.eup %6083 }
0x36f8   :  { %v5039_v46 = vmul.f32 0.6931472, %v6084_v5 }
0x36fa   :  { %v5040_v60 = vadd.f32 %v5039_v46, %v5031_v38 }
0x36fc   :  { %v5042_v2 = vrot.slane %v5040_v60, 6 }
0x36fe   :  { %v5044_v6 = vsub.f32 %v4333_v10, %v5042_v2 }
0x3700   :  { %5046 = vst.msk [vmem:[%s5082_s4] sm:$0x3] %vm5045_vm1, %v5044_v6 }

</bundles_post_ra>
